<compile_context>
chip_gen: v5e
topology: v5e:2x2
jax: 0.10.0
libtpu: 0.0.40
codegen_flags: <defaults>
</compile_context>

<pallas_src>
import jax
import jax.numpy as jnp
from jax import lax
from jax.experimental import pallas as pl
from jax.experimental.pallas import tpu as pltpu

EMBED_DIM = 512          # d_out of Projection
TRANSFORMER_EMBED = 768  # d_in of Projection (ViT / DistilBERT hidden size)
LN_EPS = 1e-5            # nn.LayerNorm default eps
NORM_EPS = 1e-12         # F.normalize default eps


def _gelu(x):
    # TODO(synk): torch F.gelu defaults to the exact erf form; the tanh
    # approximation is used because erf is not guaranteed to lower in Mosaic
    # (~1e-3 relative difference).
    c = 0.7978845608028654  # sqrt(2/pi)
    return 0.5 * x * (1.0 + jnp.tanh(c * (x + 0.044715 * x * x * x)))


# --------------------------------------------------------------------------
# Fused kernel: both Projections + L2 norms + CLIP head.
# --------------------------------------------------------------------------
def _project_normalize(x_ref, w1_ref, w2_ref, gamma_ref, beta_ref):
    """Projection (linear1 -> gelu -> linear2 -> +res -> LayerNorm) + L2 norm.

    Note: nn.Linear(..., bias=False) in the reference module, so no biases.
    """
    # bf16 operands, f32 accumulation on the MXU; LayerNorm / norms stay f32.
    x = x_ref[...].astype(jnp.bfloat16)
    e1 = jnp.dot(x, w1_ref[...], preferred_element_type=jnp.float32)
    e2 = jnp.dot(_gelu(e1).astype(jnp.bfloat16), w2_ref[...],
                 preferred_element_type=jnp.float32)
    # nn.Dropout(p=0.5) -> identity (eval-mode / deterministic kernel).
    h = e1 + e2
    mean = jnp.mean(h, axis=-1, keepdims=True)
    cent = h - mean
    var = jnp.mean(cent * cent, axis=-1, keepdims=True)
    ln = cent * lax.rsqrt(var + LN_EPS) * gamma_ref[...] + beta_ref[...]
    # projected_vec / torch.norm(projected_vec, dim=-1, keepdim=True)
    # (rsqrt-multiply: divide moves to the EUP slot; no eps, matching torch)
    return ln * lax.rsqrt(jnp.sum(ln * ln, axis=-1, keepdims=True))


def _fused_clip_kernel(vis_ref, txt_ref,
                       vw1_ref, vw2_ref, vg_ref, vb_ref,
                       tw1_ref, tw2_ref, tg_ref, tb_ref,
                       out_ref):
    img = _project_normalize(vis_ref, vw1_ref, vw2_ref, vg_ref, vb_ref)
    cap = _project_normalize(txt_ref, tw1_ref, tw2_ref, tg_ref, tb_ref)

    # F.normalize(p=2, dim=-1, eps=1e-12) on both embeddings (near-identity
    # since encoder outputs are already unit-norm; kept for module fidelity).
    img = img * lax.rsqrt(
        jnp.maximum(jnp.sum(img * img, axis=-1, keepdims=True),
                    NORM_EPS * NORM_EPS))
    cap = cap * lax.rsqrt(
        jnp.maximum(jnp.sum(cap * cap, axis=-1, keepdims=True),
                    NORM_EPS * NORM_EPS))

    b = img.shape[0]
    # sim = caption_embed @ image_embed.T ; sim_t = sim.T computed via a
    # second (essentially free) MXU dot so every reduction below is a
    # lane-axis reduction. Kept f32: (B,B) is tiny and feeds the loss/metrics.
    sim = lax.dot_general(cap, img, (((1,), (1,)), ((), ())),
                          preferred_element_type=jnp.float32)      # (B, B)
    sim_t = lax.dot_general(img, cap, (((1,), (1,)), ((), ())),
                            preferred_element_type=jnp.float32)    # (B, B)

    lane = lax.broadcasted_iota(jnp.int32, (b, b), 1)
    row = lax.broadcasted_iota(jnp.int32, (b, b), 0)
    diag = lane == row
    lbl = lax.broadcasted_iota(jnp.int32, (b, 1), 0)

    def _row_ce(s):
        # mean over rows of  logsumexp(row) - s[row, row]
        m = jnp.max(s, axis=1, keepdims=True)
        lse = m + jnp.log(jnp.sum(jnp.exp(s - m), axis=1, keepdims=True))
        d = jnp.sum(jnp.where(diag, s, 0.0), axis=1, keepdims=True)
        return jnp.sum(lse - d, axis=0, keepdims=True) / b          # (1, 1)

    def _row_argmax_acc(s):
        # first-occurrence argmax along lanes vs. arange labels
        m = jnp.max(s, axis=1, keepdims=True)
        idx = jnp.min(jnp.where(s == m, lane, b), axis=1, keepdims=True)
        hit = (idx == lbl).astype(jnp.float32)
        return jnp.sum(hit, axis=0, keepdims=True) / b              # (1, 1)

    loss_t = _row_ce(sim)        # F.cross_entropy(sim,   arange)
    loss_i = _row_ce(sim_t)      # F.cross_entropy(sim.T, arange)
    loss = 0.5 * (loss_i + loss_t)

    img_acc = _row_argmax_acc(sim)     # argmax(sim, dim=1) == arange
    cap_acc = _row_argmax_acc(sim_t)   # argmax(sim, dim=0) == arange

    # Single lane-dense output row: lanes 0..2 = (loss, img_acc, cap_acc).
    out_lane = lax.broadcasted_iota(jnp.int32, (1, 128), 1)
    out_ref[...] = jnp.where(out_lane == 0, loss,
                   jnp.where(out_lane == 1, img_acc,
                   jnp.where(out_lane == 2, cap_acc, 0.0)))


def clip_forward_fused(vis_cls, txt_cls, params):
    b, d_in = vis_cls.shape
    d_out = EMBED_DIM

    def full(shape):
        return pl.BlockSpec(shape, lambda i: (0,) * len(shape))

    out = pl.pallas_call(
        _fused_clip_kernel,
        out_shape=jax.ShapeDtypeStruct((1, 128), jnp.float32),
        grid=(1,),
        in_specs=[
            full((b, d_in)),        # vis_cls (f32)
            full((b, d_in)),        # txt_cls (f32)
            full((d_in, d_out)),    # v_w1 (bf16)
            full((d_out, d_out)),   # v_w2 (bf16)
            full((1, d_out)),       # v_gamma
            full((1, d_out)),       # v_beta
            full((d_in, d_out)),    # t_w1 (bf16)
            full((d_out, d_out)),   # t_w2 (bf16)
            full((1, d_out)),       # t_gamma
            full((1, d_out)),       # t_beta
        ],
        out_specs=full((1, 128)),
        compiler_params=pltpu.CompilerParams(
            dimension_semantics=("arbitrary",)),
    )(vis_cls, txt_cls,
      params["v_w1"], params["v_w2"], params["v_gamma"], params["v_beta"],
      params["t_w1"], params["t_w2"], params["t_gamma"], params["t_beta"])
    return out[0, 0], out[0, 1], out[0, 2]


# --------------------------------------------------------------------------
# Frozen-backbone stubs (glue, plain JAX).
# --------------------------------------------------------------------------
def vit_backbone_stub(images, w_patch):
    # TODO(synk): pretrained google/vit-base-patch16-224-in21k backbone has no
    # in-script equivalent; replaced by a deterministic patch-flatten + linear
    # stub producing the 768-d "CLS token".
    b = images.shape[0]
    flat = images.reshape(b, -1)          # (B, 3*16*16) == (B, 768)
    return jnp.tanh(flat @ w_patch)       # (B, 768)


def bert_backbone_stub(input_ids, attention_mask, embed_table, w_txt):
    # TODO(synk): pretrained distilbert-base-multilingual-cased backbone (and
    # the GloVe-synonym / tokenizer string preprocessing) has no Pallas
    # equivalent; replaced by a deterministic masked-mean embedding stub.
    emb = jnp.take(embed_table, input_ids, axis=0)            # (B, S, 768)
    mask = attention_mask.astype(jnp.float32)[..., None]      # (B, S, 1)
    pooled = jnp.sum(emb * mask, axis=1) / jnp.maximum(
        jnp.sum(mask, axis=1), 1.0)                           # (B, 768)
    return jnp.tanh(pooled @ w_txt)                           # (B, 768)


# --------------------------------------------------------------------------
# Parameter construction (deterministic) and full forward.
# --------------------------------------------------------------------------
def make_params(key):
    ks = jax.random.split(key, 8)
    d_in, d_out = TRANSFORMER_EMBED, EMBED_DIM
    s_in = 1.0 / jnp.sqrt(d_in)
    s_out = 1.0 / jnp.sqrt(d_out)
    # Projection weights are stored bf16: the MXU consumes bf16 operands with
    # f32 accumulation, and this halves weight DMA bytes into the kernel.
    return {
        # vision Projection
        "v_w1": (jax.random.normal(ks[0], (d_in, d_out), jnp.float32)
                 * s_in).astype(jnp.bfloat16),
        "v_w2": (jax.random.normal(ks[1], (d_out, d_out), jnp.float32)
                 * s_out).astype(jnp.bfloat16),
        "v_gamma": jnp.ones((1, d_out), jnp.float32),
        "v_beta": jnp.zeros((1, d_out), jnp.float32),
        # caption Projection
        "t_w1": (jax.random.normal(ks[2], (d_in, d_out), jnp.float32)
                 * s_in).astype(jnp.bfloat16),
        "t_w2": (jax.random.normal(ks[3], (d_out, d_out), jnp.float32)
                 * s_out).astype(jnp.bfloat16),
        "t_gamma": jnp.ones((1, d_out), jnp.float32),
        "t_beta": jnp.zeros((1, d_out), jnp.float32),
        # backbone stubs
        "w_patch": jax.random.normal(ks[4], (d_in, d_in), jnp.float32) * s_in,
        "embed_table": jax.random.normal(ks[5], (32, d_in), jnp.float32) * 0.1,
        "w_txt": jax.random.normal(ks[6], (d_in, d_in), jnp.float32) * s_in,
    }


@jax.jit
def custom_model_forward(params, images, input_ids, attention_mask):
    vis_cls = vit_backbone_stub(images, params["w_patch"])
    txt_cls = bert_backbone_stub(input_ids, attention_mask,
                                 params["embed_table"], params["w_txt"])
    # Fused: vision projection + caption projection + normalize + CLIP head.
    loss, img_acc, cap_acc = clip_forward_fused(vis_cls, txt_cls, params)
    return loss, img_acc, cap_acc


if __name__ == "__main__":
    key = jax.random.PRNGKey(0)
    k_param, k_img, k_ids = jax.random.split(key, 3)

    params = make_params(k_param)

    B, S = 4, 8
    images = jax.random.normal(k_img, (B, 3, 16, 16), jnp.float32)  # NCHW
    input_ids = jax.random.randint(k_ids, (B, S), 0, 32, jnp.int32)
    attention_mask = jnp.ones((B, S), jnp.int32).at[:, S - 2:].set(0)

    loss, img_acc, cap_acc = custom_model_forward(
        params, images, input_ids, attention_mask)
    jax.block_until_ready((loss, img_acc, cap_acc))
    print("KERNEL_OK")
</pallas_src>

<mosaic_0001>
module attributes {stable_mosaic.version = 11 : i64} {
  func.func @_fused_clip_kernel(%arg0: i32, %arg1: memref<4x768xf32, #tpu.memory_space<vmem>>, %arg2: memref<4x768xf32, #tpu.memory_space<vmem>>, %arg3: memref<768x512xbf16, #tpu.memory_space<vmem>>, %arg4: memref<512x512xbf16, #tpu.memory_space<vmem>>, %arg5: memref<1x512xf32, #tpu.memory_space<vmem>>, %arg6: memref<1x512xf32, #tpu.memory_space<vmem>>, %arg7: memref<768x512xbf16, #tpu.memory_space<vmem>>, %arg8: memref<512x512xbf16, #tpu.memory_space<vmem>>, %arg9: memref<1x512xf32, #tpu.memory_space<vmem>>, %arg10: memref<1x512xf32, #tpu.memory_space<vmem>>, %arg11: memref<1x128xf32, #tpu.memory_space<vmem>>) attributes {dimension_semantics = [#tpu.dimension_semantics<arbitrary>], iteration_bounds = array<i64: 1>, scalar_prefetch = 0 : i64, scratch_operands = 0 : i64, tpu.core_type = #tpu.core_type<tc>, window_params = [{pipeline_mode = #tpu.pipeline_mode<synchronous>, transform_indices = @transform_0, window_bounds = array<i64: 4, 768>}, {pipeline_mode = #tpu.pipeline_mode<synchronous>, transform_indices = @transform_1, window_bounds = array<i64: 4, 768>}, {pipeline_mode = #tpu.pipeline_mode<synchronous>, transform_indices = @transform_2, window_bounds = array<i64: 768, 512>}, {pipeline_mode = #tpu.pipeline_mode<synchronous>, transform_indices = @transform_3, window_bounds = array<i64: 512, 512>}, {pipeline_mode = #tpu.pipeline_mode<synchronous>, transform_indices = @transform_4, window_bounds = array<i64: 1, 512>}, {pipeline_mode = #tpu.pipeline_mode<synchronous>, transform_indices = @transform_5, window_bounds = array<i64: 1, 512>}, {pipeline_mode = #tpu.pipeline_mode<synchronous>, transform_indices = @transform_6, window_bounds = array<i64: 768, 512>}, {pipeline_mode = #tpu.pipeline_mode<synchronous>, transform_indices = @transform_7, window_bounds = array<i64: 512, 512>}, {pipeline_mode = #tpu.pipeline_mode<synchronous>, transform_indices = @transform_8, window_bounds = array<i64: 1, 512>}, {pipeline_mode = #tpu.pipeline_mode<synchronous>, transform_indices = @transform_9, window_bounds = array<i64: 1, 512>}, {pipeline_mode = #tpu.pipeline_mode<synchronous>, transform_indices = @transform_10, window_bounds = array<i64: 1, 128>}]} {
    %c0 = arith.constant 0 : index
    %c0_0 = arith.constant 0 : index
    %0 = vector.load %arg1[%c0, %c0_0] : memref<4x768xf32, #tpu.memory_space<vmem>>, vector<4x768xf32>
    %1 = arith.truncf %0 : vector<4x768xf32> to vector<4x768xbf16>
    %c0_1 = arith.constant 0 : index
    %c0_2 = arith.constant 0 : index
    %2 = vector.load %arg3[%c0_1, %c0_2] : memref<768x512xbf16, #tpu.memory_space<vmem>>, vector<768x512xbf16>
    %cst = arith.constant dense<0.000000e+00> : vector<4x512xf32>
    %3 = tpu.matmul %1, %2, %cst {dimension_numbers = #tpu.dot_dimension_numbers<[1], [0], [0], [1], [0, 0, 1, 1], [], []>} : vector<4x768xbf16>, vector<768x512xbf16>, vector<4x512xf32> -> vector<4x512xf32>
    %cst_3 = arith.constant 5.000000e-01 : f32
    %4 = vector.broadcast %cst_3 : f32 to vector<4x512xf32>
    %5 = arith.mulf %4, %3 : vector<4x512xf32>
    %cst_4 = arith.constant 4.471500e-02 : f32
    %6 = vector.broadcast %cst_4 : f32 to vector<4x512xf32>
    %7 = arith.mulf %6, %3 : vector<4x512xf32>
    %8 = arith.mulf %7, %3 : vector<4x512xf32>
    %9 = arith.mulf %8, %3 : vector<4x512xf32>
    %10 = arith.addf %3, %9 : vector<4x512xf32>
    %cst_5 = arith.constant 0.797884583 : f32
    %11 = vector.broadcast %cst_5 : f32 to vector<4x512xf32>
    %12 = arith.mulf %11, %10 : vector<4x512xf32>
    %13 = math.tanh %12 : vector<4x512xf32>
    %cst_6 = arith.constant 1.000000e+00 : f32
    %14 = vector.broadcast %cst_6 : f32 to vector<4x512xf32>
    %15 = arith.addf %14, %13 : vector<4x512xf32>
    %16 = arith.mulf %5, %15 : vector<4x512xf32>
    %17 = arith.truncf %16 : vector<4x512xf32> to vector<4x512xbf16>
    %c0_7 = arith.constant 0 : index
    %c0_8 = arith.constant 0 : index
    %18 = vector.load %arg4[%c0_7, %c0_8] : memref<512x512xbf16, #tpu.memory_space<vmem>>, vector<512x512xbf16>
    %cst_9 = arith.constant dense<0.000000e+00> : vector<4x512xf32>
    %19 = tpu.matmul %17, %18, %cst_9 {dimension_numbers = #tpu.dot_dimension_numbers<[1], [0], [0], [1], [0, 0, 1, 1], [], []>} : vector<4x512xbf16>, vector<512x512xbf16>, vector<4x512xf32> -> vector<4x512xf32>
    %20 = arith.addf %3, %19 : vector<4x512xf32>
    %cst_10 = arith.constant dense<0.000000e+00> : vector<4xf32>
    %21 = vector.multi_reduction <add>, %20, %cst_10 [1] : vector<4x512xf32> to vector<4xf32>
    %22 = vector.shape_cast %21 : vector<4xf32> to vector<4x1xf32>
    %cst_11 = arith.constant 5.120000e+02 : f32
    %23 = vector.broadcast %cst_11 : f32 to vector<4x1xf32>
    %24 = arith.divf %22, %23 : vector<4x1xf32>
    %25 = vector.broadcast %24 : vector<4x1xf32> to vector<4x512xf32>
    %26 = arith.subf %20, %25 : vector<4x512xf32>
    %27 = arith.mulf %26, %26 : vector<4x512xf32>
    %cst_12 = arith.constant dense<0.000000e+00> : vector<4xf32>
    %28 = vector.multi_reduction <add>, %27, %cst_12 [1] : vector<4x512xf32> to vector<4xf32>
    %29 = vector.shape_cast %28 : vector<4xf32> to vector<4x1xf32>
    %cst_13 = arith.constant 5.120000e+02 : f32
    %30 = vector.broadcast %cst_13 : f32 to vector<4x1xf32>
    %31 = arith.divf %29, %30 : vector<4x1xf32>
    %cst_14 = arith.constant 9.99999974E-6 : f32
    %32 = vector.broadcast %cst_14 : f32 to vector<4x1xf32>
    %33 = arith.addf %31, %32 : vector<4x1xf32>
    %34 = math.rsqrt %33 : vector<4x1xf32>
    %35 = vector.broadcast %34 : vector<4x1xf32> to vector<4x512xf32>
    %36 = arith.mulf %26, %35 : vector<4x512xf32>
    %c0_15 = arith.constant 0 : index
    %c0_16 = arith.constant 0 : index
    %37 = vector.load %arg5[%c0_15, %c0_16] : memref<1x512xf32, #tpu.memory_space<vmem>>, vector<1x512xf32>
    %38 = vector.broadcast %37 : vector<1x512xf32> to vector<4x512xf32>
    %39 = arith.mulf %36, %38 : vector<4x512xf32>
    %c0_17 = arith.constant 0 : index
    %c0_18 = arith.constant 0 : index
    %40 = vector.load %arg6[%c0_17, %c0_18] : memref<1x512xf32, #tpu.memory_space<vmem>>, vector<1x512xf32>
    %41 = vector.broadcast %40 : vector<1x512xf32> to vector<4x512xf32>
    %42 = arith.addf %39, %41 : vector<4x512xf32>
    %43 = arith.mulf %42, %42 : vector<4x512xf32>
    %cst_19 = arith.constant dense<0.000000e+00> : vector<4xf32>
    %44 = vector.multi_reduction <add>, %43, %cst_19 [1] : vector<4x512xf32> to vector<4xf32>
    %45 = vector.shape_cast %44 : vector<4xf32> to vector<4x1xf32>
    %46 = math.rsqrt %45 : vector<4x1xf32>
    %47 = vector.broadcast %46 : vector<4x1xf32> to vector<4x512xf32>
    %48 = arith.mulf %42, %47 : vector<4x512xf32>
    %c0_20 = arith.constant 0 : index
    %c0_21 = arith.constant 0 : index
    %49 = vector.load %arg2[%c0_20, %c0_21] : memref<4x768xf32, #tpu.memory_space<vmem>>, vector<4x768xf32>
    %50 = arith.truncf %49 : vector<4x768xf32> to vector<4x768xbf16>
    %c0_22 = arith.constant 0 : index
    %c0_23 = arith.constant 0 : index
    %51 = vector.load %arg7[%c0_22, %c0_23] : memref<768x512xbf16, #tpu.memory_space<vmem>>, vector<768x512xbf16>
    %cst_24 = arith.constant dense<0.000000e+00> : vector<4x512xf32>
    %52 = tpu.matmul %50, %51, %cst_24 {dimension_numbers = #tpu.dot_dimension_numbers<[1], [0], [0], [1], [0, 0, 1, 1], [], []>} : vector<4x768xbf16>, vector<768x512xbf16>, vector<4x512xf32> -> vector<4x512xf32>
    %cst_25 = arith.constant 5.000000e-01 : f32
    %53 = vector.broadcast %cst_25 : f32 to vector<4x512xf32>
    %54 = arith.mulf %53, %52 : vector<4x512xf32>
    %cst_26 = arith.constant 4.471500e-02 : f32
    %55 = vector.broadcast %cst_26 : f32 to vector<4x512xf32>
    %56 = arith.mulf %55, %52 : vector<4x512xf32>
    %57 = arith.mulf %56, %52 : vector<4x512xf32>
    %58 = arith.mulf %57, %52 : vector<4x512xf32>
    %59 = arith.addf %52, %58 : vector<4x512xf32>
    %cst_27 = arith.constant 0.797884583 : f32
    %60 = vector.broadcast %cst_27 : f32 to vector<4x512xf32>
    %61 = arith.mulf %60, %59 : vector<4x512xf32>
    %62 = math.tanh %61 : vector<4x512xf32>
    %cst_28 = arith.constant 1.000000e+00 : f32
    %63 = vector.broadcast %cst_28 : f32 to vector<4x512xf32>
    %64 = arith.addf %63, %62 : vector<4x512xf32>
    %65 = arith.mulf %54, %64 : vector<4x512xf32>
    %66 = arith.truncf %65 : vector<4x512xf32> to vector<4x512xbf16>
    %c0_29 = arith.constant 0 : index
    %c0_30 = arith.constant 0 : index
    %67 = vector.load %arg8[%c0_29, %c0_30] : memref<512x512xbf16, #tpu.memory_space<vmem>>, vector<512x512xbf16>
    %cst_31 = arith.constant dense<0.000000e+00> : vector<4x512xf32>
    %68 = tpu.matmul %66, %67, %cst_31 {dimension_numbers = #tpu.dot_dimension_numbers<[1], [0], [0], [1], [0, 0, 1, 1], [], []>} : vector<4x512xbf16>, vector<512x512xbf16>, vector<4x512xf32> -> vector<4x512xf32>
    %69 = arith.addf %52, %68 : vector<4x512xf32>
    %cst_32 = arith.constant dense<0.000000e+00> : vector<4xf32>
    %70 = vector.multi_reduction <add>, %69, %cst_32 [1] : vector<4x512xf32> to vector<4xf32>
    %71 = vector.shape_cast %70 : vector<4xf32> to vector<4x1xf32>
    %cst_33 = arith.constant 5.120000e+02 : f32
    %72 = vector.broadcast %cst_33 : f32 to vector<4x1xf32>
    %73 = arith.divf %71, %72 : vector<4x1xf32>
    %74 = vector.broadcast %73 : vector<4x1xf32> to vector<4x512xf32>
    %75 = arith.subf %69, %74 : vector<4x512xf32>
    %76 = arith.mulf %75, %75 : vector<4x512xf32>
    %cst_34 = arith.constant dense<0.000000e+00> : vector<4xf32>
    %77 = vector.multi_reduction <add>, %76, %cst_34 [1] : vector<4x512xf32> to vector<4xf32>
    %78 = vector.shape_cast %77 : vector<4xf32> to vector<4x1xf32>
    %cst_35 = arith.constant 5.120000e+02 : f32
    %79 = vector.broadcast %cst_35 : f32 to vector<4x1xf32>
    %80 = arith.divf %78, %79 : vector<4x1xf32>
    %cst_36 = arith.constant 9.99999974E-6 : f32
    %81 = vector.broadcast %cst_36 : f32 to vector<4x1xf32>
    %82 = arith.addf %80, %81 : vector<4x1xf32>
    %83 = math.rsqrt %82 : vector<4x1xf32>
    %84 = vector.broadcast %83 : vector<4x1xf32> to vector<4x512xf32>
    %85 = arith.mulf %75, %84 : vector<4x512xf32>
    %c0_37 = arith.constant 0 : index
    %c0_38 = arith.constant 0 : index
    %86 = vector.load %arg9[%c0_37, %c0_38] : memref<1x512xf32, #tpu.memory_space<vmem>>, vector<1x512xf32>
    %87 = vector.broadcast %86 : vector<1x512xf32> to vector<4x512xf32>
    %88 = arith.mulf %85, %87 : vector<4x512xf32>
    %c0_39 = arith.constant 0 : index
    %c0_40 = arith.constant 0 : index
    %89 = vector.load %arg10[%c0_39, %c0_40] : memref<1x512xf32, #tpu.memory_space<vmem>>, vector<1x512xf32>
    %90 = vector.broadcast %89 : vector<1x512xf32> to vector<4x512xf32>
    %91 = arith.addf %88, %90 : vector<4x512xf32>
    %92 = arith.mulf %91, %91 : vector<4x512xf32>
    %cst_41 = arith.constant dense<0.000000e+00> : vector<4xf32>
    %93 = vector.multi_reduction <add>, %92, %cst_41 [1] : vector<4x512xf32> to vector<4xf32>
    %94 = vector.shape_cast %93 : vector<4xf32> to vector<4x1xf32>
    %95 = math.rsqrt %94 : vector<4x1xf32>
    %96 = vector.broadcast %95 : vector<4x1xf32> to vector<4x512xf32>
    %97 = arith.mulf %91, %96 : vector<4x512xf32>
    %98 = arith.mulf %48, %48 : vector<4x512xf32>
    %cst_42 = arith.constant dense<0.000000e+00> : vector<4xf32>
    %99 = vector.multi_reduction <add>, %98, %cst_42 [1] : vector<4x512xf32> to vector<4xf32>
    %100 = vector.shape_cast %99 : vector<4xf32> to vector<4x1xf32>
    %cst_43 = arith.constant 1.000000e-24 : f32
    %101 = vector.broadcast %cst_43 : f32 to vector<4x1xf32>
    %102 = arith.maximumf %100, %101 : vector<4x1xf32>
    %103 = math.rsqrt %102 : vector<4x1xf32>
    %104 = vector.broadcast %103 : vector<4x1xf32> to vector<4x512xf32>
    %105 = arith.mulf %48, %104 : vector<4x512xf32>
    %106 = arith.mulf %97, %97 : vector<4x512xf32>
    %cst_44 = arith.constant dense<0.000000e+00> : vector<4xf32>
    %107 = vector.multi_reduction <add>, %106, %cst_44 [1] : vector<4x512xf32> to vector<4xf32>
    %108 = vector.shape_cast %107 : vector<4xf32> to vector<4x1xf32>
    %cst_45 = arith.constant 1.000000e-24 : f32
    %109 = vector.broadcast %cst_45 : f32 to vector<4x1xf32>
    %110 = arith.maximumf %108, %109 : vector<4x1xf32>
    %111 = math.rsqrt %110 : vector<4x1xf32>
    %112 = vector.broadcast %111 : vector<4x1xf32> to vector<4x512xf32>
    %113 = arith.mulf %97, %112 : vector<4x512xf32>
    %cst_46 = arith.constant dense<0.000000e+00> : vector<4x4xf32>
    %114 = tpu.matmul %113, %105, %cst_46 {dimension_numbers = #tpu.dot_dimension_numbers<[1], [1], [0], [0], [0, 0, 1, 0], [], []>} : vector<4x512xf32>, vector<4x512xf32>, vector<4x4xf32> -> vector<4x4xf32>
    %cst_47 = arith.constant dense<0.000000e+00> : vector<4x4xf32>
    %115 = tpu.matmul %105, %113, %cst_47 {dimension_numbers = #tpu.dot_dimension_numbers<[1], [1], [0], [0], [0, 0, 1, 0], [], []>} : vector<4x512xf32>, vector<4x512xf32>, vector<4x4xf32> -> vector<4x4xf32>
    %116 = tpu.iota {dimensions = array<i32: 1>} : vector<4x4xi32>
    %117 = tpu.iota {dimensions = array<i32: 0>} : vector<4x4xi32>
    %118 = arith.cmpi eq, %116, %117 : vector<4x4xi32>
    %119 = tpu.iota {dimensions = array<i32: 0>} : vector<4x1xi32>
    %cst_48 = arith.constant dense<0xFF800000> : vector<4xf32>
    %120 = vector.multi_reduction <maximumf>, %114, %cst_48 [1] : vector<4x4xf32> to vector<4xf32>
    %121 = vector.shape_cast %120 : vector<4xf32> to vector<4x1xf32>
    %122 = vector.broadcast %121 : vector<4x1xf32> to vector<4x4xf32>
    %123 = arith.subf %114, %122 : vector<4x4xf32>
    %124 = math.exp %123 : vector<4x4xf32>
    %cst_49 = arith.constant dense<0.000000e+00> : vector<4xf32>
    %125 = vector.multi_reduction <add>, %124, %cst_49 [1] : vector<4x4xf32> to vector<4xf32>
    %126 = vector.shape_cast %125 : vector<4xf32> to vector<4x1xf32>
    %127 = math.log %126 : vector<4x1xf32>
    %128 = arith.addf %121, %127 : vector<4x1xf32>
    %cst_50 = arith.constant 0.000000e+00 : f32
    %129 = vector.broadcast %cst_50 : f32 to vector<4x4xf32>
    %130 = arith.select %118, %114, %129 : vector<4x4xi1>, vector<4x4xf32>
    %cst_51 = arith.constant dense<0.000000e+00> : vector<4xf32>
    %131 = vector.multi_reduction <add>, %130, %cst_51 [1] : vector<4x4xf32> to vector<4xf32>
    %132 = vector.shape_cast %131 : vector<4xf32> to vector<4x1xf32>
    %133 = arith.subf %128, %132 : vector<4x1xf32>
    %cst_52 = arith.constant dense<0.000000e+00> : vector<1xf32>
    %134 = vector.multi_reduction <add>, %133, %cst_52 [0] : vector<4x1xf32> to vector<1xf32>
    %135 = vector.shape_cast %134 : vector<1xf32> to vector<1x1xf32>
    %cst_53 = arith.constant 4.000000e+00 : f32
    %136 = vector.broadcast %cst_53 : f32 to vector<1x1xf32>
    %137 = arith.divf %135, %136 : vector<1x1xf32>
    %cst_54 = arith.constant dense<0xFF800000> : vector<4xf32>
    %138 = vector.multi_reduction <maximumf>, %115, %cst_54 [1] : vector<4x4xf32> to vector<4xf32>
    %139 = vector.shape_cast %138 : vector<4xf32> to vector<4x1xf32>
    %140 = vector.broadcast %139 : vector<4x1xf32> to vector<4x4xf32>
    %141 = arith.subf %115, %140 : vector<4x4xf32>
    %142 = math.exp %141 : vector<4x4xf32>
    %cst_55 = arith.constant dense<0.000000e+00> : vector<4xf32>
    %143 = vector.multi_reduction <add>, %142, %cst_55 [1] : vector<4x4xf32> to vector<4xf32>
    %144 = vector.shape_cast %143 : vector<4xf32> to vector<4x1xf32>
    %145 = math.log %144 : vector<4x1xf32>
    %146 = arith.addf %139, %145 : vector<4x1xf32>
    %cst_56 = arith.constant 0.000000e+00 : f32
    %147 = vector.broadcast %cst_56 : f32 to vector<4x4xf32>
    %148 = arith.select %118, %115, %147 : vector<4x4xi1>, vector<4x4xf32>
    %cst_57 = arith.constant dense<0.000000e+00> : vector<4xf32>
    %149 = vector.multi_reduction <add>, %148, %cst_57 [1] : vector<4x4xf32> to vector<4xf32>
    %150 = vector.shape_cast %149 : vector<4xf32> to vector<4x1xf32>
    %151 = arith.subf %146, %150 : vector<4x1xf32>
    %cst_58 = arith.constant dense<0.000000e+00> : vector<1xf32>
    %152 = vector.multi_reduction <add>, %151, %cst_58 [0] : vector<4x1xf32> to vector<1xf32>
    %153 = vector.shape_cast %152 : vector<1xf32> to vector<1x1xf32>
    %cst_59 = arith.constant 4.000000e+00 : f32
    %154 = vector.broadcast %cst_59 : f32 to vector<1x1xf32>
    %155 = arith.divf %153, %154 : vector<1x1xf32>
    %156 = arith.addf %155, %137 : vector<1x1xf32>
    %cst_60 = arith.constant 5.000000e-01 : f32
    %157 = vector.broadcast %cst_60 : f32 to vector<1x1xf32>
    %158 = arith.mulf %157, %156 : vector<1x1xf32>
    %cst_61 = arith.constant dense<0xFF800000> : vector<4xf32>
    %159 = vector.multi_reduction <maximumf>, %114, %cst_61 [1] : vector<4x4xf32> to vector<4xf32>
    %160 = vector.shape_cast %159 : vector<4xf32> to vector<4x1xf32>
    %161 = vector.broadcast %160 : vector<4x1xf32> to vector<4x4xf32>
    %162 = arith.cmpf oeq, %114, %161 : vector<4x4xf32>
    %c4_i32 = arith.constant 4 : i32
    %163 = vector.broadcast %c4_i32 : i32 to vector<4x4xi32>
    %164 = arith.select %162, %116, %163 : vector<4x4xi1>, vector<4x4xi32>
    %cst_62 = arith.constant dense<2147483647> : vector<4xi32>
    %165 = vector.multi_reduction <minsi>, %164, %cst_62 [1] : vector<4x4xi32> to vector<4xi32>
    %166 = vector.shape_cast %165 : vector<4xi32> to vector<4x1xi32>
    %167 = arith.cmpi eq, %166, %119 : vector<4x1xi32>
    %168 = arith.extui %167 : vector<4x1xi1> to vector<4x1xi32>
    %169 = arith.sitofp %168 : vector<4x1xi32> to vector<4x1xf32>
    %cst_63 = arith.constant dense<0.000000e+00> : vector<1xf32>
    %170 = vector.multi_reduction <add>, %169, %cst_63 [0] : vector<4x1xf32> to vector<1xf32>
    %171 = vector.shape_cast %170 : vector<1xf32> to vector<1x1xf32>
    %cst_64 = arith.constant 4.000000e+00 : f32
    %172 = vector.broadcast %cst_64 : f32 to vector<1x1xf32>
    %173 = arith.divf %171, %172 : vector<1x1xf32>
    %cst_65 = arith.constant dense<0xFF800000> : vector<4xf32>
    %174 = vector.multi_reduction <maximumf>, %115, %cst_65 [1] : vector<4x4xf32> to vector<4xf32>
    %175 = vector.shape_cast %174 : vector<4xf32> to vector<4x1xf32>
    %176 = vector.broadcast %175 : vector<4x1xf32> to vector<4x4xf32>
    %177 = arith.cmpf oeq, %115, %176 : vector<4x4xf32>
    %c4_i32_66 = arith.constant 4 : i32
    %178 = vector.broadcast %c4_i32_66 : i32 to vector<4x4xi32>
    %179 = arith.select %177, %116, %178 : vector<4x4xi1>, vector<4x4xi32>
    %cst_67 = arith.constant dense<2147483647> : vector<4xi32>
    %180 = vector.multi_reduction <minsi>, %179, %cst_67 [1] : vector<4x4xi32> to vector<4xi32>
    %181 = vector.shape_cast %180 : vector<4xi32> to vector<4x1xi32>
    %182 = arith.cmpi eq, %181, %119 : vector<4x1xi32>
    %183 = arith.extui %182 : vector<4x1xi1> to vector<4x1xi32>
    %184 = arith.sitofp %183 : vector<4x1xi32> to vector<4x1xf32>
    %cst_68 = arith.constant dense<0.000000e+00> : vector<1xf32>
    %185 = vector.multi_reduction <add>, %184, %cst_68 [0] : vector<4x1xf32> to vector<1xf32>
    %186 = vector.shape_cast %185 : vector<1xf32> to vector<1x1xf32>
    %cst_69 = arith.constant 4.000000e+00 : f32
    %187 = vector.broadcast %cst_69 : f32 to vector<1x1xf32>
    %188 = arith.divf %186, %187 : vector<1x1xf32>
    %189 = tpu.iota {dimensions = array<i32: 1>} : vector<1x128xi32>
    %c0_i32 = arith.constant 0 : i32
    %190 = vector.broadcast %c0_i32 : i32 to vector<1x128xi32>
    %191 = arith.cmpi eq, %189, %190 : vector<1x128xi32>
    %c1_i32 = arith.constant 1 : i32
    %192 = vector.broadcast %c1_i32 : i32 to vector<1x128xi32>
    %193 = arith.cmpi eq, %189, %192 : vector<1x128xi32>
    %c2_i32 = arith.constant 2 : i32
    %194 = vector.broadcast %c2_i32 : i32 to vector<1x128xi32>
    %195 = arith.cmpi eq, %189, %194 : vector<1x128xi32>
    %cst_70 = arith.constant 0.000000e+00 : f32
    %196 = vector.shape_cast %188 : vector<1x1xf32> to vector<1x1xf32>
    %197 = vector.broadcast %196 : vector<1x1xf32> to vector<1x128xf32>
    %198 = vector.broadcast %cst_70 : f32 to vector<1x128xf32>
    %199 = arith.select %195, %197, %198 : vector<1x128xi1>, vector<1x128xf32>
    %200 = vector.shape_cast %173 : vector<1x1xf32> to vector<1x1xf32>
    %201 = vector.broadcast %200 : vector<1x1xf32> to vector<1x128xf32>
    %202 = arith.select %193, %201, %199 : vector<1x128xi1>, vector<1x128xf32>
    %203 = vector.shape_cast %158 : vector<1x1xf32> to vector<1x1xf32>
    %204 = vector.broadcast %203 : vector<1x1xf32> to vector<1x128xf32>
    %205 = arith.select %191, %204, %202 : vector<1x128xi1>, vector<1x128xf32>
    %c0_71 = arith.constant 0 : index
    %c0_72 = arith.constant 0 : index
    %206 = vector.load %arg11[%c0_71, %c0_72] : memref<1x128xf32, #tpu.memory_space<vmem>>, vector<1x128xf32>
    tpu.vector_store %arg11[%c0_71, %c0_72], %205 {strides = array<i32>} : memref<1x128xf32, #tpu.memory_space<vmem>>, vector<1x128xf32>,
    return
  }
  func.func @transform_0(%arg0: i32) -> (i32, i32) {
    %c0_i32 = arith.constant 0 : i32
    %c0_i32_0 = arith.constant 0 : i32
    %c0_i32_1 = arith.constant 0 : i32
    return %c0_i32, %c0_i32_0 : i32, i32
  }
  func.func @transform_1(%arg0: i32) -> (i32, i32) {
    %c0_i32 = arith.constant 0 : i32
    %c0_i32_0 = arith.constant 0 : i32
    %c0_i32_1 = arith.constant 0 : i32
    return %c0_i32, %c0_i32_0 : i32, i32
  }
  func.func @transform_2(%arg0: i32) -> (i32, i32) {
    %c0_i32 = arith.constant 0 : i32
    %c0_i32_0 = arith.constant 0 : i32
    %c0_i32_1 = arith.constant 0 : i32
    return %c0_i32, %c0_i32_0 : i32, i32
  }
  func.func @transform_3(%arg0: i32) -> (i32, i32) {
    %c0_i32 = arith.constant 0 : i32
    %c0_i32_0 = arith.constant 0 : i32
    %c0_i32_1 = arith.constant 0 : i32
    return %c0_i32, %c0_i32_0 : i32, i32
  }
  func.func @transform_4(%arg0: i32) -> (i32, i32) {
    %c0_i32 = arith.constant 0 : i32
    %c0_i32_0 = arith.constant 0 : i32
    %c0_i32_1 = arith.constant 0 : i32
    return %c0_i32, %c0_i32_0 : i32, i32
  }
  func.func @transform_5(%arg0: i32) -> (i32, i32) {
    %c0_i32 = arith.constant 0 : i32
    %c0_i32_0 = arith.constant 0 : i32
    %c0_i32_1 = arith.constant 0 : i32
    return %c0_i32, %c0_i32_0 : i32, i32
  }
  func.func @transform_6(%arg0: i32) -> (i32, i32) {
    %c0_i32 = arith.constant 0 : i32
    %c0_i32_0 = arith.constant 0 : i32
    %c0_i32_1 = arith.constant 0 : i32
    return %c0_i32, %c0_i32_0 : i32, i32
  }
  func.func @transform_7(%arg0: i32) -> (i32, i32) {
    %c0_i32 = arith.constant 0 : i32
    %c0_i32_0 = arith.constant 0 : i32
    %c0_i32_1 = arith.constant 0 : i32
    return %c0_i32, %c0_i32_0 : i32, i32
  }
  func.func @transform_8(%arg0: i32) -> (i32, i32) {
    %c0_i32 = arith.constant 0 : i32
    %c0_i32_0 = arith.constant 0 : i32
    %c0_i32_1 = arith.constant 0 : i32
    return %c0_i32, %c0_i32_0 : i32, i32
  }
  func.func @transform_9(%arg0: i32) -> (i32, i32) {
    %c0_i32 = arith.constant 0 : i32
    %c0_i32_0 = arith.constant 0 : i32
    %c0_i32_1 = arith.constant 0 : i32
    return %c0_i32, %c0_i32_0 : i32, i32
  }
  func.func @transform_10(%arg0: i32) -> (i32, i32) {
    %c0_i32 = arith.constant 0 : i32
    %c0_i32_0 = arith.constant 0 : i32
    %c0_i32_1 = arith.constant 0 : i32
    return %c0_i32, %c0_i32_0 : i32, i32
  }
}

</mosaic_0001>

<bundles_post_ra>
// kernel: custom_model_forward.1
= control target key start
LH: loop header
LB: loop body
LE: loop exit
PB: predicated region body
PF: predicated region fallthrough
CT: control target
= control target key end

     0   :  { %vm2548_vm0 = vcmask 1043456   ;;  %s13271_s2 = inlined_call_operand.vmem [shape: bf16[768,512], index: 2, kind: input, shape index: {}]   ;;  %s13272_s0 = inlined_call_operand.vmem [shape: f32[4,768], index: 0, kind: input, shape index: {}]   ;;  %s13273_s1 = inlined_call_operand.vmem [shape: f32[4,768], index: 1, kind: input, shape index: {}]   ;;  %s13274_s3 = inlined_call_operand.vmem [shape: bf16[512,512], index: 3, kind: input, shape index: {}]   ;;  %s13275_s6 = inlined_call_operand.vmem [shape: bf16[768,512], index: 6, kind: input, shape index: {}]   ;;  %s13276_s7 = inlined_call_operand.vmem [shape: bf16[512,512], index: 7, kind: input, shape index: {}]   ;;  %s13277_s4 = inlined_call_operand.vmem [shape: f32[1,512], index: 4, kind: input, shape index: {}]   ;;  %s13278_s5 = inlined_call_operand.vmem [shape: f32[1,512], index: 5, kind: input, shape index: {}]   ;;  %s13279_s8 = inlined_call_operand.vmem [shape: f32[1,512], index: 8, kind: input, shape index: {}]   ;;  %s13280_s9 = inlined_call_operand.vmem [shape: f32[1,512], index: 9, kind: input, shape index: {}]   ;;  %s13281_s10 = inlined_call_operand.vmem [shape: f32[1,128], index: 10, kind: output, shape index: {}]  }
   0x1   :  { %v5727_v0 = vld [vmem:[%s13271_s2 + $0xe0] sm:$0xf]  ;;  %v8205_v1 = vld [vmem:[%s13271_s2 + $0xec] sm:$0xf0] }
   0x2   :  { %v5855_v2 = vld [vmem:[%s13271_s2 + $0x1e0] sm:$0xf]  ;;  %v5728_v3 = vor.u32 %v8205_v1, %v5727_v0  ;;  %v8237_v4 = vld [vmem:[%s13271_s2 + $0x1ec] sm:$0xf0] }
   0x3   :  { %v5983_v5 = vld [vmem:[%s13271_s2 + $0x2e0] sm:$0xf]  ;;  %v8269_v6 = vld [vmem:[%s13271_s2 + $0x2ec] sm:$0xf0]  ;;  %v5856_v7 = vor.u32 %v8237_v4, %v5855_v2 }
   0x4   :  { %v5984_v8 = vor.u32 %v8269_v6, %v5983_v5  ;;  %v6111_v9 = vld [vmem:[%s13271_s2 + $0x3e0] sm:$0xf]  ;;  %v8301_v10 = vld [vmem:[%s13271_s2 + $0x3ec] sm:$0xf0]  ;;  %1216 = vmatpush.bf16.msra.mxu0 %v5728_v3 }
   0x5   :  { %v5711_v11 = vld [vmem:[%s13271_s2 + $0xc0] sm:$0xf]  ;;  %v6112_v12 = vor.u32 %v8301_v10, %v6111_v9  ;;  %v8201_v13 = vld [vmem:[%s13271_s2 + $0xcc] sm:$0xf0]  ;;  %1229 = vmatpush.bf16.msra.mxu1 %v5856_v7 }
   0x6   :  { %v5839_v14 = vld [vmem:[%s13271_s2 + $0x1c0] sm:$0xf]  ;;  %v8233_v15 = vld [vmem:[%s13271_s2 + $0x1cc] sm:$0xf0]  ;;  %1242 = vmatpush.bf16.msra.mxu2 %v5984_v8  ;;  %v5712_v16 = vor.u32 %v8201_v13, %v5711_v11 }
   0x7   :  { %v5840_v17 = vor.u32 %v8233_v15, %v5839_v14  ;;  %v5967_v18 = vld [vmem:[%s13271_s2 + $0x2c0] sm:$0xf]  ;;  %v8265_v19 = vld [vmem:[%s13271_s2 + $0x2cc] sm:$0xf0]  ;;  %1255 = vmatpush.bf16.msra.mxu3 %v6112_v12 }
   0x8   :  { %v6095_v20 = vld [vmem:[%s13271_s2 + $0x3c0] sm:$0xf]  ;;  %v5968_v21 = vor.u32 %v8265_v19, %v5967_v18  ;;  %v8297_v22 = vld [vmem:[%s13271_s2 + $0x3cc] sm:$0xf0]  ;;  %1217 = vmatpush.bf16.msra.mxu0 %v5712_v16 }
   0x9   :  { %v5695_v23 = vld [vmem:[%s13271_s2 + $0xa0] sm:$0xf]  ;;  %v8197_v24 = vld [vmem:[%s13271_s2 + $0xac] sm:$0xf0]  ;;  %v6096_v25 = vor.u32 %v8297_v22, %v6095_v20  ;;  %1230 = vmatpush.bf16.msra.mxu1 %v5840_v17 }
   0xa   :  { %v5823_v26 = vld [vmem:[%s13271_s2 + $0x1a0] sm:$0xf]  ;;  %v8229_v27 = vld [vmem:[%s13271_s2 + $0x1ac] sm:$0xf0]  ;;  %v5696_v29 = vor.u32 %v8197_v24, %v5695_v23  ;;  %1243 = vmatpush.bf16.msra.mxu2 %v5968_v21 }
   0xb   :  { %v5951_v28 = vld [vmem:[%s13271_s2 + $0x2a0] sm:$0xf]  ;;  %v8261_v30 = vld [vmem:[%s13271_s2 + $0x2ac] sm:$0xf0]  ;;  %v5824_v33 = vor.u32 %v8229_v27, %v5823_v26  ;;  %1256 = vmatpush.bf16.msra.mxu3 %v6096_v25 }
   0xc   :  { %v6079_v31 = vld [vmem:[%s13271_s2 + $0x3a0] sm:$0xf]  ;;  %v8293_v32 = vld [vmem:[%s13271_s2 + $0x3ac] sm:$0xf0]  ;;  %v5952_v34 = vor.u32 %v8261_v30, %v5951_v28  ;;  %1218 = vmatpush.bf16.msra.mxu0 %v5696_v29 }
   0xd   :  { %v5679_v35 = vld [vmem:[%s13271_s2 + $0x80] sm:$0xf]  ;;  %v8193_v36 = vld [vmem:[%s13271_s2 + $0x8c] sm:$0xf0]  ;;  %v6080_v38 = vor.u32 %v8293_v32, %v6079_v31  ;;  %1231 = vmatpush.bf16.msra.mxu1 %v5824_v33  ;;  %v8203_v33 = vld [vmem:[%s13271_s2 + $0xe4] sm:$0xf] }
   0xe   :  { %v5807_v37 = vld [vmem:[%s13271_s2 + $0x180] sm:$0xf]  ;;  %v8225_v39 = vld [vmem:[%s13271_s2 + $0x18c] sm:$0xf0]  ;;  %v5680_v44 = vor.u32 %v8193_v36, %v5679_v35  ;;  %1244 = vmatpush.bf16.msra.mxu2 %v5952_v34  ;;  %v5729_v34 = vld [vmem:[%s13271_s2 + $0xf0] sm:$0xf0] }
   0xf   :  { %v5935_v40 = vld [vmem:[%s13271_s2 + $0x280] sm:$0xf]  ;;  %v8257_v41 = vld [vmem:[%s13271_s2 + $0x28c] sm:$0xf0]  ;;  %v5808_v45 = vor.u32 %v8225_v39, %v5807_v37  ;;  %1257 = vmatpush.bf16.msra.mxu3 %v6080_v38  ;;  %v8235_v37 = vld [vmem:[%s13271_s2 + $0x1e4] sm:$0xf] }
  0x10   :  { %v6063_v42 = vld [vmem:[%s13271_s2 + $0x380] sm:$0xf]  ;;  %v8289_v43 = vld [vmem:[%s13271_s2 + $0x38c] sm:$0xf0]  ;;  %v5936_v46 = vor.u32 %v8257_v41, %v5935_v40  ;;  %1219 = vmatpush.bf16.msra.mxu0 %v5680_v44  ;;  %v5857_v38 = vld [vmem:[%s13271_s2 + $0x1f0] sm:$0xf0] }
  0x11   :  { %v5663_v47 = vld [vmem:[%s13271_s2 + $0x60] sm:$0xf]  ;;  %v8189_v48 = vld [vmem:[%s13271_s2 + $0x6c] sm:$0xf0]  ;;  %v6064_v50 = vor.u32 %v8289_v43, %v6063_v42  ;;  %1232 = vmatpush.bf16.msra.mxu1 %v5808_v45  ;;  %v5732_v42 = vor.u32 %v8203_v33, %v5729_v34 }
  0x12   :  { %v5791_v49 = vld [vmem:[%s13271_s2 + $0x160] sm:$0xf]  ;;  %v8221_v51 = vld [vmem:[%s13271_s2 + $0x16c] sm:$0xf0]  ;;  %v5664_v56 = vor.u32 %v8189_v48, %v5663_v47  ;;  %1245 = vmatpush.bf16.msra.mxu2 %v5936_v46  ;;  %v5860_v46 = vor.u32 %v8235_v37, %v5857_v38  ;;  %v8199_v48 = vld [vmem:[%s13271_s2 + $0xc4] sm:$0xf] }
  0x13   :  { %v5919_v52 = vld [vmem:[%s13271_s2 + $0x260] sm:$0xf]  ;;  %v8253_v53 = vld [vmem:[%s13271_s2 + $0x26c] sm:$0xf0]  ;;  %v5792_v57 = vor.u32 %v8221_v51, %v5791_v49  ;;  %1258 = vmatpush.bf16.msra.mxu3 %v6064_v50  ;;  %v5713_v49 = vld [vmem:[%s13271_s2 + $0xd0] sm:$0xf0] }
  0x14   :  { %v6047_v54 = vld [vmem:[%s13271_s2 + $0x360] sm:$0xf]  ;;  %v8285_v55 = vld [vmem:[%s13271_s2 + $0x36c] sm:$0xf0]  ;;  %v5920_v58 = vor.u32 %v8253_v53, %v5919_v52  ;;  %1220 = vmatpush.bf16.msra.mxu0 %v5664_v56  ;;  %v8231_v50 = vld [vmem:[%s13271_s2 + $0x1c4] sm:$0xf]  ;;  %v5716_v56 = vor.u32 %v8199_v48, %v5713_v49 }
  0x15   :  { %v5647_v59 = vld [vmem:[%s13271_s2 + $0x40] sm:$0xf]  ;;  %v8185_v60 = vld [vmem:[%s13271_s2 + $0x4c] sm:$0xf0]  ;;  %v6048_v62 = vor.u32 %v8285_v55, %v6047_v54  ;;  %1233 = vmatpush.bf16.msra.mxu1 %v5792_v57  ;;  %v5841_v51 = vld [vmem:[%s13271_s2 + $0x1d0] sm:$0xf0] }
  0x16   :  { %v5775_v61 = vld [vmem:[%s13271_s2 + $0x140] sm:$0xf]  ;;  %v8217_v63 = vld [vmem:[%s13271_s2 + $0x14c] sm:$0xf0]  ;;  %v5648_v4 = vor.u32 %v8185_v60, %v5647_v59  ;;  %1246 = vmatpush.bf16.msra.mxu2 %v5920_v58  ;;  %v5844_v60 = vor.u32 %v8231_v50, %v5841_v51 }
  0x17   :  { %v5903_v0 = vld [vmem:[%s13271_s2 + $0x240] sm:$0xf]  ;;  %v8249_v1 = vld [vmem:[%s13271_s2 + $0x24c] sm:$0xf0]  ;;  %v5776_v5 = vor.u32 %v8217_v63, %v5775_v61  ;;  %1259 = vmatpush.bf16.msra.mxu3 %v6048_v62  ;;  %v8195_v61 = vld [vmem:[%s13271_s2 + $0xa4] sm:$0xf] }
  0x18   :  { %v6031_v2 = vld [vmem:[%s13271_s2 + $0x340] sm:$0xf]  ;;  %v8281_v3 = vld [vmem:[%s13271_s2 + $0x34c] sm:$0xf0]  ;;  %v5904_v6 = vor.u32 %v8249_v1, %v5903_v0  ;;  %1221 = vmatpush.bf16.msra.mxu0 %v5648_v4  ;;  %v5697_v62 = vld [vmem:[%s13271_s2 + $0xb0] sm:$0xf0] }
  0x19   :  { %v5631_v7 = vld [vmem:[%s13271_s2 + $0x20] sm:$0xf]  ;;  %v8181_v8 = vld [vmem:[%s13271_s2 + $0x2c] sm:$0xf0]  ;;  %v6032_v10 = vor.u32 %v8281_v3, %v6031_v2  ;;  %1234 = vmatpush.bf16.msra.mxu1 %v5776_v5  ;;  %v8227_v63 = vld [vmem:[%s13271_s2 + $0x1a4] sm:$0xf] }
  0x1a   :  { %v5759_v9 = vld [vmem:[%s13271_s2 + $0x120] sm:$0xf]  ;;  %v8213_v11 = vld [vmem:[%s13271_s2 + $0x12c] sm:$0xf0]  ;;  %v5632_v16 = vor.u32 %v8181_v8, %v5631_v7  ;;  %1247 = vmatpush.bf16.msra.mxu2 %v5904_v6  ;;  %v5825_v0 = vld [vmem:[%s13271_s2 + $0x1b0] sm:$0xf0]  ;;  %v5700_v8 = vor.u32 %v8195_v61, %v5697_v62 }
  0x1b   :  { %v5887_v12 = vld [vmem:[%s13271_s2 + $0x220] sm:$0xf]  ;;  %v8245_v13 = vld [vmem:[%s13271_s2 + $0x22c] sm:$0xf0]  ;;  %v5760_v19 = vor.u32 %v8213_v11, %v5759_v9  ;;  %1260 = vmatpush.bf16.msra.mxu3 %v6032_v10  ;;  %v8191_v6 = vld [vmem:[%s13271_s2 + $0x84] sm:$0xf] }
  0x1c   :  { %v6015_v14 = vld [vmem:[%s13271_s2 + $0x320] sm:$0xf]  ;;  %v8277_v15 = vld [vmem:[%s13271_s2 + $0x32c] sm:$0xf0]  ;;  %v5888_v20 = vor.u32 %v8245_v13, %v5887_v12  ;;  %1222 = vmatpush.bf16.msra.mxu0 %v5632_v16  ;;  %v5681_v9 = vld [vmem:[%s13271_s2 + $0x90] sm:$0xf0]  ;;  %v5828_v12 = vor.u32 %v8227_v63, %v5825_v0 }
  0x1d   :  { %v5615_v17 = vld [vmem:[%s13271_s2] sm:$0xf]  ;;  %v8177_v18 = vld [vmem:[%s13271_s2 + $0xc] sm:$0xf0]  ;;  %v6016_v24 = vor.u32 %v8277_v15, %v6015_v14  ;;  %1235 = vmatpush.bf16.msra.mxu1 %v5760_v19  ;;  %v36_v11 = vld [vmem:[%s13272_s0 + $0x8] sm:$0xff] }
  0x1e   :  { %v5743_v21 = vld [vmem:[%s13271_s2 + $0x100] sm:$0xf]  ;;  %v8209_v22 = vld [vmem:[%s13271_s2 + $0x10c] sm:$0xf0]  ;;  %v5616_v31 = vor.u32 %v8177_v18, %v5615_v17  ;;  %1248 = vmatpush.bf16.msra.mxu2 %v5888_v20  ;;  %v8223_v13 = vld [vmem:[%s13271_s2 + $0x184] sm:$0xf] }
  0x1f   :  { %v5871_v23 = vld [vmem:[%s13271_s2 + $0x200] sm:$0xf]  ;;  %v8241_v25 = vld [vmem:[%s13271_s2 + $0x20c] sm:$0xf0]  ;;  %v5744_v35 = vor.u32 %v8209_v22, %v5743_v21  ;;  %1261 = vmatpush.bf16.msra.mxu3 %v6016_v24  ;;  %v5809_v14 = vld [vmem:[%s13271_s2 + $0x190] sm:$0xf0]  ;;  %v5684_v22 = vor.u32 %v8191_v6, %v5681_v9 }
  0x20   :  { %v5999_v26 = vld [vmem:[%s13271_s2 + $0x300] sm:$0xf]  ;;  %v8273_v27 = vld [vmem:[%s13271_s2 + $0x30c] sm:$0xf0]  ;;  %v5872_v36 = vor.u32 %v8241_v25, %v5871_v23  ;;  %1223 = vmatpush.bf16.msra.mxu0 %v5616_v31  ;;  %43 = vst [vmem:[#allocation1 + $0x10] ss:$2 sm:$0xff] %v36_v11 }
  0x21   :  { %v6239_v28 = vld [vmem:[%s13271_s2 + $0x4e0] sm:$0xf]  ;;  %v8333_v29 = vld [vmem:[%s13271_s2 + $0x4ec] sm:$0xf0]  ;;  %v6000_v39 = vor.u32 %v8273_v27, %v5999_v26  ;;  %1236 = vmatpush.bf16.msra.mxu1 %v5744_v35  ;;  %v5812_v26 = vor.u32 %v8223_v13, %v5809_v14  ;;  %v8187_v27 = vld [vmem:[%s13271_s2 + $0x64] sm:$0xf] }
  0x22   :  { %v6367_v30 = vld [vmem:[%s13271_s2 + $0x5e0] sm:$0xf]  ;;  %v8365_v32 = vld [vmem:[%s13271_s2 + $0x5ec] sm:$0xf0]  ;;  %v6240_v40 = vor.u32 %v8333_v29, %v6239_v28  ;;  %1249 = vmatpush.bf16.msra.mxu2 %v5872_v36  ;;  %v5665_v28 = vld [vmem:[%s13271_s2 + $0x70] sm:$0xf0] }
  0x23   :  { %v6368_v41 = vor.u32 %v8365_v32, %v6367_v30  ;;  %v6223_v43 = vld [vmem:[%s13271_s2 + $0x4c0] sm:$0xf]  ;;  %v8329_v44 = vld [vmem:[%s13271_s2 + $0x4cc] sm:$0xf0]  ;;  %1262 = vmatpush.bf16.msra.mxu3 %v6000_v39  ;;  %v8219_v29 = vld [vmem:[%s13271_s2 + $0x164] sm:$0xf]  ;;  %v5668_v38 = vor.u32 %v8187_v27, %v5665_v28 }
  0x24   :  { %v6351_v45 = vld [vmem:[%s13271_s2 + $0x5c0] sm:$0xf]  ;;  %v8361_v47 = vld [vmem:[%s13271_s2 + $0x5cc] sm:$0xf0]  ;;  %1268 = vmatpush.bf16.msrb.mxu0 %v6240_v40  ;;  %v6224_v53 = vor.u32 %v8329_v44, %v6223_v43  ;;  %v5793_v30 = vld [vmem:[%s13271_s2 + $0x170] sm:$0xf0] }
  0x25   :  { %v35_v52 = vld [vmem:[%s13272_s0] sm:$0xff]  ;;  %1281 = vmatpush.bf16.msrb.mxu1 %v6368_v41  ;;  %v6352_v55 = vor.u32 %v8361_v47, %v6351_v45  ;;  %v8325_v57 = vld [vmem:[%s13271_s2 + $0x4ac] sm:$0xf0]  ;;  %v2655_v32 = vld [vmem:[%s13273_s1 + $0x8] sm:$0xff]  ;;  %v5796_v41 = vor.u32 %v8219_v29, %v5793_v30 }
  0x26   :  { %v6207_v54 = vld [vmem:[%s13271_s2 + $0x4a0] sm:$0xf]  ;;  %41 = vst [vmem:[#allocation1] ss:$2 sm:$0xff] %v35_v52  ;;  %1294 = vmatpush.bf16.msrb.mxu2 %v5732_v42  ;;  %v8357_v59 = vld [vmem:[%s13271_s2 + $0x5ac] sm:$0xf0] }
  0x27   :  { %v6335_v58 = vld [vmem:[%s13271_s2 + $0x5a0] sm:$0xf]  ;;  %1307 = vmatpush.bf16.msrb.mxu3 %v5860_v46  ;;  %v8321_v2 = vld [vmem:[%s13271_s2 + $0x48c] sm:$0xf0]  ;;  %v6208_v3 = vor.u32 %v8325_v57, %v6207_v54  ;;  %v8183_v42 = vld [vmem:[%s13271_s2 + $0x44] sm:$0xf] }
  0x28   :  { %v6191_v1 = vld [vmem:[%s13271_s2 + $0x480] sm:$0xf]  ;;  %1269 = vmatpush.bf16.msrb.mxu0 %v6224_v53  ;;  %v8353_v5 = vld [vmem:[%s13271_s2 + $0x58c] sm:$0xf0]  ;;  %v6336_v7 = vor.u32 %v8357_v59, %v6335_v58  ;;  %v5649_v43 = vld [vmem:[%s13271_s2 + $0x50] sm:$0xf0] }
  0x29   :  { %v6319_v4 = vld [vmem:[%s13271_s2 + $0x580] sm:$0xf]  ;;  %1282 = vmatpush.bf16.msrb.mxu1 %v6352_v55  ;;  %v6192_v17 = vor.u32 %v8321_v2, %v6191_v1  ;;  %v8317_v23 = vld [vmem:[%s13271_s2 + $0x46c] sm:$0xf0]  ;;  %v8215_v45 = vld [vmem:[%s13271_s2 + $0x144] sm:$0xf]  ;;  %v5652_v53 = vor.u32 %v8183_v42, %v5649_v43 }
  0x2a   :  { %1295 = vmatpush.bf16.msrb.mxu2 %v5716_v56  ;;  %v2654_v10 = vld [vmem:[%s13273_s1] sm:$0xff]  ;;  %v6320_v21 = vor.u32 %v8353_v5, %v6319_v4  ;;  %v8349_v25 = vld [vmem:[%s13271_s2 + $0x56c] sm:$0xf0]  ;;  %v49_v40 = vld.sshfl [vmem:[#allocation1 + $0x18] sm:$0xff pattern:$0x75316420] }
  0x2b   :  { %1308 = vmatpush.bf16.msrb.mxu3 %v5844_v60  ;;  %v6175_v19 = vld [vmem:[%s13271_s2 + $0x460] sm:$0xf]  ;;  %v8313_v34 = vld [vmem:[%s13271_s2 + $0x44c] sm:$0xf0]  ;;  %v5777_v46 = vld [vmem:[%s13271_s2 + $0x150] sm:$0xf0]  ;;  %v9272_v47 = vpack.c.bf16 %v49_v40, %v49_v40 }
  0x2c   :  { %1270 = vmatpush.bf16.msrb.mxu0 %v6208_v3  ;;  %v6303_v24 = vld [vmem:[%s13271_s2 + $0x560] sm:$0xf]  ;;  %v6176_v33 = vor.u32 %v8317_v23, %v6175_v19  ;;  %v8345_v36 = vld [vmem:[%s13271_s2 + $0x54c] sm:$0xf0]  ;;  %v8179_v55 = vld [vmem:[%s13271_s2 + $0x24] sm:$0xf]  ;;  %v5780_v57 = vor.u32 %v8215_v45, %v5777_v46 }
  0x2d   :  { %v46_v15 = vld.sshfl [vmem:[#allocation1] sm:$0xff pattern:$0x75316420]  ;;  %v47_v16 = vld.sshfl [vmem:[#allocation1 + $0x8] sm:$0xff pattern:$0x75316420]  ;;  %1283 = vmatpush.bf16.msrb.mxu1 %v6336_v7  ;;  %v6304_v37 = vor.u32 %v8349_v25, %v6303_v24  ;;  %1263 = vmatmul.bf16.vlgmr.msra.gmra.mxu3 %v9272_v47 }
  0x2e   :  { %v9213_v18 = vpack.c.bf16 %v46_v15, %v46_v15  ;;  %v9218_v20 = vpack.c.bf16 %v47_v16, %v47_v16  ;;  %2660 = vst [vmem:[#allocation1] ss:$2 sm:$0xff] %v2654_v10  ;;  %1296 = vmatpush.bf16.msrb.mxu2 %v5700_v8  ;;  %v6159_v31 = vld [vmem:[%s13271_s2 + $0x440] sm:$0xf]  ;;  %v8309_v50 = vld [vmem:[%s13271_s2 + $0x42c] sm:$0xf0] }
  0x2f   :  { %1309 = vmatpush.bf16.msrb.mxu3 %v5828_v12  ;;  %v6287_v35 = vld [vmem:[%s13271_s2 + $0x540] sm:$0xf]  ;;  %v48_v39 = vld.sshfl [vmem:[#allocation1 + $0x10] sm:$0xff pattern:$0x75316420]  ;;  %v6160_v48 = vor.u32 %v8313_v34, %v6159_v31 }
  0x30   :  { %1224 = vmatmul.bf16.vlgmr.msra.gmra.mxu0 %v9213_v18  ;;  %1237 = vmatmul.bf16.vlgmr.msra.gmra.mxu1 %v9218_v20  ;;  %v9264_v44 = vpack.c.bf16 %v48_v39, %v48_v39  ;;  %2662 = vst [vmem:[#allocation1 + $0x10] ss:$2 sm:$0xff] %v2655_v32  ;;  %v6143_v49 = vld [vmem:[%s13271_s2 + $0x420] sm:$0xf]  ;;  %v6288_v52 = vor.u32 %v8345_v36, %v6287_v35  ;;  %v8341_v54 = vld [vmem:[%s13271_s2 + $0x52c] sm:$0xf0] }
  0x31   :  { %1271 = vmatpush.bf16.msrb.mxu0 %v6192_v17  ;;  %1284 = vmatpush.bf16.msrb.mxu1 %v6320_v21  ;;  %v6271_v51 = vld [vmem:[%s13271_s2 + $0x520] sm:$0xf]  ;;  %v37_v56 = vld [vmem:[%s13272_s0 + $0x10] sm:$0xff]  ;;  %v8211_v59 = vld [vmem:[%s13271_s2 + $0x124] sm:$0xf]  ;;  %v6144_v63 = vor.u32 %v8309_v50, %v6143_v49 }
  0x32   :  { %1297 = vmatpush.bf16.msrb.mxu2 %v5684_v22  ;;  %v5633_v58 = vld [vmem:[%s13271_s2 + $0x30] sm:$0xf0]  ;;  %45 = vst [vmem:[#allocation1 + $0x20] ss:$2 sm:$0xff] %v37_v56  ;;  %v6127_v61 = vld [vmem:[%s13271_s2 + $0x400] sm:$0xf]  ;;  %v6272_v3 = vor.u32 %v8341_v54, %v6271_v51 }
  0x33   :  { %1310 = vmatpush.bf16.msrb.mxu3 %v5812_v26  ;;  %1250 = vmatmul.bf16.vlgmr.msra.gmra.mxu2 %v9264_v44  ;;  %v5761_v60 = vld [vmem:[%s13271_s2 + $0x130] sm:$0xf0]  ;;  %v8305_v62 = vld [vmem:[%s13271_s2 + $0x40c] sm:$0xf0]  ;;  %v6255_v0 = vld [vmem:[%s13271_s2 + $0x500] sm:$0xf]  ;;  %v5636_v4 = vor.u32 %v8179_v55, %v5633_v58 }
  0x34   :  { %v8337_v1 = vld [vmem:[%s13271_s2 + $0x50c] sm:$0xf0]  ;;  %v8175_v2 = vld [vmem:[%s13271_s2 + $0x4] sm:$0xf]  ;;  %v5617_v5 = vld [vmem:[%s13271_s2 + $0x10] sm:$0xf0]  ;;  %v5764_v8 = vor.u32 %v8211_v59, %v5761_v60  ;;  %v6128_v15 = vor.u32 %v8305_v62, %v6127_v61 }
  0x35   :  { %1272 = vmatpush.bf16.msrb.mxu0 %v6176_v33  ;;  %1285 = vmatpush.bf16.msrb.mxu1 %v6304_v37  ;;  %v8207_v6 = vld [vmem:[%s13271_s2 + $0x104] sm:$0xf]  ;;  %v5745_v7 = vld [vmem:[%s13271_s2 + $0x110] sm:$0xf0]  ;;  %v6256_v21 = vor.u32 %v8337_v1, %v6255_v0  ;;  %v5620_v22 = vor.u32 %v8175_v2, %v5617_v5 }
  0x36   :  { %1298 = vmatpush.bf16.msrb.mxu2 %v5668_v38  ;;  %v8267_v9 = vld [vmem:[%s13271_s2 + $0x2e4] sm:$0xf]  ;;  %v5985_v10 = vld [vmem:[%s13271_s2 + $0x2f0] sm:$0xf0]  ;;  %v5748_v25 = vor.u32 %v8207_v6, %v5745_v7 }
  0x37   :  { %1311 = vmatpush.bf16.msrb.mxu3 %v5796_v41  ;;  %v8299_v11 = vld [vmem:[%s13271_s2 + $0x3e4] sm:$0xf]  ;;  %v6113_v12 = vld [vmem:[%s13271_s2 + $0x3f0] sm:$0xf0]  ;;  %v5988_v26 = vor.u32 %v8267_v9, %v5985_v10 }
  0x38   :  { %v8331_v13 = vld [vmem:[%s13271_s2 + $0x4e4] sm:$0xf]  ;;  %v2656_v14 = vld [vmem:[%s13273_s1 + $0x10] sm:$0xff]  ;;  %v6116_v27 = vor.u32 %v8299_v11, %v6113_v12 }
  0x39   :  { %1273 = vmatpush.bf16.msrb.mxu0 %v6160_v48  ;;  %1286 = vmatpush.bf16.msrb.mxu1 %v6288_v52  ;;  %v6241_v16 = vld [vmem:[%s13271_s2 + $0x4f0] sm:$0xf0]  ;;  %v8363_v17 = vld [vmem:[%s13271_s2 + $0x5e4] sm:$0xf] }
  0x3a   :  { %1299 = vmatpush.bf16.msrb.mxu2 %v5652_v53  ;;  %v6369_v19 = vld [vmem:[%s13271_s2 + $0x5f0] sm:$0xf0]  ;;  %v50_v23 = vld.sshfl [vmem:[#allocation1 + $0x20] sm:$0xff pattern:$0x75316420]  ;;  %v6244_v28 = vor.u32 %v8331_v13, %v6241_v16 }
  0x3b   :  { %1312 = vmatpush.bf16.msrb.mxu3 %v5780_v57  ;;  %v51_v24 = vld.sshfl [vmem:[#allocation1 + $0x28] sm:$0xff pattern:$0x75316420]  ;;  %v8263_v29 = vld [vmem:[%s13271_s2 + $0x2c4] sm:$0xf]  ;;  %v6372_v32 = vor.u32 %v8363_v17, %v6369_v19  ;;  %v9363_v33 = vpack.c.bf16 %v50_v23, %v50_v23 }
  0x3c   :  { %2664 = vst [vmem:[#allocation1 + $0x20] ss:$2 sm:$0xff] %v2656_v14  ;;  %v5969_v30 = vld [vmem:[%s13271_s2 + $0x2d0] sm:$0xf0]  ;;  %v8295_v31 = vld [vmem:[%s13271_s2 + $0x3c4] sm:$0xf]  ;;  %v9374_v37 = vpack.c.bf16 %v51_v24, %v51_v24 }
  0x3d   :  { %1274 = vmatpush.bf16.msrb.mxu0 %v6144_v63  ;;  %1287 = vmatpush.bf16.msrb.mxu1 %v6272_v3  ;;  %v6097_v34 = vld [vmem:[%s13271_s2 + $0x3d0] sm:$0xf0]  ;;  %v8327_v35 = vld [vmem:[%s13271_s2 + $0x4c4] sm:$0xf]  ;;  %v5972_v40 = vor.u32 %v8263_v29, %v5969_v30 }
  0x3e   :  { %1300 = vmatpush.bf16.msrb.mxu2 %v5636_v4  ;;  %v6225_v36 = vld [vmem:[%s13271_s2 + $0x4d0] sm:$0xf0]  ;;  %v8359_v38 = vld [vmem:[%s13271_s2 + $0x5c4] sm:$0xf]  ;;  %v6100_v41 = vor.u32 %v8295_v31, %v6097_v34 }
  0x3f   :  { %1313 = vmatpush.bf16.msrb.mxu3 %v5764_v8  ;;  %v6353_v39 = vld [vmem:[%s13271_s2 + $0x5d0] sm:$0xf0]  ;;  %v6228_v42 = vor.u32 %v8327_v35, %v6225_v36  ;;  %v8259_v43 = vld [vmem:[%s13271_s2 + $0x2a4] sm:$0xf] }
  0x40   :  { %v5953_v45 = vld [vmem:[%s13271_s2 + $0x2b0] sm:$0xf0]  ;;  %v8291_v46 = vld [vmem:[%s13271_s2 + $0x3a4] sm:$0xf]  ;;  %v6356_v48 = vor.u32 %v8359_v38, %v6353_v39 }
  0x41   :  { %1275 = vmatpush.bf16.msrb.mxu0 %v6128_v15  ;;  %1288 = vmatpush.bf16.msrb.mxu1 %v6256_v21  ;;  %v6081_v49 = vld [vmem:[%s13271_s2 + $0x3b0] sm:$0xf0]  ;;  %v8323_v50 = vld [vmem:[%s13271_s2 + $0x4a4] sm:$0xf]  ;;  %v5956_v54 = vor.u32 %v8259_v43, %v5953_v45 }
  0x42   :  { %1301 = vmatpush.bf16.msrb.mxu2 %v5620_v22  ;;  %v6209_v51 = vld [vmem:[%s13271_s2 + $0x4b0] sm:$0xf0]  ;;  %v8355_v52 = vld [vmem:[%s13271_s2 + $0x5a4] sm:$0xf]  ;;  %v6084_v55 = vor.u32 %v8291_v46, %v6081_v49 }
  0x43   :  { %1314 = vmatpush.bf16.msrb.mxu3 %v5748_v25  ;;  %v6337_v53 = vld [vmem:[%s13271_s2 + $0x5b0] sm:$0xf0]  ;;  %v6212_v56 = vor.u32 %v8323_v50, %v6209_v51  ;;  %v8255_v57 = vld [vmem:[%s13271_s2 + $0x284] sm:$0xf] }
  0x44   :  { %1276 = vmatmul.bf16.vlgmr.msrb.gmra.mxu0 %v9363_v33  ;;  %1289 = vmatmul.bf16.vlgmr.msrb.gmra.mxu1 %v9374_v37  ;;  %v5937_v58 = vld [vmem:[%s13271_s2 + $0x290] sm:$0xf0]  ;;  %v8287_v59 = vld [vmem:[%s13271_s2 + $0x384] sm:$0xf]  ;;  %v6340_v60 = vor.u32 %v8355_v52, %v6337_v53 }
  0x45   :  { %1320 = vmatpush.bf16.msra.mxu0 %v5988_v26  ;;  %1333 = vmatpush.bf16.msra.mxu1 %v6116_v27  ;;  %v6065_v61 = vld [vmem:[%s13271_s2 + $0x390] sm:$0xf0]  ;;  %v8319_v62 = vld [vmem:[%s13271_s2 + $0x484] sm:$0xf]  ;;  %v5940_v2 = vor.u32 %v8255_v57, %v5937_v58  ;;  %v8206_v57 = vld [vmem:[%s13271_s2 + $0xf4] sm:$0xf0] }
  0x46   :  { %1346 = vmatpush.bf16.msra.mxu2 %v6244_v28  ;;  %v6193_v63 = vld [vmem:[%s13271_s2 + $0x490] sm:$0xf0]  ;;  %v8351_v0 = vld [vmem:[%s13271_s2 + $0x584] sm:$0xf]  ;;  %1315 = vmatmul.bf16.vlgmr.msrb.gmra.mxu3 %v9218_v20  ;;  %v6068_v3 = vor.u32 %v8287_v59, %v6065_v61  ;;  %v5863_v58 = vld [vmem:[%s13271_s2 + $0x1e8] sm:$0xf] }
  0x47   :  { %1359 = vmatpush.bf16.msra.mxu3 %v6372_v32  ;;  %1302 = vmatmul.bf16.vlgmr.msrb.gmra.mxu2 %v9213_v18  ;;  %v6321_v1 = vld [vmem:[%s13271_s2 + $0x590] sm:$0xf0]  ;;  %v6196_v4 = vor.u32 %v8319_v62, %v6193_v63  ;;  %v8251_v5 = vld [vmem:[%s13271_s2 + $0x264] sm:$0xf]  ;;  %v5991_v61 = vld [vmem:[%s13271_s2 + $0x2e8] sm:$0xf] }
  0x48   :  { %v5921_v6 = vld [vmem:[%s13271_s2 + $0x270] sm:$0xf0]  ;;  %v8283_v7 = vld [vmem:[%s13271_s2 + $0x364] sm:$0xf]  ;;  %v6324_v8 = vor.u32 %v8351_v0, %v6321_v1  ;;  %v8270_v62 = vld [vmem:[%s13271_s2 + $0x2f4] sm:$0xf0] }
  0x49   :  { %1321 = vmatpush.bf16.msra.mxu0 %v5972_v40  ;;  %1334 = vmatpush.bf16.msra.mxu1 %v6100_v41  ;;  %v6049_v9 = vld [vmem:[%s13271_s2 + $0x370] sm:$0xf0]  ;;  %v8315_v10 = vld [vmem:[%s13271_s2 + $0x464] sm:$0xf]  ;;  %v5924_v14 = vor.u32 %v8251_v5, %v5921_v6  ;;  %v6119_v1 = vld [vmem:[%s13271_s2 + $0x3e8] sm:$0xf]  ;;  %v5992_v6 = vor.u32 %v8270_v62, %v5991_v61 }
  0x4a   :  { %1347 = vmatpush.bf16.msra.mxu2 %v6228_v42  ;;  %v6177_v11 = vld [vmem:[%s13271_s2 + $0x470] sm:$0xf0]  ;;  %v8347_v12 = vld [vmem:[%s13271_s2 + $0x564] sm:$0xf]  ;;  %v6052_v15 = vor.u32 %v8283_v7, %v6049_v9  ;;  %v5719_v7 = vld [vmem:[%s13271_s2 + $0xc8] sm:$0xf] }
  0x4b   :  { %1360 = vmatpush.bf16.msra.mxu3 %v6356_v48  ;;  %v6305_v13 = vld [vmem:[%s13271_s2 + $0x570] sm:$0xf0]  ;;  %v6180_v16 = vor.u32 %v8315_v10, %v6177_v11  ;;  %v8247_v17 = vld [vmem:[%s13271_s2 + $0x244] sm:$0xf]  ;;  %v5847_v9 = vld [vmem:[%s13271_s2 + $0x1c8] sm:$0xf] }
  0x4c   :  { %v5905_v19 = vld [vmem:[%s13271_s2 + $0x250] sm:$0xf0]  ;;  %v8279_v21 = vld [vmem:[%s13271_s2 + $0x344] sm:$0xf]  ;;  %v6308_v22 = vor.u32 %v8347_v12, %v6305_v13  ;;  %v8234_v11 = vld [vmem:[%s13271_s2 + $0x1d4] sm:$0xf0] }
  0x4d   :  { %1322 = vmatpush.bf16.msra.mxu0 %v5956_v54  ;;  %1335 = vmatpush.bf16.msra.mxu1 %v6084_v55  ;;  %v6033_v23 = vld [vmem:[%s13271_s2 + $0x350] sm:$0xf0]  ;;  %v8311_v24 = vld [vmem:[%s13271_s2 + $0x444] sm:$0xf]  ;;  %v5908_v28 = vor.u32 %v8247_v17, %v5905_v19  ;;  %v5975_v12 = vld [vmem:[%s13271_s2 + $0x2c8] sm:$0xf]  ;;  %v5848_v17 = vor.u32 %v8234_v11, %v5847_v9 }
  0x4e   :  { %1348 = vmatpush.bf16.msra.mxu2 %v6212_v56  ;;  %v6161_v25 = vld [vmem:[%s13271_s2 + $0x450] sm:$0xf0]  ;;  %v8343_v26 = vld [vmem:[%s13271_s2 + $0x544] sm:$0xf]  ;;  %v6036_v29 = vor.u32 %v8279_v21, %v6033_v23  ;;  %v5735_v56 = vld [vmem:[%s13271_s2 + $0xe8] sm:$0xf] }
  0x4f   :  { %1361 = vmatpush.bf16.msra.mxu3 %v6340_v60  ;;  %v6289_v27 = vld [vmem:[%s13271_s2 + $0x550] sm:$0xf0]  ;;  %v6164_v30 = vor.u32 %v8311_v24, %v6161_v25  ;;  %v8243_v31 = vld [vmem:[%s13271_s2 + $0x224] sm:$0xf]  ;;  %v8238_v60 = vld [vmem:[%s13271_s2 + $0x1f4] sm:$0xf0] }
  0x50   :  { %v5889_v32 = vld [vmem:[%s13271_s2 + $0x230] sm:$0xf0]  ;;  %v8275_v34 = vld [vmem:[%s13271_s2 + $0x324] sm:$0xf]  ;;  %v6292_v35 = vor.u32 %v8343_v26, %v6289_v27  ;;  %v5864_v5 = vor.u32 %v8238_v60, %v5863_v58  ;;  %v8266_v13 = vld [vmem:[%s13271_s2 + $0x2d4] sm:$0xf0] }
  0x51   :  { %1323 = vmatpush.bf16.msra.mxu0 %v5940_v2  ;;  %1336 = vmatpush.bf16.msra.mxu1 %v6068_v3  ;;  %v6017_v36 = vld [vmem:[%s13271_s2 + $0x330] sm:$0xf0]  ;;  %v8307_v38 = vld [vmem:[%s13271_s2 + $0x424] sm:$0xf]  ;;  %v5892_v42 = vor.u32 %v8243_v31, %v5889_v32  ;;  %v8302_v2 = vld [vmem:[%s13271_s2 + $0x3f4] sm:$0xf0]  ;;  %v5976_v19 = vor.u32 %v8266_v13, %v5975_v12 }
  0x52   :  { %1349 = vmatpush.bf16.msra.mxu2 %v6196_v4  ;;  %v6145_v39 = vld [vmem:[%s13271_s2 + $0x430] sm:$0xf0]  ;;  %v8339_v40 = vld [vmem:[%s13271_s2 + $0x524] sm:$0xf]  ;;  %v6020_v46 = vor.u32 %v8275_v34, %v6017_v36  ;;  %v5736_v4 = vor.u32 %v8206_v57, %v5735_v56  ;;  %v6120_v10 = vor.u32 %v8302_v2, %v6119_v1  ;;  %v5703_v21 = vld [vmem:[%s13271_s2 + $0xa8] sm:$0xf] }
  0x53   :  { %1362 = vmatpush.bf16.msra.mxu3 %v6324_v8  ;;  %v6273_v41 = vld [vmem:[%s13271_s2 + $0x530] sm:$0xf0]  ;;  %v8239_v43 = vld [vmem:[%s13271_s2 + $0x204] sm:$0xf]  ;;  %v6148_v48 = vor.u32 %v8307_v38, %v6145_v39  ;;  %v8202_v8 = vld [vmem:[%s13271_s2 + $0xd4] sm:$0xf0] }
  0x54   :  { %v5873_v45 = vld [vmem:[%s13271_s2 + $0x210] sm:$0xf0]  ;;  %v8271_v49 = vld [vmem:[%s13271_s2 + $0x304] sm:$0xf]  ;;  %v6276_v52 = vor.u32 %v8339_v40, %v6273_v41  ;;  %v5831_v23 = vld [vmem:[%s13271_s2 + $0x1a8] sm:$0xf] }
  0x55   :  { %1324 = vmatpush.bf16.msra.mxu0 %v5924_v14  ;;  %1337 = vmatpush.bf16.msra.mxu1 %v6052_v15  ;;  %v6001_v50 = vld [vmem:[%s13271_s2 + $0x310] sm:$0xf0]  ;;  %v8303_v51 = vld [vmem:[%s13271_s2 + $0x404] sm:$0xf]  ;;  %v5876_v59 = vor.u32 %v8239_v43, %v5873_v45  ;;  %v6103_v14 = vld [vmem:[%s13271_s2 + $0x3c8] sm:$0xf] }
  0x56   :  { %1350 = vmatpush.bf16.msra.mxu2 %v6180_v16  ;;  %v6129_v53 = vld [vmem:[%s13271_s2 + $0x410] sm:$0xf0]  ;;  %v8335_v54 = vld [vmem:[%s13271_s2 + $0x504] sm:$0xf]  ;;  %v6004_v63 = vor.u32 %v8271_v49, %v6001_v50  ;;  %v8298_v15 = vld [vmem:[%s13271_s2 + $0x3d4] sm:$0xf0]  ;;  %v5720_v16 = vor.u32 %v8202_v8, %v5719_v7 }
  0x57   :  { %1363 = vmatpush.bf16.msra.mxu3 %v6308_v22  ;;  %v6257_v55 = vld [vmem:[%s13271_s2 + $0x510] sm:$0xf0]  ;;  %v6132_v0 = vor.u32 %v8303_v51, %v6129_v53  ;;  %v8198_v22 = vld [vmem:[%s13271_s2 + $0xb4] sm:$0xf0]  ;;  %v6104_v24 = vor.u32 %v8298_v15, %v6103_v14  ;;  %v5959_v26 = vld [vmem:[%s13271_s2 + $0x2a8] sm:$0xf] }
  0x58   :  { %v6260_v3 = vor.u32 %v8335_v54, %v6257_v55  ;;  %v8230_v25 = vld [vmem:[%s13271_s2 + $0x1b4] sm:$0xf0]  ;;  %v5687_v34 = vld [vmem:[%s13271_s2 + $0x88] sm:$0xf] }
  0x59   :  { %1325 = vmatpush.bf16.msra.mxu0 %v5908_v28  ;;  %1338 = vmatpush.bf16.msra.mxu1 %v6036_v29  ;;  %v8262_v27 = vld [vmem:[%s13271_s2 + $0x2b4] sm:$0xf0]  ;;  %v6087_v28 = vld [vmem:[%s13271_s2 + $0x3a8] sm:$0xf]  ;;  %v5832_v31 = vor.u32 %v8230_v25, %v5831_v23 }
  0x5a   :  { %1351 = vmatpush.bf16.msra.mxu2 %v6164_v30  ;;  %v8294_v29 = vld [vmem:[%s13271_s2 + $0x3b4] sm:$0xf0]  ;;  %v5704_v30 = vor.u32 %v8198_v22, %v5703_v21  ;;  %v5960_v32 = vor.u32 %v8262_v27, %v5959_v26  ;;  %v5815_v36 = vld [vmem:[%s13271_s2 + $0x188] sm:$0xf] }
  0x5b   :  { %1364 = vmatpush.bf16.msra.mxu3 %v6292_v35  ;;  %v8194_v35 = vld [vmem:[%s13271_s2 + $0x94] sm:$0xf0]  ;;  %v6088_v38 = vor.u32 %v8294_v29, %v6087_v28  ;;  %v5943_v40 = vld [vmem:[%s13271_s2 + $0x288] sm:$0xf] }
  0x5c   :  { %v8226_v39 = vld [vmem:[%s13271_s2 + $0x194] sm:$0xf0]  ;;  %v5688_v45 = vor.u32 %v8194_v35, %v5687_v34  ;;  %v5671_v49 = vld [vmem:[%s13271_s2 + $0x68] sm:$0xf] }
  0x5d   :  { %1326 = vmatpush.bf16.msra.mxu0 %v5892_v42  ;;  %1339 = vmatpush.bf16.msra.mxu1 %v6020_v46  ;;  %v8258_v41 = vld [vmem:[%s13271_s2 + $0x294] sm:$0xf0]  ;;  %v6071_v42 = vld [vmem:[%s13271_s2 + $0x388] sm:$0xf]  ;;  %v5816_v46 = vor.u32 %v8226_v39, %v5815_v36  ;;  %v8204_v39 = vld [vmem:[%s13271_s2 + $0xec] sm:$0xf] }
  0x5e   :  { %1352 = vmatpush.bf16.msra.mxu2 %v6148_v48  ;;  %v8290_v43 = vld [vmem:[%s13271_s2 + $0x394] sm:$0xf0]  ;;  %v5944_v48 = vor.u32 %v8258_v41, %v5943_v40  ;;  %v5799_v51 = vld [vmem:[%s13271_s2 + $0x168] sm:$0xf]  ;;  %v5737_v40 = vld [vmem:[%s13271_s2 + $0xf8] sm:$0xf0] }
  0x5f   :  { %1365 = vmatpush.bf16.msra.mxu3 %v6276_v52  ;;  %v8190_v50 = vld [vmem:[%s13271_s2 + $0x74] sm:$0xf0]  ;;  %v6072_v52 = vor.u32 %v8290_v43, %v6071_v42  ;;  %v5927_v54 = vld [vmem:[%s13271_s2 + $0x268] sm:$0xf]  ;;  %v8236_v43 = vld [vmem:[%s13271_s2 + $0x1ec] sm:$0xf] }
  0x60   :  { %v8222_v53 = vld [vmem:[%s13271_s2 + $0x174] sm:$0xf0]  ;;  %v6055_v56 = vld [vmem:[%s13271_s2 + $0x368] sm:$0xf]  ;;  %v5672_v58 = vor.u32 %v8190_v50, %v5671_v49  ;;  %v5740_v50 = vor.u32 %v8204_v39, %v5737_v40 }
  0x61   :  { %1327 = vmatpush.bf16.msra.mxu0 %v5876_v59  ;;  %1340 = vmatpush.bf16.msra.mxu1 %v6004_v63  ;;  %v8254_v55 = vld [vmem:[%s13271_s2 + $0x274] sm:$0xf0]  ;;  %v5800_v59 = vor.u32 %v8222_v53, %v5799_v51  ;;  %v5655_v61 = vld [vmem:[%s13271_s2 + $0x48] sm:$0xf] }
  0x62   :  { %1353 = vmatpush.bf16.msra.mxu2 %v6132_v0  ;;  %v8286_v57 = vld [vmem:[%s13271_s2 + $0x374] sm:$0xf0]  ;;  %v5928_v60 = vor.u32 %v8254_v55, %v5927_v54  ;;  %v5783_v63 = vld [vmem:[%s13271_s2 + $0x148] sm:$0xf] }
  0x63   :  { %1366 = vmatpush.bf16.msra.mxu3 %v6260_v3  ;;  %v8186_v62 = vld [vmem:[%s13271_s2 + $0x54] sm:$0xf0]  ;;  %v6056_v0 = vor.u32 %v8286_v57, %v6055_v56  ;;  %v5911_v2 = vld [vmem:[%s13271_s2 + $0x248] sm:$0xf]  ;;  %v8200_v56 = vld [vmem:[%s13271_s2 + $0xcc] sm:$0xf] }
  0x64   :  { %1328 = vmatmul.bf16.vlgmr.msra.gmra.mxu0 %v9264_v44  ;;  %1341 = vmatmul.bf16.vlgmr.msra.gmra.mxu1 %v9272_v47  ;;  %v8218_v1 = vld [vmem:[%s13271_s2 + $0x154] sm:$0xf0]  ;;  %v5639_v9 = vld [vmem:[%s13271_s2 + $0x28] sm:$0xf]  ;;  %v5721_v57 = vld [vmem:[%s13271_s2 + $0xd8] sm:$0xf0] }
  0x65   :  { %1372 = vmatpush.bf16.msrb.mxu0 %v5736_v4  ;;  %1385 = vmatpush.bf16.msrb.mxu1 %v5864_v5  ;;  %v8250_v3 = vld [vmem:[%s13271_s2 + $0x254] sm:$0xf0]  ;;  %v6039_v4 = vld [vmem:[%s13271_s2 + $0x348] sm:$0xf]  ;;  %v5784_v7 = vor.u32 %v8218_v1, %v5783_v63 }
  0x66   :  { %1398 = vmatpush.bf16.msrb.mxu2 %v5992_v6  ;;  %1367 = vmatmul.bf16.vlgmr.msra.gmra.mxu3 %v9374_v37  ;;  %v8282_v5 = vld [vmem:[%s13271_s2 + $0x354] sm:$0xf0]  ;;  %v5656_v6 = vor.u32 %v8186_v62, %v5655_v61  ;;  %v5912_v8 = vor.u32 %v8250_v3, %v5911_v2  ;;  %v5767_v11 = vld [vmem:[%s13271_s2 + $0x128] sm:$0xf]  ;;  %v5724_v62 = vor.u32 %v8200_v56, %v5721_v57 }
  0x67   :  { %1411 = vmatpush.bf16.msrb.mxu3 %v6120_v10  ;;  %1354 = vmatmul.bf16.vlgmr.msra.gmra.mxu2 %v9363_v33  ;;  %v8182_v10 = vld [vmem:[%s13271_s2 + $0x34] sm:$0xf0]  ;;  %v6040_v12 = vor.u32 %v8282_v5, %v6039_v4  ;;  %v5895_v14 = vld [vmem:[%s13271_s2 + $0x228] sm:$0xf]  ;;  %v8196_v4 = vld [vmem:[%s13271_s2 + $0xac] sm:$0xf] }
  0x68   :  { %v8214_v13 = vld [vmem:[%s13271_s2 + $0x134] sm:$0xf0]  ;;  %v5623_v21 = vld [vmem:[%s13271_s2 + $0x8] sm:$0xf]  ;;  %v5705_v5 = vld [vmem:[%s13271_s2 + $0xb8] sm:$0xf0] }
  0x69   :  { %1373 = vmatpush.bf16.msrb.mxu0 %v5720_v16  ;;  %1386 = vmatpush.bf16.msrb.mxu1 %v5848_v17  ;;  %v8246_v15 = vld [vmem:[%s13271_s2 + $0x234] sm:$0xf0]  ;;  %v6023_v16 = vld [vmem:[%s13271_s2 + $0x328] sm:$0xf]  ;;  %v5768_v23 = vor.u32 %v8214_v13, %v5767_v11 }
  0x6a   :  { %1399 = vmatpush.bf16.msrb.mxu2 %v5976_v19  ;;  %v8278_v17 = vld [vmem:[%s13271_s2 + $0x334] sm:$0xf0]  ;;  %v5640_v19 = vor.u32 %v8182_v10, %v5639_v9  ;;  %v5751_v25 = vld [vmem:[%s13271_s2 + $0x108] sm:$0xf]  ;;  %v5708_v10 = vor.u32 %v8196_v4, %v5705_v5  ;;  %v8176_v5 = vld [vmem:[%s13271_s2 + $0xc] sm:$0xf] }
  0x6b   :  { %1412 = vmatpush.bf16.msrb.mxu3 %v6104_v24  ;;  %v8178_v22 = vld [vmem:[%s13271_s2 + $0x14] sm:$0xf0]  ;;  %v5896_v24 = vor.u32 %v8246_v15, %v5895_v14  ;;  %v5879_v27 = vld [vmem:[%s13271_s2 + $0x208] sm:$0xf]  ;;  %v6024_v28 = vor.u32 %v8278_v17, %v6023_v16  ;;  %v8192_v16 = vld [vmem:[%s13271_s2 + $0x8c] sm:$0xf] }
  0x6c   :  { %v8210_v26 = vld [vmem:[%s13271_s2 + $0x114] sm:$0xf0]  ;;  %v6375_v35 = vld [vmem:[%s13271_s2 + $0x5e8] sm:$0xf]  ;;  %v5624_v36 = vor.u32 %v8178_v22, %v5623_v21  ;;  %v5689_v17 = vld [vmem:[%s13271_s2 + $0x98] sm:$0xf0] }
  0x6d   :  { %1374 = vmatpush.bf16.msrb.mxu0 %v5704_v30  ;;  %1387 = vmatpush.bf16.msrb.mxu1 %v5832_v31  ;;  %v8242_v29 = vld [vmem:[%s13271_s2 + $0x214] sm:$0xf0]  ;;  %v6007_v30 = vld [vmem:[%s13271_s2 + $0x308] sm:$0xf]  ;;  %v5752_v41 = vor.u32 %v8210_v26, %v5751_v25  ;;  %v5817_v21 = vld [vmem:[%s13271_s2 + $0x198] sm:$0xf0] }
  0x6e   :  { %1400 = vmatpush.bf16.msrb.mxu2 %v5960_v32  ;;  %v8274_v31 = vld [vmem:[%s13271_s2 + $0x314] sm:$0xf0]  ;;  %v6247_v32 = vld [vmem:[%s13271_s2 + $0x4e8] sm:$0xf]  ;;  %v5880_v42 = vor.u32 %v8242_v29, %v5879_v27 }
  0x6f   :  { %1413 = vmatpush.bf16.msrb.mxu3 %v6088_v38  ;;  %v8334_v34 = vld [vmem:[%s13271_s2 + $0x4f4] sm:$0xf0]  ;;  %v6231_v51 = vld [vmem:[%s13271_s2 + $0x4c8] sm:$0xf] }
  0x70   :  { %v8366_v38 = vld [vmem:[%s13271_s2 + $0x5f4] sm:$0xf0]  ;;  %v6359_v53 = vld [vmem:[%s13271_s2 + $0x5c8] sm:$0xf] }
  0x71   :  { %1375 = vmatpush.bf16.msrb.mxu0 %v5688_v45  ;;  %1388 = vmatpush.bf16.msrb.mxu1 %v5816_v46  ;;  %v5865_v45 = vld [vmem:[%s13271_s2 + $0x1f8] sm:$0xf0]  ;;  %v6008_v46 = vor.u32 %v8274_v31, %v6007_v30  ;;  %v6376_v49 = vor.u32 %v8366_v38, %v6375_v35  ;;  %v8362_v55 = vld [vmem:[%s13271_s2 + $0x5d4] sm:$0xf0]  ;;  %v6215_v63 = vld [vmem:[%s13271_s2 + $0x4a8] sm:$0xf] }
  0x72   :  { %1401 = vmatpush.bf16.msrb.mxu2 %v5944_v48  ;;  %v6248_v48 = vor.u32 %v8334_v34, %v6247_v32  ;;  %v5868_v54 = vor.u32 %v8236_v43, %v5865_v45  ;;  %v6360_v61 = vor.u32 %v8362_v55, %v6359_v53  ;;  %v6343_v1 = vld [vmem:[%s13271_s2 + $0x5a8] sm:$0xf]  ;;  %v8358_v3 = vld [vmem:[%s13271_s2 + $0x5b4] sm:$0xf0]  ;;  %v8188_v30 = vld [vmem:[%s13271_s2 + $0x6c] sm:$0xf] }
  0x73   :  { %1414 = vmatpush.bf16.msrb.mxu3 %v6072_v52  ;;  %v8330_v52 = vld [vmem:[%s13271_s2 + $0x4d4] sm:$0xf0]  ;;  %v6344_v9 = vor.u32 %v8358_v3, %v6343_v1  ;;  %v6199_v11 = vld [vmem:[%s13271_s2 + $0x488] sm:$0xf]  ;;  %v5673_v31 = vld [vmem:[%s13271_s2 + $0x78] sm:$0xf0] }
  0x74   :  { %v6327_v13 = vld [vmem:[%s13271_s2 + $0x588] sm:$0xf]  ;;  %v8354_v15 = vld [vmem:[%s13271_s2 + $0x594] sm:$0xf0]  ;;  %v8220_v32 = vld [vmem:[%s13271_s2 + $0x16c] sm:$0xf]  ;;  %v5676_v38 = vor.u32 %v8188_v30, %v5673_v31 }
  0x75   :  { %1376 = vmatpush.bf16.msrb.mxu0 %v5672_v58  ;;  %1389 = vmatpush.bf16.msrb.mxu1 %v5800_v59  ;;  %v8232_v58 = vld [vmem:[%s13271_s2 + $0x1cc] sm:$0xf]  ;;  %v5849_v59 = vld [vmem:[%s13271_s2 + $0x1d8] sm:$0xf0]  ;;  %v6183_v25 = vld [vmem:[%s13271_s2 + $0x468] sm:$0xf] }
  0x76   :  { %1402 = vmatpush.bf16.msrb.mxu2 %v5928_v60  ;;  %v6232_v60 = vor.u32 %v8330_v52, %v6231_v51  ;;  %v5852_v2 = vor.u32 %v8232_v58, %v5849_v59  ;;  %v8318_v26 = vld [vmem:[%s13271_s2 + $0x474] sm:$0xf0]  ;;  %v6311_v27 = vld [vmem:[%s13271_s2 + $0x568] sm:$0xf]  ;;  %v5801_v34 = vld [vmem:[%s13271_s2 + $0x178] sm:$0xf0] }
  0x77   :  { %1415 = vmatpush.bf16.msrb.mxu3 %v6056_v0  ;;  %v8326_v0 = vld [vmem:[%s13271_s2 + $0x4b4] sm:$0xf0]  ;;  %v6184_v35 = vor.u32 %v8318_v26, %v6183_v25  ;;  %v6167_v39 = vld [vmem:[%s13271_s2 + $0x448] sm:$0xf]  ;;  %v8184_v45 = vld [vmem:[%s13271_s2 + $0x4c] sm:$0xf] }
  0x78   :  { %v8350_v29 = vld [vmem:[%s13271_s2 + $0x574] sm:$0xf0]  ;;  %v6151_v53 = vld [vmem:[%s13271_s2 + $0x428] sm:$0xf]  ;;  %v8180_v58 = vld [vmem:[%s13271_s2 + $0x2c] sm:$0xf] }
  0x79   :  { %1377 = vmatpush.bf16.msrb.mxu0 %v5656_v6  ;;  %1390 = vmatpush.bf16.msrb.mxu1 %v5784_v7  ;;  %v8228_v6 = vld [vmem:[%s13271_s2 + $0x1ac] sm:$0xf]  ;;  %v5833_v7 = vld [vmem:[%s13271_s2 + $0x1b8] sm:$0xf0]  ;;  %v8314_v40 = vld [vmem:[%s13271_s2 + $0x454] sm:$0xf0] }
  0x7a   :  { %1403 = vmatpush.bf16.msrb.mxu2 %v5912_v8  ;;  %v6216_v8 = vor.u32 %v8326_v0, %v6215_v63  ;;  %v5836_v14 = vor.u32 %v8228_v6, %v5833_v7  ;;  %v8346_v43 = vld [vmem:[%s13271_s2 + $0x554] sm:$0xf0]  ;;  %v6279_v55 = vld [vmem:[%s13271_s2 + $0x528] sm:$0xf]  ;;  %v5641_v59 = vld [vmem:[%s13271_s2 + $0x38] sm:$0xf0] }
  0x7b   :  { %1416 = vmatpush.bf16.msrb.mxu3 %v6040_v12  ;;  %v8322_v12 = vld [vmem:[%s13271_s2 + $0x494] sm:$0xf0]  ;;  %v6135_v63 = vld [vmem:[%s13271_s2 + $0x408] sm:$0xf]  ;;  %v5625_v7 = vld [vmem:[%s13271_s2 + $0x18] sm:$0xf0] }
  0x7c   :  { %v6200_v22 = vor.u32 %v8322_v12, %v6199_v11  ;;  %v8342_v57 = vld [vmem:[%s13271_s2 + $0x534] sm:$0xf0]  ;;  %v6263_v3 = vld [vmem:[%s13271_s2 + $0x508] sm:$0xf]  ;;  %v5993_v11 = vld [vmem:[%s13271_s2 + $0x2f8] sm:$0xf0] }
  0x7d   :  { %1378 = vmatpush.bf16.msrb.mxu0 %v5640_v19  ;;  %1391 = vmatpush.bf16.msrb.mxu1 %v5768_v23  ;;  %v8224_v19 = vld [vmem:[%s13271_s2 + $0x18c] sm:$0xf]  ;;  %v6328_v23 = vor.u32 %v8354_v15, %v6327_v13  ;;  %v8306_v0 = vld [vmem:[%s13271_s2 + $0x414] sm:$0xf0]  ;;  %v6280_v1 = vor.u32 %v8342_v57, %v6279_v55  ;;  %v6105_v31 = vld [vmem:[%s13271_s2 + $0x3d8] sm:$0xf0] }
  0x7e   :  { %1404 = vmatpush.bf16.msrb.mxu2 %v5896_v24  ;;  %v5692_v24 = vor.u32 %v8192_v16, %v5689_v17  ;;  %v8338_v4 = vld [vmem:[%s13271_s2 + $0x514] sm:$0xf0]  ;;  %v8300_v12 = vld [vmem:[%s13271_s2 + $0x3ec] sm:$0xf]  ;;  %v6136_v13 = vor.u32 %v8306_v0, %v6135_v63  ;;  %v6249_v16 = vld [vmem:[%s13271_s2 + $0x4f8] sm:$0xf0] }
  0x7f   :  { %1417 = vmatpush.bf16.msrb.mxu3 %v6024_v28  ;;  %v5820_v28 = vor.u32 %v8224_v19, %v5817_v21  ;;  %v8332_v15 = vld [vmem:[%s13271_s2 + $0x4ec] sm:$0xf]  ;;  %v6264_v17 = vor.u32 %v8338_v4, %v6263_v3  ;;  %v5628_v19 = vor.u32 %v8176_v5, %v5625_v7  ;;  %v5945_v55 = vld [vmem:[%s13271_s2 + $0x298] sm:$0xf0] }
  0x80   :  { %v8364_v21 = vld [vmem:[%s13271_s2 + $0x5ec] sm:$0xf]  ;;  %v6252_v26 = vor.u32 %v8332_v15, %v6249_v16  ;;  %v6057_v5 = vld [vmem:[%s13271_s2 + $0x378] sm:$0xf0] }
  0x81   :  { %1379 = vmatpush.bf16.msrb.mxu0 %v5624_v36  ;;  %1392 = vmatpush.bf16.msrb.mxu1 %v5752_v41  ;;  %v6312_v36 = vor.u32 %v8350_v29, %v6311_v27  ;;  %v6295_v41 = vld [vmem:[%s13271_s2 + $0x548] sm:$0xf]  ;;  %v8264_v27 = vld [vmem:[%s13271_s2 + $0x2cc] sm:$0xf]  ;;  %v6185_v7 = vld [vmem:[%s13271_s2 + $0x478] sm:$0xf0] }
  0x82   :  { %1405 = vmatpush.bf16.msrb.mxu2 %v5880_v42  ;;  %v5804_v42 = vor.u32 %v8220_v32, %v5801_v34  ;;  %v6296_v51 = vor.u32 %v8346_v43, %v6295_v41  ;;  %v8296_v29 = vld [vmem:[%s13271_s2 + $0x3cc] sm:$0xf]  ;;  %v6233_v34 = vld [vmem:[%s13271_s2 + $0x4d8] sm:$0xf0] }
  0x83   :  { %1418 = vmatpush.bf16.msrb.mxu3 %v6008_v46  ;;  %v5657_v46 = vld [vmem:[%s13271_s2 + $0x58] sm:$0xf0]  ;;  %v8328_v32 = vld [vmem:[%s13271_s2 + $0x4cc] sm:$0xf] }
  0x84   :  { %1380 = vmatmul.bf16.vlgmr.msrb.gmra.mxu0 %v9213_v18  ;;  %1393 = vmatmul.bf16.vlgmr.msrb.gmra.mxu1 %v9218_v20  ;;  %v5660_v52 = vor.u32 %v8184_v45, %v5657_v46  ;;  %v8260_v41 = vld [vmem:[%s13271_s2 + $0x2ac] sm:$0xf]  ;;  %v6089_v46 = vld [vmem:[%s13271_s2 + $0x3b8] sm:$0xf0] }
  0x85   :  { %1424 = vmatpush.bf16.msra.mxu0 %v6248_v48  ;;  %1437 = vmatpush.bf16.msra.mxu1 %v6376_v49  ;;  %v8216_v48 = vld [vmem:[%s13271_s2 + $0x14c] sm:$0xf]  ;;  %v5785_v49 = vld [vmem:[%s13271_s2 + $0x158] sm:$0xf0] }
  0x86   :  { %1450 = vmatpush.bf16.msra.mxu2 %v5740_v50  ;;  %1419 = vmatmul.bf16.vlgmr.msrb.gmra.mxu3 %v9272_v47  ;;  %v6168_v50 = vor.u32 %v8314_v40, %v6167_v39  ;;  %v5788_v56 = vor.u32 %v8216_v48, %v5785_v49  ;;  %v6108_v39 = vor.u32 %v8296_v29, %v6105_v31  ;;  %v8292_v43 = vld [vmem:[%s13271_s2 + $0x3ac] sm:$0xf]  ;;  %v6217_v49 = vld [vmem:[%s13271_s2 + $0x4b8] sm:$0xf0] }
  0x87   :  { %1463 = vmatpush.bf16.msra.mxu3 %v5868_v54  ;;  %1406 = vmatmul.bf16.vlgmr.msrb.gmra.mxu2 %v9264_v44  ;;  %v8310_v54 = vld [vmem:[%s13271_s2 + $0x434] sm:$0xf0]  ;;  %v6236_v40 = vor.u32 %v8328_v32, %v6233_v34  ;;  %v8324_v48 = vld [vmem:[%s13271_s2 + $0x4ac] sm:$0xf]  ;;  %v6025_v34 = vld [vmem:[%s13271_s2 + $0x338] sm:$0xf0] }
  0x88   :  { %v8284_v3 = vld [vmem:[%s13271_s2 + $0x36c] sm:$0xf] }
  0x89   :  { %1425 = vmatpush.bf16.msra.mxu0 %v6232_v60  ;;  %1438 = vmatpush.bf16.msra.mxu1 %v6360_v61  ;;  %v8212_v60 = vld [vmem:[%s13271_s2 + $0x12c] sm:$0xf]  ;;  %v5769_v61 = vld [vmem:[%s13271_s2 + $0x138] sm:$0xf0] }
  0x8a   :  { %1451 = vmatpush.bf16.msra.mxu2 %v5724_v62  ;;  %v6152_v62 = vor.u32 %v8310_v54, %v6151_v53  ;;  %v5772_v6 = vor.u32 %v8212_v60, %v5769_v61  ;;  %v6092_v53 = vor.u32 %v8292_v43, %v6089_v46  ;;  %v6220_v54 = vor.u32 %v8324_v48, %v6217_v49  ;;  %v8352_v60 = vld [vmem:[%s13271_s2 + $0x58c] sm:$0xf]  ;;  %v6329_v61 = vld [vmem:[%s13271_s2 + $0x598] sm:$0xf0] }
  0x8b   :  { %1464 = vmatpush.bf16.msra.mxu3 %v5852_v2  ;;  %v5644_v2 = vor.u32 %v8180_v58, %v5641_v59  ;;  %v8320_v58 = vld [vmem:[%s13271_s2 + $0x48c] sm:$0xf]  ;;  %v6201_v59 = vld [vmem:[%s13271_s2 + $0x498] sm:$0xf0]  ;;  %v6332_v4 = vor.u32 %v8352_v60, %v6329_v61 }
  0x8c   :  { %v6204_v0 = vor.u32 %v8320_v58, %v6201_v59  ;;  %v8280_v15 = vld [vmem:[%s13271_s2 + $0x34c] sm:$0xf]  ;;  %v6009_v48 = vld [vmem:[%s13271_s2 + $0x318] sm:$0xf0]  ;;  %v8429_v58 = vld [vmem:[%s13274_s3 + $0x1ec] sm:$0xf0] }
  0x8d   :  { %1426 = vmatpush.bf16.msra.mxu0 %v6216_v8  ;;  %1439 = vmatpush.bf16.msra.mxu1 %v6344_v9  ;;  %v8208_v8 = vld [vmem:[%s13271_s2 + $0x10c] sm:$0xf]  ;;  %v5753_v9 = vld [vmem:[%s13271_s2 + $0x118] sm:$0xf0] }
  0x8e   :  { %1452 = vmatpush.bf16.msra.mxu2 %v5708_v10  ;;  %v8268_v10 = vld [vmem:[%s13271_s2 + $0x2ec] sm:$0xf] }
  0x8f   :  { %1465 = vmatpush.bf16.msra.mxu3 %v5836_v14  ;;  %v6121_v14 = vld [vmem:[%s13271_s2 + $0x3f8] sm:$0xf0]  ;;  %v8244_v29 = vld [vmem:[%s13271_s2 + $0x22c] sm:$0xf] }
  0x90   :  { %v6124_v25 = vor.u32 %v8300_v12, %v6121_v14  ;;  %v5913_v14 = vld [vmem:[%s13271_s2 + $0x258] sm:$0xf0]  ;;  %v8276_v31 = vld [vmem:[%s13271_s2 + $0x32c] sm:$0xf] }
  0x91   :  { %1427 = vmatpush.bf16.msra.mxu0 %v6200_v22  ;;  %1440 = vmatpush.bf16.msra.mxu1 %v6328_v23  ;;  %v6377_v22 = vld [vmem:[%s13271_s2 + $0x5f8] sm:$0xf0]  ;;  %v5756_v23 = vor.u32 %v8208_v8, %v5753_v9  ;;  %v8348_v8 = vld [vmem:[%s13271_s2 + $0x56c] sm:$0xf] }
  0x92   :  { %1453 = vmatpush.bf16.msra.mxu2 %v5692_v24  ;;  %v5996_v24 = vor.u32 %v8268_v10, %v5993_v11  ;;  %v6380_v30 = vor.u32 %v8364_v21, %v6377_v22  ;;  %v6313_v9 = vld [vmem:[%s13271_s2 + $0x578] sm:$0xf0]  ;;  %v6060_v11 = vor.u32 %v8284_v3, %v6057_v5  ;;  %v8344_v22 = vld [vmem:[%s13271_s2 + $0x54c] sm:$0xf]  ;;  %v8425_v5 = vld [vmem:[%s13274_s3 + $0x1cc] sm:$0xf0] }
  0x93   :  { %1466 = vmatpush.bf16.msra.mxu3 %v5820_v28  ;;  %v5977_v28 = vld [vmem:[%s13271_s2 + $0x2d8] sm:$0xf0]  ;;  %v6316_v16 = vor.u32 %v8348_v8, %v6313_v9  ;;  %v8272_v46 = vld [vmem:[%s13271_s2 + $0x30c] sm:$0xf]  ;;  %v6463_v9 = vld [vmem:[%s13274_s3 + $0xa0] sm:$0xf] }
  0x94   :  { %v6169_v21 = vld [vmem:[%s13271_s2 + $0x458] sm:$0xf0]  ;;  %v6012_v59 = vor.u32 %v8272_v46, %v6009_v48  ;;  %v6399_v48 = vld [vmem:[%s13274_s3 + $0x20] sm:$0xf] }
  0x95   :  { %1428 = vmatpush.bf16.msra.mxu0 %v6184_v35  ;;  %1441 = vmatpush.bf16.msra.mxu1 %v6312_v36  ;;  %v8360_v35 = vld [vmem:[%s13271_s2 + $0x5cc] sm:$0xf]  ;;  %v6361_v36 = vld [vmem:[%s13271_s2 + $0x5d8] sm:$0xf0] }
  0x96   :  { %1454 = vmatpush.bf16.msra.mxu2 %v5676_v38  ;;  %v5980_v38 = vor.u32 %v8264_v27, %v5977_v28  ;;  %v6364_v45 = vor.u32 %v8360_v35, %v6361_v36  ;;  %v8308_v35 = vld [vmem:[%s13271_s2 + $0x42c] sm:$0xf]  ;;  %v6153_v36 = vld [vmem:[%s13271_s2 + $0x438] sm:$0xf0] }
  0x97   :  { %1467 = vmatpush.bf16.msra.mxu3 %v5804_v42  ;;  %v5961_v42 = vld [vmem:[%s13271_s2 + $0x2b8] sm:$0xf0]  ;;  %v6156_v43 = vor.u32 %v8308_v35, %v6153_v36  ;;  %v8377_v35 = vld [vmem:[%s13274_s3 + $0x4c] sm:$0xf0] }
  0x99   :  { %1429 = vmatpush.bf16.msra.mxu0 %v6168_v50  ;;  %1442 = vmatpush.bf16.msra.mxu1 %v6296_v51  ;;  %v8356_v50 = vld [vmem:[%s13271_s2 + $0x5ac] sm:$0xf]  ;;  %v6345_v51 = vld [vmem:[%s13271_s2 + $0x5b8] sm:$0xf0] }
  0x9a   :  { %1455 = vmatpush.bf16.msra.mxu2 %v5660_v52  ;;  %v5964_v52 = vor.u32 %v8260_v41, %v5961_v42  ;;  %v6348_v57 = vor.u32 %v8356_v50, %v6345_v51  ;;  %v8240_v41 = vld [vmem:[%s13271_s2 + $0x20c] sm:$0xf]  ;;  %v6028_v42 = vor.u32 %v8276_v31, %v6025_v34  ;;  %v6137_v51 = vld [vmem:[%s13271_s2 + $0x418] sm:$0xf0]  ;;  %v6415_v34 = vld [vmem:[%s13274_s3 + $0x40] sm:$0xf] }
  0x9b   :  { %1468 = vmatpush.bf16.msra.mxu3 %v5788_v56  ;;  %v8288_v56 = vld [vmem:[%s13271_s2 + $0x38c] sm:$0xf] }
  0x9c   :  { %v8304_v50 = vld [vmem:[%s13271_s2 + $0x40c] sm:$0xf] }
  0x9d   :  { %1430 = vmatpush.bf16.msra.mxu0 %v6152_v62  ;;  %1443 = vmatpush.bf16.msra.mxu1 %v6280_v1  ;;  %v8252_v1 = vld [vmem:[%s13271_s2 + $0x26c] sm:$0xf]  ;;  %v6140_v60 = vor.u32 %v8304_v50, %v6137_v51 }
  0x9e   :  { %1456 = vmatpush.bf16.msra.mxu2 %v5644_v2  ;;  %v5929_v2 = vld [vmem:[%s13271_s2 + $0x278] sm:$0xf0] }
  0x9f   :  { %1469 = vmatpush.bf16.msra.mxu3 %v5772_v6  ;;  %v8316_v6 = vld [vmem:[%s13271_s2 + $0x46c] sm:$0xf]  ;;  %v5932_v10 = vor.u32 %v8252_v1, %v5929_v2  ;;  %v8393_v1 = vld [vmem:[%s13274_s3 + $0xcc] sm:$0xf0] }
  0xa0   :  { %v6188_v12 = vor.u32 %v8316_v6, %v6185_v7 }
  0xa1   :  { %1431 = vmatpush.bf16.msra.mxu0 %v6136_v13  ;;  %1444 = vmatpush.bf16.msra.mxu1 %v6264_v17  ;;  %v8248_v13 = vld [vmem:[%s13271_s2 + $0x24c] sm:$0xf]  ;;  %v6041_v17 = vld [vmem:[%s13271_s2 + $0x358] sm:$0xf0] }
  0xa2   :  { %1457 = vmatpush.bf16.msra.mxu2 %v5628_v19  ;;  %v8312_v19 = vld [vmem:[%s13271_s2 + $0x44c] sm:$0xf]  ;;  %v6044_v27 = vor.u32 %v8280_v15, %v6041_v17  ;;  %v6447_v15 = vld [vmem:[%s13274_s3 + $0x80] sm:$0xf] }
  0xa3   :  { %1470 = vmatpush.bf16.msra.mxu3 %v5756_v23  ;;  %v6297_v23 = vld [vmem:[%s13271_s2 + $0x558] sm:$0xf0]  ;;  %v6172_v28 = vor.u32 %v8312_v19, %v6169_v21  ;;  %v6575_v17 = vld [vmem:[%s13274_s3 + $0x180] sm:$0xf] }
  0xa4   :  { %1432 = vmatmul.bf16.vlgmr.msra.gmra.mxu0 %v9363_v33  ;;  %1445 = vmatmul.bf16.vlgmr.msra.gmra.mxu1 %v9374_v37  ;;  %v6300_v32 = vor.u32 %v8344_v22, %v6297_v23 }
  0xa5   :  { %1476 = vmatpush.bf16.msrb.mxu0 %v5996_v24  ;;  %1489 = vmatpush.bf16.msrb.mxu1 %v6124_v25  ;;  %v5916_v25 = vor.u32 %v8248_v13, %v5913_v14 }
  0xa6   :  { %1502 = vmatpush.bf16.msrb.mxu2 %v6252_v26  ;;  %1471 = vmatmul.bf16.vlgmr.msra.gmra.mxu3 %v9218_v20  ;;  %v6073_v20 = vld [vmem:[%s13271_s2 + $0x398] sm:$0xf0] }
  0xa7   :  { %1515 = vmatpush.bf16.msrb.mxu3 %v6380_v30  ;;  %1458 = vmatmul.bf16.vlgmr.msra.gmra.mxu2 %v9213_v18  ;;  %v8256_v18 = vld [vmem:[%s13271_s2 + $0x28c] sm:$0xf]  ;;  %v6076_v63 = vor.u32 %v8288_v56, %v6073_v20  ;;  %v5897_v30 = vld [vmem:[%s13271_s2 + $0x238] sm:$0xf0]  ;;  %v6623_v20 = vld [vmem:[%s13274_s3 + $0x1e0] sm:$0xf] }
  0xa8   :  { %v5948_v62 = vor.u32 %v8256_v18, %v5945_v55  ;;  %v8397_v18 = vld [vmem:[%s13274_s3 + $0xec] sm:$0xf0]  ;;  %v6624_v3 = vor.u32 %v8429_v58, %v6623_v20  ;;  %v8395_v20 = vld [vmem:[%s13274_s3 + $0xe4] sm:$0xf] }
  0xa9   :  { %1477 = vmatpush.bf16.msrb.mxu0 %v5980_v38  ;;  %1490 = vmatpush.bf16.msrb.mxu1 %v6108_v39  ;;  %v8340_v38 = vld [vmem:[%s13271_s2 + $0x52c] sm:$0xf]  ;;  %v6281_v39 = vld [vmem:[%s13271_s2 + $0x538] sm:$0xf0] }
  0xaa   :  { %1503 = vmatpush.bf16.msrb.mxu2 %v6236_v40  ;;  %v5900_v40 = vor.u32 %v8244_v29, %v5897_v30  ;;  %v6284_v49 = vor.u32 %v8340_v38, %v6281_v39  ;;  %v6559_v29 = vld [vmem:[%s13274_s3 + $0x160] sm:$0xf]  ;;  %v8413_v30 = vld [vmem:[%s13274_s3 + $0x16c] sm:$0xf0] }
  0xab   :  { %1516 = vmatpush.bf16.msrb.mxu3 %v6364_v45  ;;  %v5881_v45 = vld [vmem:[%s13271_s2 + $0x218] sm:$0xf0]  ;;  %v6560_v36 = vor.u32 %v8413_v30, %v6559_v29  ;;  %v6543_v39 = vld [vmem:[%s13274_s3 + $0x140] sm:$0xf] }
  0xac   :  { %v5884_v56 = vor.u32 %v8240_v41, %v5881_v45 }
  0xad   :  { %1478 = vmatpush.bf16.msrb.mxu0 %v5964_v52  ;;  %1491 = vmatpush.bf16.msrb.mxu1 %v6092_v53  ;;  %v1225_v24 = vpop.f32.mrf.mxu0  ;;  %v1238_v26 = vpop.f32.mrf.mxu1  ;;  %v8336_v52 = vld [vmem:[%s13271_s2 + $0x50c] sm:$0xf]  ;;  %v6265_v53 = vld [vmem:[%s13271_s2 + $0x518] sm:$0xf0] }
  0xae   :  { %1504 = vmatpush.bf16.msrb.mxu2 %v6220_v54  ;;  %v6495_v54 = vld [vmem:[%s13274_s3 + $0xe0] sm:$0xf]  ;;  %v1239_v61 = vadd.f32 %v1238_v26, %v1225_v24  ;;  %v8381_v26 = vld [vmem:[%s13274_s3 + $0x6c] sm:$0xf0] }
  0xaf   :  { %1517 = vmatpush.bf16.msrb.mxu3 %v6348_v57 }
  0xb0   :  { %v1264_v8 = vpop.f32.mrf.mxu3 }
  0xb1   :  { %1479 = vmatpush.bf16.msrb.mxu0 %v5948_v62  ;;  %1492 = vmatpush.bf16.msrb.mxu1 %v6076_v63  ;;  %v6268_v62 = vor.u32 %v8336_v52, %v6265_v53  ;;  %v6496_v63 = vor.u32 %v8397_v18, %v6495_v54  ;;  %v6527_v53 = vld [vmem:[%s13274_s3 + $0x120] sm:$0xf]  ;;  %v8405_v54 = vld [vmem:[%s13274_s3 + $0x12c] sm:$0xf0] }
  0xb2   :  { %1505 = vmatpush.bf16.msrb.mxu2 %v6204_v0  ;;  %v6479_v0 = vld [vmem:[%s13274_s3 + $0xc0] sm:$0xf]  ;;  %v6528_v58 = vor.u32 %v8405_v54, %v6527_v53  ;;  %v8407_v54 = vld [vmem:[%s13274_s3 + $0x144] sm:$0xf] }
  0xb3   :  { %1518 = vmatpush.bf16.msrb.mxu3 %v6332_v4  ;;  %v6607_v4 = vld [vmem:[%s13274_s3 + $0x1c0] sm:$0xf]  ;;  %v6480_v6 = vor.u32 %v8393_v1, %v6479_v0  ;;  %v6625_v0 = vld [vmem:[%s13274_s3 + $0x1f0] sm:$0xf0] }
  0xb5   :  { %1480 = vmatpush.bf16.msrb.mxu0 %v5932_v10  ;;  %1493 = vmatpush.bf16.msrb.mxu1 %v6060_v11  ;;  %v1227_v55 = vpop.f32.mrf.mxu0  ;;  %v1240_v57 = vpop.f32.mrf.mxu1  ;;  %v8389_v10 = vld [vmem:[%s13274_s3 + $0xac] sm:$0xf0]  ;;  %v6608_v11 = vor.u32 %v8425_v5, %v6607_v4  ;;  %v8391_v4 = vld [vmem:[%s13274_s3 + $0xc4] sm:$0xf]  ;;  %v6481_v5 = vld [vmem:[%s13274_s3 + $0xd0] sm:$0xf0] }
  0xb6   :  { %1506 = vmatpush.bf16.msrb.mxu2 %v6188_v12  ;;  %v1251_v2 = vpop.f32.mrf.mxu2  ;;  %v6591_v12 = vld [vmem:[%s13274_s3 + $0x1a0] sm:$0xf]  ;;  %v6464_v13 = vor.u32 %v8389_v10, %v6463_v9  ;;  %v8369_v57 = vld [vmem:[%s13274_s3 + $0xc] sm:$0xf0]  ;;  %v6609_v9 = vld [vmem:[%s13274_s3 + $0x1d0] sm:$0xf0] }
  0xb7   :  { %1519 = vmatpush.bf16.msrb.mxu3 %v6316_v16  ;;  %v1252_v7 = vadd.f32 %v1251_v2, %v1239_v61  ;;  %v6511_v61 = vld [vmem:[%s13274_s3 + $0x100] sm:$0xf] }
  0xb8   :  { %v1266_v24 = vpop.f32.mrf.mxu3 }
  0xb9   :  { %1481 = vmatpush.bf16.msrb.mxu0 %v5916_v25  ;;  %1494 = vmatpush.bf16.msrb.mxu1 %v6044_v27  ;;  %v1265_v14 = vadd.f32 %v1264_v8, %v1252_v7  ;;  %v6431_v25 = vld [vmem:[%s13274_s3 + $0x60] sm:$0xf]  ;;  %v8423_v8 = vld [vmem:[%s13274_s3 + $0x1c4] sm:$0xf]  ;;  %v8461_v24 = vld [vmem:[%s13274_s3 + $0x2ec] sm:$0xf0] }
  0xba   :  { %1507 = vmatpush.bf16.msrb.mxu2 %v6172_v28 }
  0xbb   :  { %1520 = vmatpush.bf16.msrb.mxu3 %v6300_v32  ;;  %v6432_v32 = vor.u32 %v8381_v26, %v6431_v25  ;;  %v8415_v26 = vld [vmem:[%s13274_s3 + $0x184] sm:$0xf] }
  0xbd   :  { %1482 = vmatpush.bf16.msrb.mxu0 %v5900_v40  ;;  %1495 = vmatpush.bf16.msrb.mxu1 %v6028_v42  ;;  %v8409_v40 = vld [vmem:[%s13274_s3 + $0x14c] sm:$0xf0] }
  0xbe   :  { %1508 = vmatpush.bf16.msrb.mxu2 %v6156_v43  ;;  %v6416_v43 = vor.u32 %v8377_v35, %v6415_v34  ;;  %v6544_v50 = vor.u32 %v8409_v40, %v6543_v39  ;;  %v6433_v34 = vld [vmem:[%s13274_s3 + $0x70] sm:$0xf0] }
  0xbf   :  { %1521 = vmatpush.bf16.msrb.mxu3 %v6284_v49  ;;  %v8373_v49 = vld [vmem:[%s13274_s3 + $0x2c] sm:$0xf0] }
  0xc0   :  { %v6400_v18 = vor.u32 %v8373_v49, %v6399_v48  ;;  %v8375_v48 = vld [vmem:[%s13274_s3 + $0x44] sm:$0xf]  ;;  %v6417_v49 = vld [vmem:[%s13274_s3 + $0x50] sm:$0xf0] }
  0xc1   :  { %1483 = vmatpush.bf16.msrb.mxu0 %v5884_v56  ;;  %1496 = vmatpush.bf16.msrb.mxu1 %v6012_v59  ;;  %v1277_v19 = vpop.f32.mrf.mxu0  ;;  %v1290_v23 = vpop.f32.mrf.mxu1  ;;  %v6383_v56 = vld [vmem:[%s13274_s3] sm:$0xf]  ;;  %v6497_v59 = vld [vmem:[%s13274_s3 + $0xf0] sm:$0xf0] }
  0xc2   :  { %1509 = vmatpush.bf16.msrb.mxu2 %v6140_v60  ;;  %v1278_v21 = vadd.f32 %v1277_v19, %v1265_v14  ;;  %v6384_v1 = vor.u32 %v8369_v57, %v6383_v56  ;;  %v6500_v2 = vor.u32 %v8395_v20, %v6497_v59  ;;  %v6465_v14 = vld [vmem:[%s13274_s3 + $0xb0] sm:$0xf0]  ;;  %v8383_v19 = vld [vmem:[%s13274_s3 + $0x84] sm:$0xf]  ;;  %v6420_v20 = vor.u32 %v8375_v48, %v6417_v49 }
  0xc3   :  { %1522 = vmatpush.bf16.msrb.mxu3 %v6268_v62  ;;  %v8401_v62 = vld [vmem:[%s13274_s3 + $0x10c] sm:$0xf0]  ;;  %v6753_v48 = vld [vmem:[%s13274_s3 + $0x2f0] sm:$0xf0] }
  0xc4   :  { %1484 = vmatmul.bf16.vlgmr.msrb.gmra.mxu0 %v9264_v44  ;;  %1497 = vmatmul.bf16.vlgmr.msrb.gmra.mxu1 %v9272_v47  ;;  %v8421_v44 = vld [vmem:[%s13274_s3 + $0x1ac] sm:$0xf0]  ;;  %v10176_v28 = vadd.f32 %v1290_v23, %v1278_v21  ;;  %v6449_v21 = vld [vmem:[%s13274_s3 + $0x90] sm:$0xf0]  ;;  %v6751_v23 = vld [vmem:[%s13274_s3 + $0x2e0] sm:$0xf] }
  0xc5   :  { %2336 = vmatpush.bf16.msra.mxu0 %v6496_v63  ;;  %2349 = vmatpush.bf16.msra.mxu1 %v6624_v3  ;;  %v8385_v47 = vld [vmem:[%s13274_s3 + $0x8c] sm:$0xf0]  ;;  %v6592_v16 = vor.u32 %v8421_v44, %v6591_v12  ;;  %v8427_v63 = vld [vmem:[%s13274_s3 + $0x1e4] sm:$0xf]  ;;  %v6512_v3 = vor.u32 %v8401_v62, %v6511_v61  ;;  %v6752_v29 = vor.u32 %v8461_v24, %v6751_v23  ;;  %v6671_v24 = vld [vmem:[%s13274_s3 + $0x240] sm:$0xf] }
  0xc6   :  { %1510 = vmatmul.bf16.vlgmr.msrb.gmra.mxu2 %v9363_v33  ;;  %1523 = vmatmul.bf16.vlgmr.msrb.gmra.mxu3 %v9374_v37  ;;  %v1253_v33 = vpop.f32.mrf.mxu2  ;;  %v8417_v37 = vld [vmem:[%s13274_s3 + $0x18c] sm:$0xf0]  ;;  %v6448_v22 = vor.u32 %v8385_v47, %v6447_v15  ;;  %v1532_v31 = vmul.f32 0.044715, %v10176_v28  ;;  %v6628_v7 = vor.u32 %v8427_v63, %v6625_v0  ;;  %v1528_v12 = vmul.f32 0.5, %v10176_v28 }
  0xc7   :  { %v6576_v27 = vor.u32 %v8417_v37, %v6575_v17  ;;  %v6612_v15 = vor.u32 %v8423_v8, %v6609_v9  ;;  %v8419_v33 = vld [vmem:[%s13274_s3 + $0x1a4] sm:$0xf]  ;;  %v6452_v30 = vor.u32 %v8383_v19, %v6449_v21  ;;  %2362 = vmatpush.bf16.msra.mxu2 %v6752_v29  ;;  %v6703_v63 = vld [vmem:[%s13274_s3 + $0x280] sm:$0xf]  ;;  %v8449_v0 = vld [vmem:[%s13274_s3 + $0x28c] sm:$0xf0] }
  0xc8   :  { %v1536_v41 = vmul.f32 %v1532_v31, %v10176_v28  ;;  %v8379_v31 = vld [vmem:[%s13274_s3 + $0x64] sm:$0xf]  ;;  %v6385_v8 = vld [vmem:[%s13274_s3 + $0x10] sm:$0xf0]  ;;  %v6503_v9 = vld [vmem:[%s13274_s3 + $0xe8] sm:$0xf] }
  0xc9   :  { %2337 = vmatpush.bf16.msra.mxu0 %v6480_v6  ;;  %2350 = vmatpush.bf16.msra.mxu1 %v6608_v11  ;;  %v1279_v42 = vpop.f32.mrf.mxu0  ;;  %v1292_v45 = vpop.f32.mrf.mxu1  ;;  %v6484_v11 = vor.u32 %v8391_v4, %v6481_v5  ;;  %v6704_v4 = vor.u32 %v8449_v0, %v6703_v63 }
  0xca   :  { %v1540_v46 = vmul.f32 %v1536_v41, %v10176_v28  ;;  %v1316_v51 = vpop.f32.mrf.mxu3  ;;  %v8411_v41 = vld [vmem:[%s13274_s3 + $0x164] sm:$0xf]  ;;  %v6561_v42 = vld [vmem:[%s13274_s3 + $0x170] sm:$0xf0] }
  0xcc   :  { %v1544_v52 = vadd.f32 %v1540_v46, %v10176_v28  ;;  %v6436_v46 = vor.u32 %v8379_v31, %v6433_v34  ;;  %v8437_v34 = vld [vmem:[%s13274_s3 + $0x22c] sm:$0xf0] }
  0xcd   :  { %2338 = vmatpush.bf16.msra.mxu0 %v6464_v13  ;;  %2351 = vmatpush.bf16.msra.mxu1 %v6592_v16  ;;  %v8387_v13 = vld [vmem:[%s13274_s3 + $0xa4] sm:$0xf]  ;;  %v6593_v16 = vld [vmem:[%s13274_s3 + $0x1b0] sm:$0xf0] }
  0xce   :  { %v10191_v38 = vpop.f32.mrf.mxu2  ;;  %v1548_v55 = vmul.f32 0.7978846, %v1544_v52  ;;  %v6468_v17 = vor.u32 %v8387_v13, %v6465_v14  ;;  %v8453_v52 = vld [vmem:[%s13274_s3 + $0x2ac] sm:$0xf0]  ;;  %v8398_v13 = vld [vmem:[%s13274_s3 + $0xf4] sm:$0xf0] }
  0xcf   :  { %v1317_v25 = vadd.f32 %v1316_v51, %v10191_v38  ;;  %v8457_v38 = vld [vmem:[%s13274_s3 + $0x2cc] sm:$0xf0]  ;;  %v6719_v51 = vld [vmem:[%s13274_s3 + $0x2a0] sm:$0xf]  ;;  %v6504_v21 = vor.u32 %v8398_v13, %v6503_v9  ;;  %v8451_v9 = vld [vmem:[%s13274_s3 + $0x2a4] sm:$0xf] }
  0xd0   :  { %8818 = vtanh.f32 %v1548_v55  ;;  %v6720_v55 = vor.u32 %v8453_v52, %v6719_v51  ;;  %v8489_v13 = vld [vmem:[%s13274_s3 + $0x3cc] sm:$0xf0] }
  0xd1   :  { %2339 = vmatpush.bf16.msra.mxu0 %v6448_v22  ;;  %2352 = vmatpush.bf16.msra.mxu1 %v6576_v27  ;;  %v6596_v22 = vor.u32 %v8419_v33, %v6593_v16  ;;  %v6577_v27 = vld [vmem:[%s13274_s3 + $0x190] sm:$0xf0] }
  0xd2   :  { %v1318_v6 = vpop.f32.mrf.mxu3  ;;  %v6580_v35 = vor.u32 %v8415_v26, %v6577_v27  ;;  %v6487_v26 = vld [vmem:[%s13274_s3 + $0xc8] sm:$0xf]  ;;  %v8394_v27 = vld [vmem:[%s13274_s3 + $0xd4] sm:$0xf0] }
  0xd3   :  { %v6488_v31 = vor.u32 %v8394_v27, %v6487_v26 }
  0xd5   :  { %2340 = vmatpush.bf16.msra.mxu0 %v6432_v32  ;;  %2353 = vmatpush.bf16.msra.mxu1 %v6560_v36  ;;  %v6735_v36 = vld [vmem:[%s13274_s3 + $0x2c0] sm:$0xf] }
  0xd6   :  { %v1305_v60 = vpop.f32.mrf.mxu2  ;;  %v8819_v10 = vpop.eup %8818 }
  0xd7   :  { %v1556_v44 = vadd.f32 1.0, %v8819_v10  ;;  %v6401_v60 = vld [vmem:[%s13274_s3 + $0x30] sm:$0xf0] }
  0xd9   :  { %2341 = vmatpush.bf16.msra.mxu0 %v6416_v43  ;;  %2354 = vmatpush.bf16.msra.mxu1 %v6544_v50  ;;  %v1560_v47 = vmul.f32 %v1556_v44, %v1528_v12  ;;  %v6736_v43 = vor.u32 %v8457_v38, %v6735_v36  ;;  %v6564_v50 = vor.u32 %v8411_v41, %v6561_v42  ;;  %v6687_v12 = vld [vmem:[%s13274_s3 + $0x260] sm:$0xf]  ;;  %v8445_v44 = vld [vmem:[%s13274_s3 + $0x26c] sm:$0xf0]  ;;  %v8390_v36 = vld [vmem:[%s13274_s3 + $0xb4] sm:$0xf0] }
  0xda   :  { %v6688_v33 = vor.u32 %v8445_v44, %v6687_v12  ;;  %v6639_v41 = vld [vmem:[%s13274_s3 + $0x200] sm:$0xf]  ;;  %v8433_v42 = vld [vmem:[%s13274_s3 + $0x20c] sm:$0xf0] }
  0xdb   :  { %v10263_v37 = vpack.c.bf16 %v1560_v47, %v1560_v47  ;;  %2363 = vmatpush.bf16.msra.mxu2 %v6736_v43  ;;  %v6513_v47 = vld [vmem:[%s13274_s3 + $0x110] sm:$0xf0]  ;;  %v8386_v43 = vld [vmem:[%s13274_s3 + $0x94] sm:$0xf0] }
  0xdd   :  { %2342 = vmatpush.bf16.msra.mxu0 %v6400_v18  ;;  %2355 = vmatpush.bf16.msra.mxu1 %v6528_v58  ;;  %v6545_v18 = vld [vmem:[%s13274_s3 + $0x150] sm:$0xf0]  ;;  %v8371_v58 = vld [vmem:[%s13274_s3 + $0x24] sm:$0xf] }
  0xde   :  { %v6548_v61 = vor.u32 %v8407_v54, %v6545_v18  ;;  %v6404_v6 = vor.u32 %v8371_v58, %v6401_v60  ;;  %v8430_v54 = vld [vmem:[%s13274_s3 + $0x1f4] sm:$0xf0]  ;;  %v8455_v58 = vld [vmem:[%s13274_s3 + $0x2c4] sm:$0xf]  ;;  %v6737_v60 = vld [vmem:[%s13274_s3 + $0x2d0] sm:$0xf0] }
  0xdf   :  { %2364 = vmatpush.bf16.msra.mxu2 %v6720_v55  ;;  %v6439_v55 = vld [vmem:[%s13274_s3 + $0x68] sm:$0xf]  ;;  %v6740_v0 = vor.u32 %v8455_v58, %v6737_v60  ;;  %v8392_v58 = vld [vmem:[%s13274_s3 + $0xcc] sm:$0xf]  ;;  %v6489_v60 = vld [vmem:[%s13274_s3 + $0xd8] sm:$0xf0] }
  0xe1   :  { %2343 = vmatpush.bf16.msra.mxu0 %v6384_v1  ;;  %2356 = vmatpush.bf16.msra.mxu1 %v6512_v3  ;;  %v1329_v32 = vpop.f32.mrf.mxu0  ;;  %v1342_v40 = vpop.f32.mrf.mxu1  ;;  %v8403_v1 = vld [vmem:[%s13274_s3 + $0x124] sm:$0xf] }
  0xe2   :  { %v1330_v39 = vadd.f32 %v1329_v32, %v1317_v25  ;;  %v8441_v25 = vld [vmem:[%s13274_s3 + $0x24c] sm:$0xf0]  ;;  %v6655_v32 = vld [vmem:[%s13274_s3 + $0x220] sm:$0xf] }
  0xe3   :  { %2365 = vmatpush.bf16.msra.mxu2 %v6704_v4  ;;  %v6672_v29 = vor.u32 %v8441_v25, %v6671_v24  ;;  %v6656_v38 = vor.u32 %v8437_v34, %v6655_v32  ;;  %v8493_v4 = vld [vmem:[%s13274_s3 + $0x3ec] sm:$0xf0]  ;;  %v6705_v24 = vld [vmem:[%s13274_s3 + $0x290] sm:$0xf0]  ;;  %v6847_v25 = vld [vmem:[%s13274_s3 + $0x3a0] sm:$0xf] }
  0xe4   :  { %2344 = vmatmul.bf16.vlgmr.msra.gmra.mxu0 %v10263_v37  ;;  %v1343_v45 = vadd.f32 %v1342_v40, %v1330_v39  ;;  %v6455_v40 = vld [vmem:[%s13274_s3 + $0x88] sm:$0xf]  ;;  %v8418_v32 = vld [vmem:[%s13274_s3 + $0x194] sm:$0xf0] }
  0xe5   :  { %2388 = vmatpush.bf16.msrb.mxu0 %v6500_v2  ;;  %2401 = vmatpush.bf16.msrb.mxu1 %v6628_v7  ;;  %v6529_v2 = vld [vmem:[%s13274_s3 + $0x130] sm:$0xf0]  ;;  %v8367_v7 = vld [vmem:[%s13274_s3 + $0x4] sm:$0xf]  ;;  %v6456_v18 = vor.u32 %v8386_v43, %v6455_v40  ;;  %v8396_v43 = vld [vmem:[%s13274_s3 + $0xec] sm:$0xf] }
  0xe6   :  { %v6532_v10 = vor.u32 %v8403_v1, %v6529_v2  ;;  %v6388_v19 = vor.u32 %v8367_v7, %v6385_v8  ;;  %v8426_v2 = vld [vmem:[%s13274_s3 + $0x1d4] sm:$0xf0]  ;;  %v6689_v40 = vld [vmem:[%s13274_s3 + $0x270] sm:$0xf0] }
  0xe7   :  { %2366 = vmatpush.bf16.msra.mxu2 %v6688_v33  ;;  %v8378_v7 = vld [vmem:[%s13274_s3 + $0x54] sm:$0xf0] }
  0xe9   :  { %2389 = vmatpush.bf16.msrb.mxu0 %v6484_v11  ;;  %2402 = vmatpush.bf16.msrb.mxu1 %v6612_v15  ;;  %v1368_v57 = vpop.f32.mrf.mxu3  ;;  %v1331_v62 = vpop.f32.mrf.mxu0  ;;  %v8399_v15 = vld [vmem:[%s13274_s3 + $0x104] sm:$0xf] }
  0xea   :  { %v1355_v53 = vpop.f32.mrf.mxu2  ;;  %v1344_v3 = vpop.f32.mrf.mxu1  ;;  %v6615_v62 = vld [vmem:[%s13274_s3 + $0x1c8] sm:$0xf] }
  0xeb   :  { %v1356_v56 = vadd.f32 %v1355_v53, %v1343_v45  ;;  %2367 = vmatpush.bf16.msra.mxu2 %v6672_v29  ;;  %v6640_v45 = vor.u32 %v8433_v42, %v6639_v41  ;;  %v6631_v53 = vld [vmem:[%s13274_s3 + $0x1e8] sm:$0xf]  ;;  %v6879_v3 = vld [vmem:[%s13274_s3 + $0x3e0] sm:$0xf]  ;;  %v6616_v12 = vor.u32 %v8426_v2, %v6615_v62 }
  0xec   :  { %v6880_v8 = vor.u32 %v8493_v4, %v6879_v3  ;;  %v6831_v41 = vld [vmem:[%s13274_s3 + $0x380] sm:$0xf]  ;;  %v8477_v3 = vld [vmem:[%s13274_s3 + $0x36c] sm:$0xf0] }
  0xed   :  { %2390 = vmatpush.bf16.msrb.mxu0 %v6468_v17  ;;  %2403 = vmatpush.bf16.msrb.mxu1 %v6596_v22  ;;  %v10324_v59 = vadd.f32 %v1368_v57, %v1356_v56  ;;  %v6516_v22 = vor.u32 %v8399_v15, %v6513_v47  ;;  %v8382_v57 = vld [vmem:[%s13274_s3 + $0x74] sm:$0xf0]  ;;  %v6815_v2 = vld [vmem:[%s13274_s3 + $0x360] sm:$0xf] }
  0xee   :  { %2375 = vmatpush.bf16.msra.mxu3 %v6880_v8  ;;  %v8422_v15 = vld [vmem:[%s13274_s3 + $0x1b4] sm:$0xf0]  ;;  %v6492_v8 = vor.u32 %v8392_v58, %v6489_v60  ;;  %v6601_v58 = vld [vmem:[%s13274_s3 + $0x1b8] sm:$0xf0]  ;;  %v8487_v60 = vld [vmem:[%s13274_s3 + $0x3c4] sm:$0xf] }
  0xef   :  { %v1533_v5 = vmul.f32 0.044715, %v10324_v59  ;;  %2368 = vmatpush.bf16.msra.mxu2 %v6656_v38  ;;  %v1529_v51 = vmul.f32 0.5, %v10324_v59  ;;  %v8370_v38 = vld [vmem:[%s13274_s3 + $0x14] sm:$0xf0] }
  0xf1   :  { %2391 = vmatpush.bf16.msrb.mxu0 %v6452_v30  ;;  %2404 = vmatpush.bf16.msrb.mxu1 %v6580_v35  ;;  %v1537_v11 = vmul.f32 %v1533_v5, %v10324_v59  ;;  %v1370_v17 = vpop.f32.mrf.mxu3  ;;  %v6471_v35 = vld [vmem:[%s13274_s3 + $0xa8] sm:$0xf]  ;;  %v6440_v5 = vor.u32 %v8382_v57, %v6439_v55  ;;  %v8439_v55 = vld [vmem:[%s13274_s3 + $0x244] sm:$0xf] }
  0xf2   :  { %v1357_v14 = vpop.f32.mrf.mxu2  ;;  %v6472_v39 = vor.u32 %v8390_v36, %v6471_v35  ;;  %v8374_v17 = vld [vmem:[%s13274_s3 + $0x34] sm:$0xf0]  ;;  %v6391_v36 = vld [vmem:[%s13274_s3 + $0x8] sm:$0xf] }
  0xf3   :  { %v1541_v16 = vmul.f32 %v1537_v11, %v10324_v59  ;;  %2369 = vmatpush.bf16.msra.mxu2 %v6640_v45  ;;  %v6863_v11 = vld [vmem:[%s13274_s3 + $0x3c0] sm:$0xf]  ;;  %v6599_v14 = vld [vmem:[%s13274_s3 + $0x1a8] sm:$0xf]  ;;  %v6505_v45 = vld [vmem:[%s13274_s3 + $0xf8] sm:$0xf0] }
  0xf4   :  { %v6864_v47 = vor.u32 %v8489_v13, %v6863_v11  ;;  %v6600_v26 = vor.u32 %v8422_v15, %v6599_v14  ;;  %v8388_v11 = vld [vmem:[%s13274_s3 + $0xac] sm:$0xf]  ;;  %v8406_v14 = vld [vmem:[%s13274_s3 + $0x134] sm:$0xf0]  ;;  %v8431_v15 = vld [vmem:[%s13274_s3 + $0x204] sm:$0xf] }
  0xf5   :  { %2392 = vmatpush.bf16.msrb.mxu0 %v6436_v46  ;;  %2405 = vmatpush.bf16.msrb.mxu1 %v6564_v50  ;;  %v1545_v23 = vadd.f32 %v1541_v16, %v10324_v59  ;;  %v8459_v46 = vld [vmem:[%s13274_s3 + $0x2e4] sm:$0xf]  ;;  %v6407_v16 = vld [vmem:[%s13274_s3 + $0x28] sm:$0xf] }
  0xf6   :  { %v6756_v50 = vor.u32 %v8459_v46, %v6753_v48  ;;  %2376 = vmatpush.bf16.msra.mxu3 %v6864_v47  ;;  %v6408_v35 = vor.u32 %v8374_v17, %v6407_v16  ;;  %v8481_v48 = vld [vmem:[%s13274_s3 + $0x38c] sm:$0xf0]  ;;  %v6641_v47 = vld [vmem:[%s13274_s3 + $0x210] sm:$0xf0] }
  0xf7   :  { %v1549_v30 = vmul.f32 0.7978846, %v1545_v23  ;;  %v8447_v23 = vld [vmem:[%s13274_s3 + $0x284] sm:$0xf]  ;;  %v6644_v16 = vor.u32 %v8431_v15, %v6641_v47  ;;  %v6393_v15 = vld [vmem:[%s13274_s3 + $0x18] sm:$0xf0] }
  0xf8   :  { %2414 = vmatpush.bf16.msrb.mxu2 %v6756_v50  ;;  %v6708_v29 = vor.u32 %v8447_v23, %v6705_v24  ;;  %v8414_v50 = vld [vmem:[%s13274_s3 + $0x174] sm:$0xf0]  ;;  %v8384_v23 = vld [vmem:[%s13274_s3 + $0x8c] sm:$0xf]  ;;  %v6457_v24 = vld [vmem:[%s13274_s3 + $0x98] sm:$0xf0] }
  0xf9   :  { %2393 = vmatpush.bf16.msrb.mxu0 %v6420_v20  ;;  %2406 = vmatpush.bf16.msrb.mxu1 %v6548_v61  ;;  %8820 = vtanh.f32 %v1549_v30  ;;  %v6632_v61 = vor.u32 %v8430_v54, %v6631_v53  ;;  %v8485_v30 = vld [vmem:[%s13274_s3 + $0x3ac] sm:$0xf0]  ;;  %v6508_v54 = vor.u32 %v8396_v43, %v6505_v45 }
  0xfa   :  { %v6848_v34 = vor.u32 %v8485_v30, %v6847_v25  ;;  %v6519_v25 = vld [vmem:[%s13274_s3 + $0x108] sm:$0xf]  ;;  %v8428_v30 = vld [vmem:[%s13274_s3 + $0x1ec] sm:$0xf] }
  0xfc   :  { %2415 = vmatpush.bf16.msrb.mxu2 %v6740_v0  ;;  %2377 = vmatpush.bf16.msra.mxu3 %v6848_v34  ;;  %v8410_v0 = vld [vmem:[%s13274_s3 + $0x154] sm:$0xf0]  ;;  %v6460_v34 = vor.u32 %v8384_v23, %v6457_v24  ;;  %v8479_v23 = vld [vmem:[%s13274_s3 + $0x384] sm:$0xf]  ;;  %v6833_v24 = vld [vmem:[%s13274_s3 + $0x390] sm:$0xf0] }
  0xfd   :  { %2394 = vmatpush.bf16.msrb.mxu0 %v6404_v6  ;;  %2407 = vmatpush.bf16.msrb.mxu1 %v6532_v10  ;;  %v6423_v6 = vld [vmem:[%s13274_s3 + $0x48] sm:$0xf]  ;;  %v6721_v10 = vld [vmem:[%s13274_s3 + $0x2b0] sm:$0xf0] }
  0xfe   :  { %v6724_v44 = vor.u32 %v8451_v9, %v6721_v10  ;;  %v6424_v33 = vor.u32 %v8378_v7, %v6423_v6  ;;  %v8435_v6 = vld [vmem:[%s13274_s3 + $0x224] sm:$0xf]  ;;  %v6657_v7 = vld [vmem:[%s13274_s3 + $0x230] sm:$0xf0] }
  0xff   :  { %v8821_v49 = vpop.eup %8820  ;;  %v6660_v9 = vor.u32 %v8435_v6, %v6657_v7 }
 0x100   :  { %v1557_v52 = vadd.f32 1.0, %v8821_v49  ;;  %2416 = vmatpush.bf16.msrb.mxu2 %v6724_v44  ;;  %v6567_v49 = vld [vmem:[%s13274_s3 + $0x168] sm:$0xf] }
 0x101   :  { %2395 = vmatpush.bf16.msrb.mxu0 %v6388_v19  ;;  %2408 = vmatpush.bf16.msrb.mxu1 %v6516_v22  ;;  %v10425_v20 = vpop.f32.mrf.mxu0  ;;  %v10436_v63 = vpop.f32.mrf.mxu1  ;;  %v6568_v57 = vor.u32 %v8414_v50, %v6567_v49  ;;  %v6535_v44 = vld [vmem:[%s13274_s3 + $0x128] sm:$0xf]  ;;  %v8491_v49 = vld [vmem:[%s13274_s3 + $0x3e4] sm:$0xf]  ;;  %v6881_v50 = vld [vmem:[%s13274_s3 + $0x3f0] sm:$0xf0] }
 0x102   :  { %v1561_v56 = vmul.f32 %v1557_v52, %v1529_v51  ;;  %v6832_v51 = vor.u32 %v8481_v48, %v6831_v41  ;;  %v6392_v52 = vor.u32 %v8370_v38, %v6391_v36  ;;  %v1395_v4 = vadd.f32 %v10436_v63, %v10425_v20  ;;  %v6799_v20 = vld [vmem:[%s13274_s3 + $0x340] sm:$0xf]  ;;  %v8473_v63 = vld [vmem:[%s13274_s3 + $0x34c] sm:$0xf0]  ;;  %v8380_v36 = vld [vmem:[%s13274_s3 + $0x6c] sm:$0xf] }
 0x103   :  { %v6800_v13 = vor.u32 %v8473_v63, %v6799_v20  ;;  %v6767_v41 = vld [vmem:[%s13274_s3 + $0x300] sm:$0xf]  ;;  %v6585_v63 = vld [vmem:[%s13274_s3 + $0x198] sm:$0xf0] }
 0x104   :  { %2396 = vmatmul.bf16.vlgmr.msrb.gmra.mxu0 %v10263_v37  ;;  %v10438_v1 = vpack.c.bf16 %v1561_v56, %v1561_v56  ;;  %2417 = vmatpush.bf16.msrb.mxu2 %v6708_v29  ;;  %v6673_v56 = vld [vmem:[%s13274_s3 + $0x250] sm:$0xf0] }
 0x105   :  { %2440 = vmatpush.bf16.msra.mxu0 %v6504_v21  ;;  %2378 = vmatpush.bf16.msra.mxu3 %v6832_v51  ;;  %v6676_v62 = vor.u32 %v8439_v55, %v6673_v56  ;;  %v8420_v56 = vld [vmem:[%s13274_s3 + $0x1ac] sm:$0xf] }
 0x106   :  { %2357 = vmatmul.bf16.vlgmr.msra.gmra.mxu1 %v10438_v1  ;;  %v6604_v7 = vor.u32 %v8420_v56, %v6601_v58  ;;  %v6743_v56 = vld [vmem:[%s13274_s3 + $0x2c8] sm:$0xf] }
 0x107   :  { %2453 = vmatpush.bf16.msra.mxu1 %v6632_v61  ;;  %v6551_v61 = vld [vmem:[%s13274_s3 + $0x148] sm:$0xf] }
 0x108   :  { %v6552_v10 = vor.u32 %v8410_v0, %v6551_v61 }
 0x109   :  { %2441 = vmatpush.bf16.msra.mxu0 %v6488_v31  ;;  %v1383_v21 = vpop.f32.mrf.mxu0  ;;  %v10482_v22 = vpop.f32.mrf.mxu3  ;;  %v6583_v31 = vld [vmem:[%s13274_s3 + $0x188] sm:$0xf] }
 0x10a   :  { %v10480_v19 = vpop.f32.mrf.mxu2  ;;  %v1396_v27 = vpop.f32.mrf.mxu1  ;;  %v6584_v42 = vor.u32 %v8418_v32, %v6583_v31  ;;  %v6536_v21 = vor.u32 %v8406_v14, %v6535_v44  ;;  %v6633_v31 = vld [vmem:[%s13274_s3 + $0x1f8] sm:$0xf0]  ;;  %v8368_v14 = vld [vmem:[%s13274_s3 + $0xc] sm:$0xf] }
 0x10b   :  { %2454 = vmatpush.bf16.msra.mxu1 %v6616_v12  ;;  %v6473_v12 = vld [vmem:[%s13274_s3 + $0xb8] sm:$0xf0]  ;;  %v8469_v27 = vld [vmem:[%s13274_s3 + $0x32c] sm:$0xf0] }
 0x10c   :  { %v6476_v17 = vor.u32 %v8388_v11, %v6473_v12  ;;  %v8483_v11 = vld [vmem:[%s13274_s3 + $0x3a4] sm:$0xf]  ;;  %v6849_v12 = vld [vmem:[%s13274_s3 + $0x3b0] sm:$0xf0] }
 0x10d   :  { %2442 = vmatpush.bf16.msra.mxu0 %v6472_v39  ;;  %v8443_v39 = vld [vmem:[%s13274_s3 + $0x264] sm:$0xf] }
 0x10e   :  { %v6692_v46 = vor.u32 %v8443_v39, %v6689_v40  ;;  %v6636_v39 = vor.u32 %v8428_v30, %v6633_v31  ;;  %v8424_v40 = vld [vmem:[%s13274_s3 + $0x1cc] sm:$0xf]  ;;  %v6553_v31 = vld [vmem:[%s13274_s3 + $0x158] sm:$0xf0] }
 0x10f   :  { %2455 = vmatpush.bf16.msra.mxu1 %v6600_v26  ;;  %v6783_v26 = vld [vmem:[%s13274_s3 + $0x320] sm:$0xf]  ;;  %v8408_v30 = vld [vmem:[%s13274_s3 + $0x14c] sm:$0xf] }
 0x110   :  { %2418 = vmatpush.bf16.msrb.mxu2 %v6692_v46  ;;  %v6784_v32 = vor.u32 %v8469_v27, %v6783_v26  ;;  %v6617_v46 = vld [vmem:[%s13274_s3 + $0x1d8] sm:$0xf0] }
 0x111   :  { %2443 = vmatpush.bf16.msra.mxu0 %v6456_v18  ;;  %v1422_v18 = vpop.f32.mrf.mxu3  ;;  %v6620_v55 = vor.u32 %v8424_v40, %v6617_v46  ;;  %v8471_v40 = vld [vmem:[%s13274_s3 + $0x344] sm:$0xf] }
 0x112   :  { %v1409_v53 = vpop.f32.mrf.mxu2  ;;  %v6425_v18 = vld [vmem:[%s13274_s3 + $0x58] sm:$0xf0] }
 0x113   :  { %2456 = vmatpush.bf16.msra.mxu1 %v6584_v42  ;;  %v8465_v42 = vld [vmem:[%s13274_s3 + $0x30c] sm:$0xf0] }
 0x114   :  { %2419 = vmatpush.bf16.msrb.mxu2 %v6676_v62  ;;  %v6768_v48 = vor.u32 %v8465_v42, %v6767_v41  ;;  %v6865_v62 = vld [vmem:[%s13274_s3 + $0x3d0] sm:$0xf0] }
 0x115   :  { %2444 = vmatpush.bf16.msra.mxu0 %v6440_v5  ;;  %v6816_v5 = vor.u32 %v8477_v3, %v6815_v2  ;;  %v8372_v2 = vld [vmem:[%s13274_s3 + $0x2c] sm:$0xf]  ;;  %v6409_v3 = vld [vmem:[%s13274_s3 + $0x38] sm:$0xf0]  ;;  %v6801_v41 = vld [vmem:[%s13274_s3 + $0x350] sm:$0xf0] }
 0x116   :  { %2409 = vmatmul.bf16.vlgmr.msrb.gmra.mxu1 %v10438_v1  ;;  %v6412_v44 = vor.u32 %v8372_v2, %v6409_v3  ;;  %v6804_v46 = vor.u32 %v8471_v40, %v6801_v41  ;;  %v8463_v3 = vld [vmem:[%s13274_s3 + $0x304] sm:$0xf]  ;;  %v8460_v40 = vld [vmem:[%s13274_s3 + $0x2ec] sm:$0xf]  ;;  %v6761_v41 = vld [vmem:[%s13274_s3 + $0x2f8] sm:$0xf0] }
 0x117   :  { %2457 = vmatpush.bf16.msra.mxu1 %v6568_v57  ;;  %2379 = vmatpush.bf16.msra.mxu3 %v6816_v5  ;;  %v6868_v5 = vor.u32 %v8487_v60, %v6865_v62 }
 0x118   :  { %2420 = vmatpush.bf16.msrb.mxu2 %v6660_v9  ;;  %v8416_v9 = vld [vmem:[%s13274_s3 + $0x18c] sm:$0xf] }
 0x119   :  { %2445 = vmatpush.bf16.msra.mxu0 %v6424_v33  ;;  %v1408_v33 = vadd.f32 %v10480_v19, %v1395_v4  ;;  %v8402_v19 = vld [vmem:[%s13274_s3 + $0x114] sm:$0xf0] }
 0x11b   :  { %2458 = vmatpush.bf16.msra.mxu1 %v6552_v10  ;;  %2380 = vmatpush.bf16.msra.mxu3 %v6800_v13  ;;  %v1421_v29 = vadd.f32 %v10482_v22, %v1408_v33  ;;  %v6441_v22 = vld [vmem:[%s13274_s3 + $0x78] sm:$0xf0]  ;;  %v6852_v13 = vor.u32 %v8483_v11, %v6849_v12  ;;  %v6588_v33 = vor.u32 %v8416_v9, %v6585_v63  ;;  %v8450_v63 = vld [vmem:[%s13274_s3 + $0x294] sm:$0xf0] }
 0x11c   :  { %2421 = vmatpush.bf16.msrb.mxu2 %v6644_v16  ;;  %v6444_v51 = vor.u32 %v8380_v36, %v6441_v22  ;;  %v8412_v16 = vld [vmem:[%s13274_s3 + $0x16c] sm:$0xf]  ;;  %v6556_v36 = vor.u32 %v8408_v30, %v6553_v31  ;;  %v8438_v30 = vld [vmem:[%s13274_s3 + $0x234] sm:$0xf0] }
 0x11d   :  { %2446 = vmatpush.bf16.msra.mxu0 %v6408_v35  ;;  %v6520_v35 = vor.u32 %v8402_v19, %v6519_v25  ;;  %v6396_v25 = vor.u32 %v8368_v14, %v6393_v15  ;;  %v6836_v19 = vor.u32 %v8479_v23, %v6833_v24  ;;  %v8404_v22 = vld [vmem:[%s13274_s3 + $0x12c] sm:$0xf]  ;;  %v8442_v23 = vld [vmem:[%s13274_s3 + $0x254] sm:$0xf0] }
 0x11f   :  { %2459 = vmatpush.bf16.msra.mxu1 %v6536_v21  ;;  %2381 = vmatpush.bf16.msra.mxu3 %v6784_v32  ;;  %v8475_v32 = vld [vmem:[%s13274_s3 + $0x364] sm:$0xf] }
 0x121   :  { %2447 = vmatpush.bf16.msra.mxu0 %v6392_v52  ;;  %v1433_v38 = vpop.f32.mrf.mxu0  ;;  %v1446_v45 = vpop.f32.mrf.mxu1  ;;  %v6884_v52 = vor.u32 %v8491_v49, %v6881_v50  ;;  %v8400_v50 = vld [vmem:[%s13274_s3 + $0x10c] sm:$0xf] }
 0x122   :  { %v1434_v43 = vadd.f32 %v1433_v38, %v1421_v29 }
 0x123   :  { %2460 = vmatpush.bf16.msra.mxu1 %v6520_v35  ;;  %2382 = vmatpush.bf16.msra.mxu3 %v6768_v48 }
 0x124   :  { %2448 = vmatmul.bf16.vlgmr.msra.gmra.mxu0 %v10263_v37  ;;  %v10640_v53 = vadd.f32 %v1446_v45, %v1434_v43  ;;  %v8462_v45 = vld [vmem:[%s13274_s3 + $0x2f4] sm:$0xf0] }
 0x125   :  { %2492 = vmatpush.bf16.msrb.mxu0 %v6508_v54  ;;  %v8376_v54 = vld [vmem:[%s13274_s3 + $0x4c] sm:$0xf] }
 0x126   :  { %v1534_v57 = vmul.f32 0.044715, %v10640_v53  ;;  %2461 = vmatmul.bf16.vlgmr.msra.gmra.mxu1 %v10438_v1  ;;  %v6428_v61 = vor.u32 %v8376_v54, %v6425_v18  ;;  %v1530_v42 = vmul.f32 0.5, %v10640_v53  ;;  %v8467_v54 = vld [vmem:[%s13274_s3 + $0x324] sm:$0xf] }
 0x127   :  { %2505 = vmatpush.bf16.msrb.mxu1 %v6636_v39  ;;  %2427 = vmatpush.bf16.msrb.mxu3 %v6884_v52  ;;  %v6537_v39 = vld [vmem:[%s13274_s3 + $0x138] sm:$0xf0]  ;;  %v6785_v18 = vld [vmem:[%s13274_s3 + $0x330] sm:$0xf0] }
 0x128   :  { %v1538_v4 = vmul.f32 %v1534_v57, %v10640_v53  ;;  %v6540_v49 = vor.u32 %v8404_v22, %v6537_v39  ;;  %v6521_v52 = vld [vmem:[%s13274_s3 + $0x118] sm:$0xf0]  ;;  %v8458_v57 = vld [vmem:[%s13274_s3 + $0x2d4] sm:$0xf0]  ;;  %v6788_v58 = vor.u32 %v8467_v54, %v6785_v18  ;;  %v6647_v22 = vld [vmem:[%s13274_s3 + $0x208] sm:$0xf] }
 0x129   :  { %2493 = vmatpush.bf16.msrb.mxu0 %v6492_v8  ;;  %v10671_v6 = vpop.f32.mrf.mxu3  ;;  %v1435_v8 = vpop.f32.mrf.mxu0  ;;  %v6524_v60 = vor.u32 %v8400_v50, %v6521_v52  ;;  %v6744_v2 = vor.u32 %v8458_v57, %v6743_v56  ;;  %v6975_v50 = vld [vmem:[%s13275_s6 + $0xa0] sm:$0xf] }
 0x12a   :  { %v10662_v0 = vpop.f32.mrf.mxu2  ;;  %v1448_v20 = vpop.f32.mrf.mxu1  ;;  %v1542_v10 = vmul.f32 %v1538_v4, %v10640_v53  ;;  %v6769_v4 = vld [vmem:[%s13274_s3 + $0x310] sm:$0xf0] }
 0x12b   :  { %2506 = vmatpush.bf16.msrb.mxu1 %v6620_v55  ;;  %2428 = vmatpush.bf16.msrb.mxu3 %v6868_v5  ;;  %v6711_v20 = vld [vmem:[%s13274_s3 + $0x288] sm:$0xf] }
 0x12c   :  { %v1546_v47 = vadd.f32 %v1542_v10, %v10640_v53  ;;  %v6712_v14 = vor.u32 %v8450_v63, %v6711_v20  ;;  %v8448_v63 = vld [vmem:[%s13274_s3 + $0x28c] sm:$0xf] }
 0x12d   :  { %2494 = vmatpush.bf16.msrb.mxu0 %v6476_v17  ;;  %v6569_v17 = vld [vmem:[%s13274_s3 + $0x178] sm:$0xf0] }
 0x12e   :  { %v1550_v21 = vmul.f32 0.7978846, %v1546_v47  ;;  %v6572_v29 = vor.u32 %v8412_v16, %v6569_v17  ;;  %v6695_v47 = vld [vmem:[%s13274_s3 + $0x268] sm:$0xf] }
 0x12f   :  { %2507 = vmatpush.bf16.msrb.mxu1 %v6604_v7  ;;  %2429 = vmatpush.bf16.msrb.mxu3 %v6852_v13  ;;  %v6727_v7 = vld [vmem:[%s13274_s3 + $0x2a8] sm:$0xf] }
 0x130   :  { %8822 = vtanh.f32 %v1550_v21  ;;  %v6679_v21 = vld [vmem:[%s13274_s3 + $0x248] sm:$0xf] }
 0x131   :  { %2495 = vmatpush.bf16.msrb.mxu0 %v6460_v34  ;;  %v1474_v27 = vpop.f32.mrf.mxu3  ;;  %v6817_v34 = vld [vmem:[%s13274_s3 + $0x370] sm:$0xf0] }
 0x132   :  { %v1461_v26 = vpop.f32.mrf.mxu2  ;;  %v6820_v35 = vor.u32 %v8475_v32, %v6817_v34  ;;  %v7007_v32 = vld [vmem:[%s13275_s6 + $0xe0] sm:$0xf] }
 0x133   :  { %2508 = vmatpush.bf16.msrb.mxu1 %v6588_v33  ;;  %2430 = vmatpush.bf16.msrb.mxu3 %v6836_v19  ;;  %v8446_v33 = vld [vmem:[%s13274_s3 + $0x274] sm:$0xf0]  ;;  %v6680_v26 = vor.u32 %v8442_v23, %v6679_v21  ;;  %v8505_v21 = vld [vmem:[%s13275_s6 + $0x4c] sm:$0xf0] }
 0x135   :  { %2496 = vmatpush.bf16.msrb.mxu0 %v6444_v51 }
 0x136   :  { %v8823_v38 = vpop.eup %8822 }
 0x137   :  { %2509 = vmatpush.bf16.msrb.mxu1 %v6572_v29  ;;  %2431 = vmatpush.bf16.msrb.mxu3 %v6820_v35  ;;  %v1558_v43 = vadd.f32 1.0, %v8823_v38  ;;  %v6663_v29 = vld [vmem:[%s13274_s3 + $0x228] sm:$0xf]  ;;  %v8434_v38 = vld [vmem:[%s13274_s3 + $0x214] sm:$0xf0] }
 0x138   :  { %v6664_v34 = vor.u32 %v8438_v30, %v6663_v29  ;;  %v8482_v29 = vld [vmem:[%s13274_s3 + $0x394] sm:$0xf0] }
 0x139   :  { %2497 = vmatpush.bf16.msrb.mxu0 %v6428_v61  ;;  %v1562_v48 = vmul.f32 %v1558_v43, %v1530_v42  ;;  %v1473_v61 = vadd.f32 %v10671_v6, %v10662_v0  ;;  %v8454_v0 = vld [vmem:[%s13274_s3 + $0x2b4] sm:$0xf0]  ;;  %v6772_v6 = vor.u32 %v8463_v3, %v6769_v4  ;;  %v6991_v42 = vld [vmem:[%s13275_s6 + $0xc0] sm:$0xf]  ;;  %v6648_v43 = vor.u32 %v8434_v38, %v6647_v22  ;;  %v8513_v4 = vld [vmem:[%s13275_s6 + $0x8c] sm:$0xf0] }
 0x13a   :  { %v6728_v9 = vor.u32 %v8454_v0, %v6727_v7  ;;  %v6959_v3 = vld [vmem:[%s13275_s6 + $0x80] sm:$0xf] }
 0x13b   :  { %2510 = vmatpush.bf16.msrb.mxu1 %v6556_v36  ;;  %2432 = vmatpush.bf16.msrb.mxu3 %v6804_v46  ;;  %v10749_v55 = vpack.c.bf16 %v1562_v48, %v1562_v48  ;;  %v8525_v36 = vld [vmem:[%s13275_s6 + $0xec] sm:$0xf0]  ;;  %v8456_v48 = vld [vmem:[%s13274_s3 + $0x2cc] sm:$0xf]  ;;  %v6960_v7 = vor.u32 %v8513_v4, %v6959_v3  ;;  %v7263_v4 = vld [vmem:[%s13275_s6 + $0x2e0] sm:$0xf] }
 0x13c   :  { %v7008_v39 = vor.u32 %v8525_v36, %v7007_v32  ;;  %v8440_v32 = vld [vmem:[%s13274_s3 + $0x24c] sm:$0xf]  ;;  %v8501_v36 = vld [vmem:[%s13275_s6 + $0x2c] sm:$0xf0] }
 0x13d   :  { %2498 = vmatpush.bf16.msrb.mxu0 %v6412_v44  ;;  %2370 = vmatmul.bf16.vlgmr.msra.gmra.mxu2 %v10749_v55 }
 0x13f   :  { %2511 = vmatpush.bf16.msrb.mxu1 %v6540_v49  ;;  %2433 = vmatpush.bf16.msrb.mxu3 %v6788_v58  ;;  %v6745_v49 = vld [vmem:[%s13274_s3 + $0x2d8] sm:$0xf0]  ;;  %v6887_v58 = vld [vmem:[%s13274_s3 + $0x3e8] sm:$0xf] }
 0x140   :  { %v6748_v18 = vor.u32 %v8456_v48, %v6745_v49  ;;  %v6895_v48 = vld [vmem:[%s13275_s6] sm:$0xf]  ;;  %v8497_v49 = vld [vmem:[%s13275_s6 + $0xc] sm:$0xf0] }
 0x141   :  { %2499 = vmatpush.bf16.msrb.mxu0 %v6396_v25  ;;  %v1485_v62 = vpop.f32.mrf.mxu0  ;;  %v1498_v5 = vpop.f32.mrf.mxu1 }
 0x142   :  { %v1486_v8 = vadd.f32 %v1485_v62, %v1473_v61  ;;  %v8452_v61 = vld [vmem:[%s13274_s3 + $0x2ac] sm:$0xf]  ;;  %v6729_v62 = vld [vmem:[%s13274_s3 + $0x2b8] sm:$0xf0] }
 0x143   :  { %2512 = vmatpush.bf16.msrb.mxu1 %v6524_v60  ;;  %2434 = vmatpush.bf16.msrb.mxu3 %v6772_v6  ;;  %v8494_v60 = vld [vmem:[%s13274_s3 + $0x3f4] sm:$0xf0]  ;;  %v6732_v6 = vor.u32 %v8452_v61, %v6729_v62  ;;  %v8653_v61 = vld [vmem:[%s13275_s6 + $0x4ec] sm:$0xf0]  ;;  %v8432_v62 = vld [vmem:[%s13274_s3 + $0x20c] sm:$0xf] }
 0x144   :  { %2500 = vmatmul.bf16.vlgmr.msrb.gmra.mxu0 %v10263_v37  ;;  %v6759_v37 = vld [vmem:[%s13274_s3 + $0x2e8] sm:$0xf]  ;;  %v1499_v10 = vadd.f32 %v1498_v5, %v1486_v8  ;;  %v6888_v5 = vor.u32 %v8494_v60, %v6887_v58  ;;  %v7519_v60 = vld [vmem:[%s13275_s6 + $0x4e0] sm:$0xf] }
 0x145   :  { %v6760_v51 = vor.u32 %v8462_v45, %v6759_v37  ;;  %3835 = vmatpush.bf16.msra.mxu0 %v7008_v39  ;;  %v8521_v37 = vld [vmem:[%s13275_s6 + $0xcc] sm:$0xf0]  ;;  %v6764_v45 = vor.u32 %v8460_v40, %v6761_v41  ;;  %v6871_v8 = vld [vmem:[%s13274_s3 + $0x3c8] sm:$0xf]  ;;  %v7119_v39 = vld [vmem:[%s13275_s6 + $0x1c0] sm:$0xf]  ;;  %v7520_v3 = vor.u32 %v8653_v61, %v7519_v60 }
 0x146   :  { %2513 = vmatmul.bf16.vlgmr.msrb.gmra.mxu1 %v10438_v1  ;;  %v6696_v1 = vor.u32 %v8446_v33, %v6695_v47  ;;  %v6992_v46 = vor.u32 %v8521_v37, %v6991_v42  ;;  %v8486_v47 = vld [vmem:[%s13274_s3 + $0x3b4] sm:$0xf0]  ;;  %v8444_v33 = vld [vmem:[%s13274_s3 + $0x26c] sm:$0xf]  ;;  %v8553_v40 = vld [vmem:[%s13275_s6 + $0x1cc] sm:$0xf0] }
 0x147   :  { %2466 = vmatpush.bf16.msra.mxu2 %v6760_v51  ;;  %v8517_v51 = vld [vmem:[%s13275_s6 + $0xac] sm:$0xf0]  ;;  %v6823_v42 = vld [vmem:[%s13274_s3 + $0x368] sm:$0xf]  ;;  %v7120_v37 = vor.u32 %v8553_v40, %v7119_v39  ;;  %v7471_v40 = vld [vmem:[%s13275_s6 + $0x480] sm:$0xf] }
 0x148   :  { %v6976_v54 = vor.u32 %v8517_v51, %v6975_v50  ;;  %v6807_v51 = vld [vmem:[%s13274_s3 + $0x348] sm:$0xf]  ;;  %v7199_v61 = vld [vmem:[%s13275_s6 + $0x260] sm:$0xf] }
 0x149   :  { %v1511_v11 = vpop.f32.mrf.mxu2  ;;  %v1524_v44 = vpop.f32.mrf.mxu3  ;;  %3836 = vmatpush.bf16.msra.mxu0 %v6992_v46  ;;  %v6665_v46 = vld [vmem:[%s13274_s3 + $0x238] sm:$0xf0] }
 0x14a   :  { %v1512_v12 = vadd.f32 %v1511_v11, %v1499_v10  ;;  %v1487_v13 = vpop.f32.mrf.mxu0  ;;  %v1500_v15 = vpop.f32.mrf.mxu1  ;;  %v6713_v10 = vld [vmem:[%s13274_s3 + $0x298] sm:$0xf0]  ;;  %v6943_v11 = vld [vmem:[%s13275_s6 + $0x60] sm:$0xf] }
 0x14b   :  { %2467 = vmatpush.bf16.msra.mxu2 %v6744_v2  ;;  %v6855_v15 = vld [vmem:[%s13274_s3 + $0x3a8] sm:$0xf] }
 0x14c   :  { %v10785_v16 = vadd.f32 %v1524_v44, %v1512_v12  ;;  %v8509_v12 = vld [vmem:[%s13275_s6 + $0x6c] sm:$0xf0]  ;;  %v6856_v23 = vor.u32 %v8486_v47, %v6855_v15  ;;  %v7247_v15 = vld [vmem:[%s13275_s6 + $0x2c0] sm:$0xf] }
 0x14d   :  { %2422 = vmatmul.bf16.vlgmr.msrb.gmra.mxu2 %v10749_v55  ;;  %3837 = vmatpush.bf16.msra.mxu0 %v6976_v54  ;;  %v6944_v13 = vor.u32 %v8509_v12, %v6943_v11  ;;  %v7103_v54 = vld [vmem:[%s13275_s6 + $0x1a0] sm:$0xf]  ;;  %v8470_v11 = vld [vmem:[%s13274_s3 + $0x334] sm:$0xf0]  ;;  %v8585_v47 = vld [vmem:[%s13275_s6 + $0x2cc] sm:$0xf0] }
 0x14e   :  { %v1535_v17 = vmul.f32 0.044715, %v10785_v16  ;;  %v1531_v56 = vmul.f32 0.5, %v10785_v16 }
 0x14f   :  { %2468 = vmatpush.bf16.msra.mxu2 %v6728_v9  ;;  %v8490_v9 = vld [vmem:[%s13274_s3 + $0x3d4] sm:$0xf0] }
 0x150   :  { %v1539_v24 = vmul.f32 %v1535_v17, %v10785_v16  ;;  %v6872_v44 = vor.u32 %v8490_v9, %v6871_v8  ;;  %v6697_v17 = vld [vmem:[%s13274_s3 + $0x278] sm:$0xf0]  ;;  %v8545_v8 = vld [vmem:[%s13275_s6 + $0x18c] sm:$0xf0]  ;;  %v7503_v9 = vld [vmem:[%s13275_s6 + $0x4c0] sm:$0xf] }
 0x151   :  { %v1513_v25 = vpop.f32.mrf.mxu2  ;;  %v1526_v19 = vpop.f32.mrf.mxu3  ;;  %3838 = vmatpush.bf16.msra.mxu0 %v6960_v7 }
 0x152   :  { %v1543_v27 = vmul.f32 %v1539_v24, %v10785_v16  ;;  %v7135_v25 = vld [vmem:[%s13275_s6 + $0x1e0] sm:$0xf]  ;;  %v8557_v19 = vld [vmem:[%s13275_s6 + $0x1ec] sm:$0xf0] }
 0x153   :  { %2469 = vmatpush.bf16.msra.mxu2 %v6712_v14  ;;  %v6716_v14 = vor.u32 %v8448_v63, %v6713_v10  ;;  %v7136_v30 = vor.u32 %v8557_v19, %v7135_v25  ;;  %v6791_v10 = vld [vmem:[%s13274_s3 + $0x328] sm:$0xf]  ;;  %v8645_v19 = vld [vmem:[%s13275_s6 + $0x4ac] sm:$0xf0] }
 0x154   :  { %v1547_v31 = vadd.f32 %v1543_v27, %v10785_v16  ;;  %v6839_v27 = vld [vmem:[%s13274_s3 + $0x388] sm:$0xf] }
 0x155   :  { %3839 = vmatpush.bf16.msra.mxu0 %v6944_v13  ;;  %3848 = vmatpush.bf16.msra.mxu1 %v7136_v30  ;;  %v6840_v22 = vor.u32 %v8482_v29, %v6839_v27  ;;  %v6889_v27 = vld [vmem:[%s13274_s3 + $0x3f8] sm:$0xf0]  ;;  %v7248_v29 = vor.u32 %v8585_v47, %v7247_v15  ;;  %v8569_v15 = vld [vmem:[%s13275_s6 + $0x24c] sm:$0xf0] }
 0x156   :  { %v1551_v35 = vmul.f32 0.7978846, %v1547_v31 }
 0x157   :  { %2470 = vmatpush.bf16.msra.mxu2 %v6696_v1  ;;  %v6927_v1 = vld [vmem:[%s13275_s6 + $0x40] sm:$0xf] }
 0x158   :  { %8824 = vtanh.f32 %v1551_v35  ;;  %v6928_v24 = vor.u32 %v8505_v21, %v6927_v1  ;;  %v6911_v35 = vld [vmem:[%s13275_s6 + $0x20] sm:$0xf]  ;;  %v8541_v1 = vld [vmem:[%s13275_s6 + $0x16c] sm:$0xf0] }
 0x159   :  { %v6912_v38 = vor.u32 %v8501_v36, %v6911_v35  ;;  %3849 = vmatpush.bf16.msra.mxu1 %v7120_v37  ;;  %v7487_v21 = vld [vmem:[%s13275_s6 + $0x4a0] sm:$0xf] }
 0x15a   :  { %3840 = vmatpush.bf16.msra.mxu0 %v6928_v24  ;;  %v8466_v24 = vld [vmem:[%s13274_s3 + $0x314] sm:$0xf0]  ;;  %v7488_v30 = vor.u32 %v8645_v19, %v7487_v21  ;;  %v7055_v36 = vld [vmem:[%s13275_s6 + $0x140] sm:$0xf]  ;;  %v8681_v21 = vld [vmem:[%s13275_s6 + $0x5cc] sm:$0xf0] }
 0x15b   :  { %2471 = vmatpush.bf16.msra.mxu2 %v6680_v26  ;;  %v6700_v26 = vor.u32 %v8444_v33, %v6697_v17  ;;  %v6792_v33 = vor.u32 %v8470_v11, %v6791_v10  ;;  %v7071_v17 = vld [vmem:[%s13275_s6 + $0x160] sm:$0xf]  ;;  %v8480_v10 = vld [vmem:[%s13274_s3 + $0x38c] sm:$0xf]  ;;  %v6841_v11 = vld [vmem:[%s13274_s3 + $0x398] sm:$0xf0] }
 0x15c   :  { %v7072_v25 = vor.u32 %v8541_v1, %v7071_v17  ;;  %v8629_v17 = vld [vmem:[%s13275_s6 + $0x42c] sm:$0xf0]  ;;  %v7631_v1 = vld [vmem:[%s13275_s6 + $0x5c0] sm:$0xf] }
 0x15e   :  { %v8825_v52 = vpop.eup %8824  ;;  %3841 = vmatpush.bf16.msra.mxu0 %v6912_v38 }
 0x15f   :  { %2472 = vmatpush.bf16.msra.mxu2 %v6664_v34  ;;  %v1559_v57 = vadd.f32 1.0, %v8825_v52  ;;  %v6681_v34 = vld [vmem:[%s13274_s3 + $0x258] sm:$0xf0]  ;;  %v6896_v52 = vor.u32 %v8497_v49, %v6895_v48  ;;  %v7039_v48 = vld [vmem:[%s13275_s6 + $0x120] sm:$0xf] }
 0x160   :  { %v6684_v41 = vor.u32 %v8440_v32, %v6681_v34  ;;  %v7231_v32 = vld [vmem:[%s13275_s6 + $0x2a0] sm:$0xf]  ;;  %v8581_v34 = vld [vmem:[%s13275_s6 + $0x2ac] sm:$0xf0] }
 0x161   :  { %v1563_v2 = vmul.f32 %v1559_v57, %v1531_v56  ;;  %v10868_v20 = vpop.f32.mrf.mxu0  ;;  %v8474_v57 = vld [vmem:[%s13274_s3 + $0x354] sm:$0xf0]  ;;  %v8533_v49 = vld [vmem:[%s13275_s6 + $0x12c] sm:$0xf0] }
 0x162   :  { %3842 = vmatpush.bf16.msra.mxu0 %v6896_v52  ;;  %v6808_v7 = vor.u32 %v8474_v57, %v6807_v51  ;;  %v7040_v51 = vor.u32 %v8533_v49, %v7039_v48  ;;  %v7455_v52 = vld [vmem:[%s13275_s6 + $0x460] sm:$0xf]  ;;  %v7265_v48 = vld [vmem:[%s13275_s6 + $0x2f0] sm:$0xf0]  ;;  %v8523_v49 = vld [vmem:[%s13275_s6 + $0xe4] sm:$0xf] }
 0x163   :  { %2473 = vmatpush.bf16.msra.mxu2 %v6648_v43  ;;  %v10860_v0 = vpack.c.bf16 %v1563_v2, %v1563_v2  ;;  %v8478_v43 = vld [vmem:[%s13274_s3 + $0x374] sm:$0xf0]  ;;  %v6649_v2 = vld [vmem:[%s13274_s3 + $0x218] sm:$0xf0] }
 0x164   :  { %v6824_v50 = vor.u32 %v8478_v43, %v6823_v42  ;;  %v6652_v63 = vor.u32 %v8432_v62, %v6649_v2  ;;  %v6873_v42 = vld [vmem:[%s13274_s3 + $0x3d8] sm:$0xf0]  ;;  %v7232_v43 = vor.u32 %v8581_v34, %v7231_v32  ;;  %v8573_v62 = vld [vmem:[%s13275_s6 + $0x26c] sm:$0xf0]  ;;  %v7023_v2 = vld [vmem:[%s13275_s6 + $0x100] sm:$0xf] }
 0x165   :  { %2383 = vmatmul.bf16.vlgmr.msra.gmra.mxu3 %v10860_v0  ;;  %v7407_v32 = vld [vmem:[%s13275_s6 + $0x400] sm:$0xf]  ;;  %v8625_v34 = vld [vmem:[%s13275_s6 + $0x40c] sm:$0xf0] }
 0x166   :  { %2474 = vmatmul.bf16.vlgmr.msra.gmra.mxu2 %v10749_v55  ;;  %2479 = vmatpush.bf16.msra.mxu3 %v6888_v5  ;;  %v8589_v5 = vld [vmem:[%s13275_s6 + $0x2ec] sm:$0xf0] }
 0x167   :  { %2518 = vmatpush.bf16.msrb.mxu2 %v6764_v45  ;;  %v8436_v45 = vld [vmem:[%s13274_s3 + $0x22c] sm:$0xf]  ;;  %3887 = vmatpush.bf16.msrb.mxu0 %v7520_v3  ;;  %v7264_v13 = vor.u32 %v8589_v5, %v7263_v4  ;;  %v8529_v3 = vld [vmem:[%s13275_s6 + $0x10c] sm:$0xf0]  ;;  %v7439_v4 = vld [vmem:[%s13275_s6 + $0x440] sm:$0xf] }
 0x168   :  { %v6668_v56 = vor.u32 %v8436_v45, %v6665_v46  ;;  %v7215_v45 = vld [vmem:[%s13275_s6 + $0x280] sm:$0xf]  ;;  %v8577_v46 = vld [vmem:[%s13275_s6 + $0x28c] sm:$0xf0] }
 0x169   :  { %v2347_v31 = vpop.f32.mrf.mxu0  ;;  %v7216_v57 = vor.u32 %v8577_v46, %v7215_v45  ;;  %v8561_v45 = vld [vmem:[%s13275_s6 + $0x20c] sm:$0xf0] }
 0x16a   :  { %2480 = vmatpush.bf16.msra.mxu3 %v6872_v44  ;;  %v8649_v44 = vld [vmem:[%s13275_s6 + $0x4cc] sm:$0xf0] }
 0x16b   :  { %2519 = vmatpush.bf16.msrb.mxu2 %v6748_v18  ;;  %v8549_v18 = vld [vmem:[%s13275_s6 + $0x1ac] sm:$0xf0] }
 0x16c   :  { %v7104_v58 = vor.u32 %v8549_v18, %v7103_v54  ;;  %v8637_v54 = vld [vmem:[%s13275_s6 + $0x46c] sm:$0xf0]  ;;  %v8484_v18 = vld [vmem:[%s13274_s3 + $0x3ac] sm:$0xf] }
 0x16e   :  { %2481 = vmatpush.bf16.msra.mxu3 %v6856_v23  ;;  %3850 = vmatpush.bf16.msra.mxu1 %v7104_v58  ;;  %v6775_v23 = vld [vmem:[%s13274_s3 + $0x308] sm:$0xf]  ;;  %v7456_v58 = vor.u32 %v8637_v54, %v7455_v52  ;;  %v7599_v54 = vld [vmem:[%s13275_s6 + $0x580] sm:$0xf] }
 0x16f   :  { %2520 = vmatpush.bf16.msrb.mxu2 %v6732_v6  ;;  %v7087_v6 = vld [vmem:[%s13275_s6 + $0x180] sm:$0xf]  ;;  %v6776_v35 = vor.u32 %v8466_v24, %v6775_v23  ;;  %v8476_v23 = vld [vmem:[%s13274_s3 + $0x36c] sm:$0xf]  ;;  %v6825_v24 = vld [vmem:[%s13274_s3 + $0x378] sm:$0xf0] }
 0x170   :  { %v7088_v12 = vor.u32 %v8545_v8, %v7087_v6  ;;  %v8633_v6 = vld [vmem:[%s13275_s6 + $0x44c] sm:$0xf0]  ;;  %v7647_v8 = vld [vmem:[%s13275_s6 + $0x5e0] sm:$0xf] }
 0x172   :  { %2482 = vmatpush.bf16.msra.mxu3 %v6840_v22  ;;  %3851 = vmatpush.bf16.msra.mxu1 %v7088_v12  ;;  %v8537_v22 = vld [vmem:[%s13275_s6 + $0x14c] sm:$0xf0]  ;;  %v7200_v12 = vor.u32 %v8573_v62, %v7199_v61  ;;  %v7249_v61 = vld [vmem:[%s13275_s6 + $0x2d0] sm:$0xf0] }
 0x173   :  { %2521 = vmatpush.bf16.msrb.mxu2 %v6716_v14  ;;  %v7504_v14 = vor.u32 %v8649_v44, %v7503_v9  ;;  %v7056_v39 = vor.u32 %v8537_v22, %v7055_v36  ;;  %v8685_v9 = vld [vmem:[%s13275_s6 + $0x5ec] sm:$0xf0]  ;;  %v7440_v44 = vor.u32 %v8633_v6, %v7439_v4  ;;  %v6809_v36 = vld [vmem:[%s13274_s3 + $0x358] sm:$0xf0]  ;;  %v6993_v4 = vld [vmem:[%s13275_s6 + $0xd0] sm:$0xf0] }
 0x174   :  { %v7648_v47 = vor.u32 %v8685_v9, %v7647_v8  ;;  %v2665_v22 = vld.sshfl [vmem:[#allocation1] sm:$0xff pattern:$0x75316420]  ;;  %v8464_v8 = vld [vmem:[%s13274_s3 + $0x30c] sm:$0xf] }
 0x175   :  { %2435 = vmatmul.bf16.vlgmr.msrb.gmra.mxu3 %v10860_v0  ;;  %3888 = vmatpush.bf16.msrb.mxu0 %v7504_v14  ;;  %v7183_v14 = vld [vmem:[%s13275_s6 + $0x240] sm:$0xf] }
 0x176   :  { %2483 = vmatpush.bf16.msra.mxu3 %v6824_v50  ;;  %3852 = vmatpush.bf16.msra.mxu1 %v7072_v25  ;;  %v7184_v25 = vor.u32 %v8569_v15, %v7183_v14  ;;  %v7233_v14 = vld [vmem:[%s13275_s6 + $0x2b0] sm:$0xf0] }
 0x177   :  { %2522 = vmatpush.bf16.msrb.mxu2 %v6700_v26  ;;  %v8492_v26 = vld [vmem:[%s13274_s3 + $0x3ec] sm:$0xf] }
 0x178   :  { %v6892_v38 = vor.u32 %v8492_v26, %v6889_v27  ;;  %v7167_v26 = vld [vmem:[%s13275_s6 + $0x220] sm:$0xf]  ;;  %v8565_v27 = vld [vmem:[%s13275_s6 + $0x22c] sm:$0xf0] }
 0x179   :  { %3889 = vmatpush.bf16.msrb.mxu0 %v7488_v30  ;;  %v8472_v30 = vld [vmem:[%s13274_s3 + $0x34c] sm:$0xf] }
 0x17a   :  { %2484 = vmatpush.bf16.msra.mxu3 %v6808_v7  ;;  %3853 = vmatpush.bf16.msra.mxu1 %v7056_v39  ;;  %v7024_v7 = vor.u32 %v8529_v3, %v7023_v2  ;;  %v7168_v39 = vor.u32 %v8565_v27, %v7167_v26  ;;  %v6812_v52 = vor.u32 %v8472_v30, %v6809_v36  ;;  %v8519_v2 = vld [vmem:[%s13275_s6 + $0xc4] sm:$0xf]  ;;  %v7567_v27 = vld [vmem:[%s13275_s6 + $0x540] sm:$0xf] }
 0x17b   :  { %2523 = vmatpush.bf16.msrb.mxu2 %v6684_v41  ;;  %v8488_v41 = vld [vmem:[%s13274_s3 + $0x3cc] sm:$0xf]  ;;  %v8575_v30 = vld [vmem:[%s13275_s6 + $0x284] sm:$0xf] }
 0x17c   :  { %v6876_v50 = vor.u32 %v8488_v41, %v6873_v42  ;;  %v7615_v41 = vld [vmem:[%s13275_s6 + $0x5a0] sm:$0xf]  ;;  %v8677_v42 = vld [vmem:[%s13275_s6 + $0x5ac] sm:$0xf0] }
 0x17d   :  { %v7616_v46 = vor.u32 %v8677_v42, %v7615_v41  ;;  %v7551_v41 = vld [vmem:[%s13275_s6 + $0x520] sm:$0xf]  ;;  %v8661_v42 = vld [vmem:[%s13275_s6 + $0x52c] sm:$0xf0] }
 0x17e   :  { %2485 = vmatpush.bf16.msra.mxu3 %v6792_v33  ;;  %3854 = vmatpush.bf16.msra.mxu1 %v7040_v51  ;;  %v7423_v33 = vld [vmem:[%s13275_s6 + $0x420] sm:$0xf] }
 0x17f   :  { %2524 = vmatpush.bf16.msrb.mxu2 %v6668_v56  ;;  %v6857_v56 = vld [vmem:[%s13274_s3 + $0x3b8] sm:$0xf0]  ;;  %v7424_v19 = vor.u32 %v8629_v17, %v7423_v33  ;;  %v8621_v33 = vld [vmem:[%s13275_s6 + $0x3ec] sm:$0xf0]  ;;  %v6996_v17 = vor.u32 %v8519_v2, %v6993_v4  ;;  %v7185_v2 = vld [vmem:[%s13275_s6 + $0x250] sm:$0xf0] }
 0x180   :  { %v6860_v5 = vor.u32 %v8484_v18, %v6857_v56  ;;  %v8673_v18 = vld [vmem:[%s13275_s6 + $0x58c] sm:$0xf0]  ;;  %v8583_v56 = vld [vmem:[%s13275_s6 + $0x2c4] sm:$0xf] }
 0x181   :  { %v11028_v31 = vpop.f32.mrf.mxu0  ;;  %v7600_v3 = vor.u32 %v8673_v18, %v7599_v54  ;;  %v8507_v54 = vld [vmem:[%s13275_s6 + $0x64] sm:$0xf]  ;;  %v6945_v18 = vld [vmem:[%s13275_s6 + $0x70] sm:$0xf0] }
 0x182   :  { %2486 = vmatpush.bf16.msra.mxu3 %v6776_v35  ;;  %3855 = vmatpush.bf16.msra.mxu1 %v7024_v7  ;;  %v6828_v35 = vor.u32 %v8476_v23, %v6825_v24  ;;  %v2666_v7 = vld.sshfl [vmem:[#allocation1 + $0x8] sm:$0xff pattern:$0x75316420]  ;;  %v2667_v24 = vld.sshfl [vmem:[#allocation1 + $0x10] sm:$0xff pattern:$0x75316420]  ;;  %v6948_v4 = vor.u32 %v8507_v54, %v6945_v18 }
 0x183   :  { %2525 = vmatpush.bf16.msrb.mxu2 %v6652_v63  ;;  %v2358_v63 = vpop.f32.mrf.mxu1  ;;  %v11209_v9 = vpack.c.bf16 %v2666_v7, %v2666_v7  ;;  %v8607_v54 = vld [vmem:[%s13275_s6 + $0x384] sm:$0xf]  ;;  %v7345_v18 = vld [vmem:[%s13275_s6 + $0x390] sm:$0xf0] }
 0x185   :  { %2487 = vmatmul.bf16.vlgmr.msra.gmra.mxu3 %v10860_v0  ;;  %3856 = vmatmul.bf16.vlgmr.msra.gmra.mxu1 %v11209_v9 }
 0x186   :  { %2526 = vmatmul.bf16.vlgmr.msrb.gmra.mxu2 %v10749_v55  ;;  %v8641_v55 = vld [vmem:[%s13275_s6 + $0x48c] sm:$0xf0]  ;;  %2531 = vmatpush.bf16.msrb.mxu3 %v6892_v38 }
 0x187   :  { %3861 = vmatpush.bf16.msra.mxu2 %v7264_v13  ;;  %v7472_v37 = vor.u32 %v8641_v55, %v7471_v40  ;;  %v11111_v13 = vadd.f32 %v2358_v63, %v10868_v20  ;;  %v6844_v20 = vor.u32 %v8480_v10, %v6841_v11  ;;  %3900 = vmatpush.bf16.msrb.mxu1 %v7648_v47  ;;  %v7583_v63 = vld [vmem:[%s13275_s6 + $0x560] sm:$0xf]  ;;  %v8669_v10 = vld [vmem:[%s13275_s6 + $0x56c] sm:$0xf0] }
 0x188   :  { %v7408_v40 = vor.u32 %v8625_v34, %v7407_v32  ;;  %v11155_v55 = vpack.c.bf16 %v2665_v22, %v2665_v22  ;;  %v7391_v47 = vld [vmem:[%s13275_s6 + $0x3e0] sm:$0xf]  ;;  %v8617_v34 = vld [vmem:[%s13275_s6 + $0x3cc] sm:$0xf0]  ;;  %v7217_v22 = vld [vmem:[%s13275_s6 + $0x290] sm:$0xf0] }
 0x189   :  { %3890 = vmatpush.bf16.msrb.mxu0 %v7472_v37  ;;  %v2399_v60 = vpop.f32.mrf.mxu0  ;;  %v7151_v37 = vld [vmem:[%s13275_s6 + $0x200] sm:$0xf]  ;;  %v7392_v26 = vor.u32 %v8621_v33, %v7391_v47 }
 0x18a   :  { %2532 = vmatpush.bf16.msrb.mxu3 %v6876_v50  ;;  %v7009_v50 = vld [vmem:[%s13275_s6 + $0xf0] sm:$0xf0]  ;;  %3843 = vmatmul.bf16.vlgmr.msra.gmra.mxu0 %v11155_v55  ;;  %v7152_v60 = vor.u32 %v8561_v45, %v7151_v37  ;;  %v7375_v32 = vld [vmem:[%s13275_s6 + $0x3c0] sm:$0xf]  ;;  %v8571_v45 = vld [vmem:[%s13275_s6 + $0x264] sm:$0xf] }
 0x18b   :  { %3862 = vmatpush.bf16.msra.mxu2 %v7248_v29  ;;  %v7632_v29 = vor.u32 %v8681_v21, %v7631_v1  ;;  %v2360_v38 = vpop.f32.mrf.mxu1  ;;  %v7012_v62 = vor.u32 %v8523_v49, %v7009_v50  ;;  %v7584_v1 = vor.u32 %v8669_v10, %v7583_v63  ;;  %v7376_v37 = vor.u32 %v8617_v34, %v7375_v32  ;;  %v8613_v49 = vld [vmem:[%s13275_s6 + $0x3ac] sm:$0xf0]  ;;  %v7393_v63 = vld [vmem:[%s13275_s6 + $0x3f0] sm:$0xf0]  ;;  %v8559_v32 = vld [vmem:[%s13275_s6 + $0x204] sm:$0xf] }
 0x18c   :  { %v8511_v38 = vld [vmem:[%s13275_s6 + $0x84] sm:$0xf]  ;;  %v6929_v10 = vld [vmem:[%s13275_s6 + $0x50] sm:$0xf0] }
 0x18d   :  { %3891 = vmatpush.bf16.msrb.mxu0 %v7456_v58  ;;  %3901 = vmatpush.bf16.msrb.mxu1 %v7632_v29  ;;  %v6793_v58 = vld [vmem:[%s13274_s3 + $0x338] sm:$0xf0]  ;;  %v8665_v29 = vld [vmem:[%s13275_s6 + $0x54c] sm:$0xf0]  ;;  %v7153_v34 = vld [vmem:[%s13275_s6 + $0x210] sm:$0xf0] }
 0x18e   :  { %2533 = vmatpush.bf16.msrb.mxu3 %v6860_v5  ;;  %v7252_v5 = vor.u32 %v8583_v56, %v7249_v61  ;;  %v7568_v36 = vor.u32 %v8665_v29, %v7567_v27  ;;  %v8567_v61 = vld [vmem:[%s13275_s6 + $0x244] sm:$0xf]  ;;  %v6913_v27 = vld [vmem:[%s13275_s6 + $0x30] sm:$0xf0] }
 0x18f   :  { %3863 = vmatpush.bf16.msra.mxu2 %v7232_v43  ;;  %v8587_v43 = vld [vmem:[%s13275_s6 + $0x2e4] sm:$0xf] }
 0x190   :  { %v7268_v51 = vor.u32 %v8587_v43, %v7265_v48  ;;  %v7359_v48 = vld [vmem:[%s13275_s6 + $0x3a0] sm:$0xf] }
 0x191   :  { %3892 = vmatpush.bf16.msrb.mxu0 %v7440_v44  ;;  %3902 = vmatpush.bf16.msrb.mxu1 %v7616_v46  ;;  %v8579_v44 = vld [vmem:[%s13275_s6 + $0x2a4] sm:$0xf]  ;;  %v7201_v46 = vld [vmem:[%s13275_s6 + $0x270] sm:$0xf0] }
 0x192   :  { %2534 = vmatpush.bf16.msrb.mxu3 %v6844_v20  ;;  %v8515_v20 = vld [vmem:[%s13275_s6 + $0xa4] sm:$0xf]  ;;  %v7236_v23 = vor.u32 %v8579_v44, %v7233_v14  ;;  %v7204_v56 = vor.u32 %v8571_v45, %v7201_v46  ;;  %v2670_v44 = vld.sshfl [vmem:[#allocation1 + $0x28] sm:$0xff pattern:$0x75316420]  ;;  %v7156_v45 = vor.u32 %v8559_v32, %v7153_v34 }
 0x193   :  { %3864 = vmatpush.bf16.msra.mxu2 %v7216_v57  ;;  %v8468_v57 = vld [vmem:[%s13274_s3 + $0x32c] sm:$0xf]  ;;  %v2410_v11 = vpop.f32.mrf.mxu1  ;;  %v11331_v33 = vpack.c.bf16 %v2670_v44, %v2670_v44  ;;  %v8518_v44 = vld [vmem:[%s13275_s6 + $0xb4] sm:$0xf0]  ;;  %v6967_v32 = vld [vmem:[%s13275_s6 + $0x88] sm:$0xf] }
 0x194   :  { %v6796_v6 = vor.u32 %v8468_v57, %v6793_v58  ;;  %v11227_v15 = vadd.f32 %v2410_v11, %v11028_v31  ;;  %v6977_v31 = vld [vmem:[%s13275_s6 + $0xb0] sm:$0xf0]  ;;  %v7343_v57 = vld [vmem:[%s13275_s6 + $0x380] sm:$0xf]  ;;  %v8609_v58 = vld [vmem:[%s13275_s6 + $0x38c] sm:$0xf0]  ;;  %v7188_v11 = vor.u32 %v8567_v61, %v7185_v2 }
 0x195   :  { %3893 = vmatpush.bf16.msrb.mxu0 %v7424_v19  ;;  %3903 = vmatpush.bf16.msrb.mxu1 %v7600_v3  ;;  %v11244_v19 = vpack.c.bf16 %v2667_v24, %v2667_v24  ;;  %v2669_v3 = vld.sshfl [vmem:[#allocation1 + $0x20] sm:$0xff pattern:$0x75316420]  ;;  %v7344_v47 = vor.u32 %v8609_v58, %v7343_v57  ;;  %v8597_v58 = vld [vmem:[%s13275_s6 + $0x32c] sm:$0xf0] }
 0x196   :  { %2535 = vmatpush.bf16.msrb.mxu3 %v6828_v35  ;;  %v6980_v35 = vor.u32 %v8515_v20, %v6977_v31  ;;  %v7169_v20 = vld [vmem:[%s13275_s6 + $0x230] sm:$0xf0]  ;;  %v7327_v31 = vld [vmem:[%s13275_s6 + $0x360] sm:$0xf]  ;;  %v8514_v34 = vld [vmem:[%s13275_s6 + $0x94] sm:$0xf0] }
 0x197   :  { %3865 = vmatpush.bf16.msra.mxu2 %v7200_v12  ;;  %v6777_v12 = vld [vmem:[%s13274_s3 + $0x318] sm:$0xf0]  ;;  %v7295_v57 = vld [vmem:[%s13275_s6 + $0x320] sm:$0xf] }
 0x198   :  { %v7279_v2 = vld [vmem:[%s13275_s6 + $0x300] sm:$0xf] }
 0x199   :  { %3894 = vmatpush.bf16.msrb.mxu0 %v7408_v40  ;;  %3904 = vmatpush.bf16.msrb.mxu1 %v7584_v1  ;;  %v7220_v40 = vor.u32 %v8575_v30, %v7217_v22  ;;  %v8615_v1 = vld [vmem:[%s13275_s6 + $0x3c4] sm:$0xf] }
 0x19a   :  { %2536 = vmatpush.bf16.msrb.mxu3 %v6812_v52  ;;  %v8611_v22 = vld [vmem:[%s13275_s6 + $0x3a4] sm:$0xf] }
 0x19b   :  { %3866 = vmatpush.bf16.msra.mxu2 %v7184_v25  ;;  %v6780_v25 = vor.u32 %v8464_v8, %v6777_v12  ;;  %v2412_v43 = vpop.f32.mrf.mxu1  ;;  %v8619_v8 = vld [vmem:[%s13275_s6 + $0x3e4] sm:$0xf] }
 0x19c   :  { %v7396_v12 = vor.u32 %v8619_v8, %v7393_v63  ;;  %v8495_v43 = vld [vmem:[%s13275_s6 + $0x4] sm:$0xf]  ;;  %v7329_v63 = vld [vmem:[%s13275_s6 + $0x370] sm:$0xf0] }
 0x19d   :  { %3939 = vmatpush.bf16.msra.mxu0 %v7268_v51  ;;  %3905 = vmatpush.bf16.msrb.mxu1 %v7568_v36  ;;  %v7552_v51 = vor.u32 %v8661_v42, %v7551_v41  ;;  %v7311_v36 = vld [vmem:[%s13275_s6 + $0x340] sm:$0xf]  ;;  %v7015_v41 = vld [vmem:[%s13275_s6 + $0xe8] sm:$0xf]  ;;  %v8526_v42 = vld [vmem:[%s13275_s6 + $0xf4] sm:$0xf0] }
 0x19e   :  { %2537 = vmatpush.bf16.msrb.mxu3 %v6796_v6  ;;  %v11317_v6 = vpack.c.bf16 %v2669_v3, %v2669_v3  ;;  %v8647_v3 = vld [vmem:[%s13275_s6 + $0x4c4] sm:$0xf] }
 0x19f   :  { %3867 = vmatpush.bf16.msra.mxu2 %v7168_v39  ;;  %v6961_v39 = vld [vmem:[%s13275_s6 + $0x90] sm:$0xf0]  ;;  %v8603_v8 = vld [vmem:[%s13275_s6 + $0x364] sm:$0xf] }
 0x1a0   :  { %v6964_v50 = vor.u32 %v8511_v38, %v6961_v39  ;;  %3895 = vmatmul.bf16.vlgmr.msrb.gmra.mxu0 %v11317_v6  ;;  %v7361_v38 = vld [vmem:[%s13275_s6 + $0x3b0] sm:$0xf0]  ;;  %v8601_v39 = vld [vmem:[%s13275_s6 + $0x34c] sm:$0xf0] }
 0x1a1   :  { %v11238_v21 = vpop.f32.mrf.mxu0  ;;  %3940 = vmatpush.bf16.msra.mxu0 %v7252_v5  ;;  %3906 = vmatpush.bf16.msrb.mxu1 %v7552_v51  ;;  %v8503_v5 = vld [vmem:[%s13275_s6 + $0x44] sm:$0xf]  ;;  %v7364_v46 = vor.u32 %v8611_v22, %v7361_v38 }
 0x1a2   :  { %2538 = vmatpush.bf16.msrb.mxu3 %v6780_v25  ;;  %v6932_v24 = vor.u32 %v8503_v5, %v6929_v10  ;;  %v7377_v25 = vld [vmem:[%s13275_s6 + $0x3d0] sm:$0xf0]  ;;  %v6983_v10 = vld [vmem:[%s13275_s6 + $0xa8] sm:$0xf] }
 0x1a3   :  { %3868 = vmatpush.bf16.msra.mxu2 %v7152_v60  ;;  %v8657_v60 = vld [vmem:[%s13275_s6 + $0x50c] sm:$0xf0]  ;;  %v11329_v14 = vpop.f32.mrf.mxu1  ;;  %v7380_v30 = vor.u32 %v8615_v1, %v7377_v25  ;;  %v7332_v1 = vor.u32 %v8603_v8, %v7329_v63  ;;  %v6984_v25 = vor.u32 %v8518_v44, %v6983_v10  ;;  %v8631_v63 = vld [vmem:[%s13275_s6 + $0x444] sm:$0xf]  ;;  %v7441_v10 = vld [vmem:[%s13275_s6 + $0x450] sm:$0xf0] }
 0x1a5   :  { %3941 = vmatpush.bf16.msra.mxu0 %v7236_v23  ;;  %2539 = vmatmul.bf16.vlgmr.msrb.gmra.mxu3 %v10860_v0  ;;  %v7535_v0 = vld [vmem:[%s13275_s6 + $0x500] sm:$0xf]  ;;  %v8605_v23 = vld [vmem:[%s13275_s6 + $0x36c] sm:$0xf0] }
 0x1a6   :  { %3869 = vmatmul.bf16.vlgmr.msra.gmra.mxu2 %v11244_v19  ;;  %3874 = vmatpush.bf16.msra.mxu3 %v7392_v26  ;;  %v7536_v7 = vor.u32 %v8657_v60, %v7535_v0  ;;  %v8499_v26 = vld [vmem:[%s13275_s6 + $0x24] sm:$0xf]  ;;  %v8522_v60 = vld [vmem:[%s13275_s6 + $0xd4] sm:$0xf0] }
 0x1a7   :  { %3913 = vmatpush.bf16.msrb.mxu2 %v7012_v62  ;;  %v7360_v62 = vor.u32 %v8613_v49, %v7359_v48  ;;  %v8651_v48 = vld [vmem:[%s13275_s6 + $0x4e4] sm:$0xf]  ;;  %v7521_v49 = vld [vmem:[%s13275_s6 + $0x4f0] sm:$0xf0] }
 0x1a8   :  { %3907 = vmatpush.bf16.msrb.mxu1 %v7536_v7  ;;  %v7524_v61 = vor.u32 %v8651_v48, %v7521_v49  ;;  %v7296_v7 = vor.u32 %v8597_v58, %v7295_v57  ;;  %v8510_v48 = vld [vmem:[%s13275_s6 + $0x74] sm:$0xf0]  ;;  %v8547_v49 = vld [vmem:[%s13275_s6 + $0x1a4] sm:$0xf] }
 0x1a9   :  { %v2451_v52 = vpop.f32.mrf.mxu0  ;;  %3942 = vmatpush.bf16.msra.mxu0 %v7220_v40  ;;  %v6916_v40 = vor.u32 %v8499_v26, %v6913_v27  ;;  %v8599_v27 = vld [vmem:[%s13275_s6 + $0x344] sm:$0xf] }
 0x1aa   :  { %3875 = vmatpush.bf16.msra.mxu3 %v7376_v37  ;;  %v6897_v37 = vld [vmem:[%s13275_s6 + $0x10] sm:$0xf0]  ;;  %v7312_v52 = vor.u32 %v8601_v39, %v7311_v36  ;;  %v8591_v58 = vld [vmem:[%s13275_s6 + $0x304] sm:$0xf] }
 0x1ab   :  { %3914 = vmatpush.bf16.msrb.mxu2 %v6996_v17  ;;  %v8563_v17 = vld [vmem:[%s13275_s6 + $0x224] sm:$0xf]  ;;  %3908 = vmatmul.bf16.vlgmr.msrb.gmra.mxu1 %v11331_v33  ;;  %v2464_v51 = vpop.f32.mrf.mxu1  ;;  %v6900_v0 = vor.u32 %v8495_v43, %v6897_v37  ;;  %v7121_v36 = vld [vmem:[%s13275_s6 + $0x1d0] sm:$0xf0] }
 0x1ac   :  { %3952 = vmatpush.bf16.msra.mxu1 %v7396_v12  ;;  %v7172_v29 = vor.u32 %v8563_v17, %v7169_v20  ;;  %v8555_v12 = vld [vmem:[%s13275_s6 + $0x1e4] sm:$0xf]  ;;  %v2668_v17 = vld.sshfl [vmem:[#allocation1 + $0x18] sm:$0xff pattern:$0x75316420] }
 0x1ad   :  { %3943 = vmatpush.bf16.msra.mxu0 %v7204_v56  ;;  %v6999_v56 = vld [vmem:[%s13275_s6 + $0xc8] sm:$0xf]  ;;  %v11470_v39 = vpack.c.bf16 %v2668_v17, %v2668_v17  ;;  %v8595_v43 = vld [vmem:[%s13275_s6 + $0x324] sm:$0xf]  ;;  %v7297_v37 = vld [vmem:[%s13275_s6 + $0x330] sm:$0xf0] }
 0x1ae   :  { %3876 = vmatpush.bf16.msra.mxu3 %v7360_v62  ;;  %v7348_v62 = vor.u32 %v8607_v54, %v7345_v18  ;;  %v7000_v5 = vor.u32 %v8522_v60, %v6999_v56  ;;  %v8635_v18 = vld [vmem:[%s13275_s6 + $0x464] sm:$0xf]  ;;  %v7457_v56 = vld [vmem:[%s13275_s6 + $0x470] sm:$0xf0]  ;;  %v6935_v60 = vld [vmem:[%s13275_s6 + $0x48] sm:$0xf] }
 0x1af   :  { %3915 = vmatpush.bf16.msrb.mxu2 %v6980_v35  ;;  %v7328_v35 = vor.u32 %v8605_v23, %v7327_v31  ;;  %v8643_v23 = vld [vmem:[%s13275_s6 + $0x4a4] sm:$0xf]  ;;  %v8502_v17 = vld [vmem:[%s13275_s6 + $0x34] sm:$0xf0] }
 0x1b0   :  { %3953 = vmatpush.bf16.msra.mxu1 %v7380_v30 }
 0x1b1   :  { %3944 = vmatpush.bf16.msra.mxu0 %v7188_v11  ;;  %v8593_v11 = vld [vmem:[%s13275_s6 + $0x30c] sm:$0xf0] }
 0x1b2   :  { %3877 = vmatpush.bf16.msra.mxu3 %v7344_v47  ;;  %v7137_v47 = vld [vmem:[%s13275_s6 + $0x1f0] sm:$0xf0]  ;;  %v7280_v26 = vor.u32 %v8593_v11, %v7279_v2  ;;  %v7143_v2 = vld [vmem:[%s13275_s6 + $0x1e8] sm:$0xf] }
 0x1b3   :  { %3916 = vmatpush.bf16.msrb.mxu2 %v6964_v50  ;;  %v7016_v50 = vor.u32 %v8526_v42, %v7015_v41  ;;  %v7140_v30 = vor.u32 %v8555_v12, %v7137_v47  ;;  %v7473_v41 = vld [vmem:[%s13275_s6 + $0x490] sm:$0xf0]  ;;  %v6968_v42 = vor.u32 %v8514_v34, %v6967_v32  ;;  %v6919_v47 = vld [vmem:[%s13275_s6 + $0x28] sm:$0xf] }
 0x1b4   :  { %3954 = vmatpush.bf16.msra.mxu1 %v7364_v46  ;;  %v6951_v46 = vld [vmem:[%s13275_s6 + $0x68] sm:$0xf]  ;;  %v6920_v32 = vor.u32 %v8502_v17, %v6919_v47  ;;  %v8527_v47 = vld [vmem:[%s13275_s6 + $0x104] sm:$0xf]  ;;  %v7025_v17 = vld [vmem:[%s13275_s6 + $0x110] sm:$0xf0] }
 0x1b5   :  { %3945 = vmatpush.bf16.msra.mxu0 %v7172_v29  ;;  %v7313_v29 = vld [vmem:[%s13275_s6 + $0x350] sm:$0xf0]  ;;  %v6952_v57 = vor.u32 %v8510_v48, %v6951_v46  ;;  %v8623_v46 = vld [vmem:[%s13275_s6 + $0x404] sm:$0xf] }
 0x1b6   :  { %3878 = vmatpush.bf16.msra.mxu3 %v7328_v35  ;;  %v8551_v35 = vld [vmem:[%s13275_s6 + $0x1c4] sm:$0xf]  ;;  %v7316_v38 = vor.u32 %v8599_v27, %v7313_v29  ;;  %v7444_v29 = vor.u32 %v8631_v63, %v7441_v10  ;;  %v7409_v48 = vld [vmem:[%s13275_s6 + $0x410] sm:$0xf0] }
 0x1b7   :  { %3917 = vmatpush.bf16.msrb.mxu2 %v6948_v4  ;;  %v7505_v4 = vld [vmem:[%s13275_s6 + $0x4d0] sm:$0xf0]  ;;  %v8539_v27 = vld [vmem:[%s13275_s6 + $0x164] sm:$0xf] }
 0x1b8   :  { %v7508_v20 = vor.u32 %v8647_v3, %v7505_v4  ;;  %3955 = vmatpush.bf16.msra.mxu1 %v7348_v62  ;;  %v8506_v62 = vld [vmem:[%s13275_s6 + $0x54] sm:$0xf0]  ;;  %v8543_v4 = vld [vmem:[%s13275_s6 + $0x184] sm:$0xf] }
 0x1b9   :  { %3946 = vmatpush.bf16.msra.mxu0 %v7156_v45  ;;  %v7124_v45 = vor.u32 %v8551_v35, %v7121_v36  ;;  %v8558_v3 = vld [vmem:[%s13275_s6 + $0x1f4] sm:$0xf0]  ;;  %v6936_v11 = vor.u32 %v8506_v62, %v6935_v60  ;;  %v6903_v35 = vld [vmem:[%s13275_s6 + $0x8] sm:$0xf]  ;;  %v7041_v62 = vld [vmem:[%s13275_s6 + $0x130] sm:$0xf0] }
 0x1ba   :  { %3879 = vmatpush.bf16.msra.mxu3 %v7312_v52  ;;  %v7300_v52 = vor.u32 %v8595_v43, %v7297_v37  ;;  %v7144_v12 = vor.u32 %v8558_v3, %v7143_v2  ;;  %v8498_v36 = vld [vmem:[%s13275_s6 + $0x14] sm:$0xf0]  ;;  %v7527_v37 = vld [vmem:[%s13275_s6 + $0x4e8] sm:$0xf]  ;;  %v7412_v2 = vor.u32 %v8623_v46, %v7409_v48 }
 0x1bb   :  { %3918 = vmatpush.bf16.msrb.mxu2 %v6932_v24  ;;  %v7489_v24 = vld [vmem:[%s13275_s6 + $0x4b0] sm:$0xf0]  ;;  %v8550_v43 = vld [vmem:[%s13275_s6 + $0x1b4] sm:$0xf0]  ;;  %v7511_v60 = vld [vmem:[%s13275_s6 + $0x4c8] sm:$0xf] }
 0x1bc   :  { %3947 = vmatmul.bf16.vlgmr.msra.gmra.mxu0 %v11244_v19  ;;  %v7492_v22 = vor.u32 %v8643_v23, %v7489_v24  ;;  %3956 = vmatpush.bf16.msra.mxu1 %v7332_v1  ;;  %v7127_v24 = vld [vmem:[%s13275_s6 + $0x1c8] sm:$0xf]  ;;  %v8650_v3 = vld [vmem:[%s13275_s6 + $0x4d4] sm:$0xf0] }
 0x1bd   :  { %3991 = vmatpush.bf16.msrb.mxu0 %v7016_v50  ;;  %v7105_v50 = vld [vmem:[%s13275_s6 + $0x1b0] sm:$0xf0]  ;;  %v7512_v63 = vor.u32 %v8650_v3, %v7511_v60  ;;  %v7047_v48 = vld [vmem:[%s13275_s6 + $0x128] sm:$0xf]  ;;  %v8574_v60 = vld [vmem:[%s13275_s6 + $0x274] sm:$0xf0] }
 0x1be   :  { %3880 = vmatpush.bf16.msra.mxu3 %v7296_v7  ;;  %v7460_v7 = vor.u32 %v8635_v18, %v7457_v56 }
 0x1bf   :  { %3919 = vmatpush.bf16.msrb.mxu2 %v6916_v40  ;;  %v8639_v40 = vld [vmem:[%s13275_s6 + $0x484] sm:$0xf] }
 0x1c0   :  { %v7476_v51 = vor.u32 %v8639_v40, %v7473_v41  ;;  %3957 = vmatpush.bf16.msra.mxu1 %v7316_v38  ;;  %v2371_v44 = vpop.f32.mrf.mxu2  ;;  %v8535_v38 = vld [vmem:[%s13275_s6 + $0x144] sm:$0xf]  ;;  %v7057_v40 = vld [vmem:[%s13275_s6 + $0x150] sm:$0xf0]  ;;  %v7111_v41 = vld [vmem:[%s13275_s6 + $0x1a8] sm:$0xf] }
 0x1c1   :  { %v11442_v31 = vpop.f32.mrf.mxu0  ;;  %3992 = vmatpush.bf16.msrb.mxu0 %v7000_v5  ;;  %v7089_v5 = vld [vmem:[%s13275_s6 + $0x190] sm:$0xf0] }
 0x1c2   :  { %3881 = vmatpush.bf16.msra.mxu3 %v7280_v26  ;;  %v7092_v23 = vor.u32 %v8543_v4, %v7089_v5 }
 0x1c3   :  { %3920 = vmatpush.bf16.msrb.mxu2 %v6900_v0  ;;  %v7281_v0 = vld [vmem:[%s13275_s6 + $0x310] sm:$0xf0]  ;;  %v2514_v1 = vpop.f32.mrf.mxu1 }
 0x1c4   :  { %3958 = vmatpush.bf16.msra.mxu1 %v7300_v52  ;;  %v7284_v8 = vor.u32 %v8591_v58, %v7281_v0  ;;  %v11549_v26 = vadd.f32 %v2514_v1, %v11442_v31  ;;  %v7425_v31 = vld [vmem:[%s13275_s6 + $0x430] sm:$0xf0]  ;;  %v7271_v52 = vld [vmem:[%s13275_s6 + $0x2e8] sm:$0xf]  ;;  %v8546_v0 = vld [vmem:[%s13275_s6 + $0x194] sm:$0xf0] }
 0x1c5   :  { %3993 = vmatpush.bf16.msrb.mxu0 %v6984_v25  ;;  %3882 = vmatmul.bf16.vlgmr.msra.gmra.mxu3 %v11470_v39  ;;  %v8554_v25 = vld [vmem:[%s13275_s6 + $0x1d4] sm:$0xf0]  ;;  %v7095_v58 = vld [vmem:[%s13275_s6 + $0x188] sm:$0xf] }
 0x1c6   :  { %3921 = vmatmul.bf16.vlgmr.msrb.gmra.mxu2 %v11155_v55  ;;  %3926 = vmatpush.bf16.msrb.mxu3 %v7140_v30  ;;  %v8627_v30 = vld [vmem:[%s13275_s6 + $0x424] sm:$0xf]  ;;  %v7128_v34 = vor.u32 %v8554_v25, %v7127_v24  ;;  %v7096_v5 = vor.u32 %v8546_v0, %v7095_v58  ;;  %v8646_v1 = vld [vmem:[%s13275_s6 + $0x4b4] sm:$0xf0]  ;;  %v7649_v24 = vld [vmem:[%s13275_s6 + $0x5f0] sm:$0xf0] }
 0x1c7   :  { %3965 = vmatpush.bf16.msra.mxu2 %v7524_v61  ;;  %v7108_v61 = vor.u32 %v8547_v49, %v7105_v50  ;;  %v6904_v49 = vor.u32 %v8498_v36, %v6903_v35  ;;  %v7112_v50 = vor.u32 %v8550_v43, %v7111_v41  ;;  %v7063_v35 = vld [vmem:[%s13275_s6 + $0x148] sm:$0xf]  ;;  %v8538_v36 = vld [vmem:[%s13275_s6 + $0x154] sm:$0xf0]  ;;  %v7633_v41 = vld [vmem:[%s13275_s6 + $0x5d0] sm:$0xf0] }
 0x1c8   :  { %3959 = vmatpush.bf16.msra.mxu1 %v7284_v8  ;;  %v8586_v8 = vld [vmem:[%s13275_s6 + $0x2d4] sm:$0xf0]  ;;  %v7064_v43 = vor.u32 %v8538_v36, %v7063_v35  ;;  %v7207_v0 = vld [vmem:[%s13275_s6 + $0x268] sm:$0xf] }
 0x1c9   :  { %v2503_v54 = vpop.f32.mrf.mxu0  ;;  %3994 = vmatpush.bf16.msrb.mxu0 %v6968_v42  ;;  %v7428_v42 = vor.u32 %v8627_v30, %v7425_v31  ;;  %v8582_v30 = vld [vmem:[%s13275_s6 + $0x2b4] sm:$0xf0]  ;;  %v7175_v35 = vld [vmem:[%s13275_s6 + $0x228] sm:$0xf] }
 0x1ca   :  { %3927 = vmatpush.bf16.msrb.mxu3 %v7124_v45  ;;  %v8654_v45 = vld [vmem:[%s13275_s6 + $0x4f4] sm:$0xf0] }
 0x1cb   :  { %3966 = vmatpush.bf16.msra.mxu2 %v7508_v20  ;;  %v11540_v20 = vadd.f32 %v2371_v44, %v11111_v13  ;;  %v7073_v13 = vld [vmem:[%s13275_s6 + $0x170] sm:$0xf0]  ;;  %3960 = vmatmul.bf16.vlgmr.msra.gmra.mxu1 %v11470_v39  ;;  %v8590_v54 = vld [vmem:[%s13275_s6 + $0x2f4] sm:$0xf0]  ;;  %v7528_v18 = vor.u32 %v8654_v45, %v7527_v37  ;;  %v2516_v56 = vpop.f32.mrf.mxu1  ;;  %v7495_v44 = vld [vmem:[%s13275_s6 + $0x4a8] sm:$0xf] }
 0x1cc   :  { %4004 = vmatpush.bf16.msrb.mxu1 %v7144_v12  ;;  %v7272_v4 = vor.u32 %v8590_v54, %v7271_v52  ;;  %v8542_v12 = vld [vmem:[%s13275_s6 + $0x174] sm:$0xf0]  ;;  %v7496_v31 = vor.u32 %v8646_v1, %v7495_v44  ;;  %v7223_v37 = vld [vmem:[%s13275_s6 + $0x288] sm:$0xf]  ;;  %v8675_v54 = vld [vmem:[%s13275_s6 + $0x5a4] sm:$0xf] }
 0x1cd   :  { %3995 = vmatpush.bf16.msrb.mxu0 %v6952_v57  ;;  %v7060_v57 = vor.u32 %v8535_v38, %v7057_v40  ;;  %v7479_v38 = vld [vmem:[%s13275_s6 + $0x488] sm:$0xf]  ;;  %v8679_v40 = vld [vmem:[%s13275_s6 + $0x5c4] sm:$0xf]  ;;  %v8578_v45 = vld [vmem:[%s13275_s6 + $0x294] sm:$0xf0] }
 0x1ce   :  { %3928 = vmatpush.bf16.msrb.mxu3 %v7108_v61  ;;  %v8531_v61 = vld [vmem:[%s13275_s6 + $0x124] sm:$0xf]  ;;  %v8638_v52 = vld [vmem:[%s13275_s6 + $0x474] sm:$0xf0]  ;;  %v7224_v56 = vor.u32 %v8578_v45, %v7223_v37  ;;  %v7191_v44 = vld [vmem:[%s13275_s6 + $0x248] sm:$0xf] }
 0x1cf   :  { %3967 = vmatpush.bf16.msra.mxu2 %v7492_v22  ;;  %v7076_v22 = vor.u32 %v8539_v27, %v7073_v13  ;;  %v7044_v10 = vor.u32 %v8531_v61, %v7041_v62  ;;  %v7031_v62 = vld [vmem:[%s13275_s6 + $0x108] sm:$0xf]  ;;  %v8566_v36 = vld [vmem:[%s13275_s6 + $0x234] sm:$0xf0]  ;;  %v7569_v45 = vld [vmem:[%s13275_s6 + $0x550] sm:$0xf0] }
 0x1d0   :  { %4005 = vmatpush.bf16.msrb.mxu1 %v7128_v34  ;;  %v7028_v34 = vor.u32 %v8527_v47, %v7025_v17  ;;  %v8570_v47 = vld [vmem:[%s13275_s6 + $0x254] sm:$0xf0] }
 0x1d1   :  { %3996 = vmatpush.bf16.msrb.mxu0 %v6936_v11  ;;  %v7079_v11 = vld [vmem:[%s13275_s6 + $0x168] sm:$0xf]  ;;  %v8678_v37 = vld [vmem:[%s13275_s6 + $0x5b4] sm:$0xf0] }
 0x1d2   :  { %3929 = vmatpush.bf16.msrb.mxu3 %v7092_v23  ;;  %v8683_v23 = vld [vmem:[%s13275_s6 + $0x5e4] sm:$0xf]  ;;  %v7080_v27 = vor.u32 %v8542_v12, %v7079_v11  ;;  %v8686_v12 = vld [vmem:[%s13275_s6 + $0x5f4] sm:$0xf0] }
 0x1d3   :  { %3968 = vmatpush.bf16.msra.mxu2 %v7476_v51  ;;  %v2373_v51 = vpop.f32.mrf.mxu2 }
 0x1d4   :  { %4006 = vmatpush.bf16.msrb.mxu1 %v7112_v50  ;;  %v7636_v50 = vor.u32 %v8679_v40, %v7633_v41  ;;  %v7463_v51 = vld [vmem:[%s13275_s6 + $0x468] sm:$0xf]  ;;  %v8626_v40 = vld [vmem:[%s13275_s6 + $0x414] sm:$0xf0] }
 0x1d5   :  { %3997 = vmatpush.bf16.msrb.mxu0 %v6920_v32  ;;  %v7464_v61 = vor.u32 %v8638_v52, %v7463_v51  ;;  %v7159_v51 = vld [vmem:[%s13275_s6 + $0x208] sm:$0xf]  ;;  %v8562_v52 = vld [vmem:[%s13275_s6 + $0x214] sm:$0xf0] }
 0x1d6   :  { %3930 = vmatpush.bf16.msrb.mxu3 %v7076_v22  ;;  %v7652_v22 = vor.u32 %v8683_v23, %v7649_v24  ;;  %v7431_v23 = vld [vmem:[%s13275_s6 + $0x428] sm:$0xf]  ;;  %v8630_v24 = vld [vmem:[%s13275_s6 + $0x434] sm:$0xf0] }
 0x1d7   :  { %3969 = vmatpush.bf16.msra.mxu2 %v7460_v7  ;;  %v7255_v7 = vld [vmem:[%s13275_s6 + $0x2c8] sm:$0xf] }
 0x1d8   :  { %v7256_v25 = vor.u32 %v8586_v8, %v7255_v7  ;;  %4007 = vmatpush.bf16.msrb.mxu1 %v7096_v5  ;;  %v8634_v5 = vld [vmem:[%s13275_s6 + $0x454] sm:$0xf0]  ;;  %v7655_v7 = vld [vmem:[%s13275_s6 + $0x5e8] sm:$0xf]  ;;  %v8671_v8 = vld [vmem:[%s13275_s6 + $0x584] sm:$0xf] }
 0x1d9   :  { %3998 = vmatpush.bf16.msrb.mxu0 %v6904_v49  ;;  %v8534_v49 = vld [vmem:[%s13275_s6 + $0x134] sm:$0xf0]  ;;  %v7656_v1 = vor.u32 %v8686_v12, %v7655_v7 }
 0x1da   :  { %3931 = vmatpush.bf16.msrb.mxu3 %v7060_v57  ;;  %v7048_v57 = vor.u32 %v8534_v49, %v7047_v48  ;;  %v8588_v48 = vld [vmem:[%s13275_s6 + $0x2ec] sm:$0xf]  ;;  %v7273_v49 = vld [vmem:[%s13275_s6 + $0x2f8] sm:$0xf0] }
 0x1db   :  { %3970 = vmatpush.bf16.msra.mxu2 %v7444_v29  ;;  %v2423_v13 = vpop.f32.mrf.mxu2  ;;  %v7239_v29 = vld [vmem:[%s13275_s6 + $0x2a8] sm:$0xf] }
 0x1dc   :  { %3999 = vmatmul.bf16.vlgmr.msrb.gmra.mxu0 %v11155_v55  ;;  %v11656_v32 = vadd.f32 %v2423_v13, %v11227_v15  ;;  %v8642_v15 = vld [vmem:[%s13275_s6 + $0x494] sm:$0xf0]  ;;  %4008 = vmatpush.bf16.msrb.mxu1 %v7080_v27  ;;  %v7639_v27 = vld [vmem:[%s13275_s6 + $0x5c8] sm:$0xf] }
 0x1dd   :  { %4043 = vmatpush.bf16.msra.mxu0 %v7528_v18  ;;  %v7480_v46 = vor.u32 %v8642_v15, %v7479_v38  ;;  %v7617_v18 = vld [vmem:[%s13275_s6 + $0x5b0] sm:$0xf0]  ;;  %v8682_v13 = vld [vmem:[%s13275_s6 + $0x5d4] sm:$0xf0]  ;;  %v7415_v15 = vld [vmem:[%s13275_s6 + $0x408] sm:$0xf] }
 0x1de   :  { %3932 = vmatpush.bf16.msrb.mxu3 %v7044_v10  ;;  %v7620_v3 = vor.u32 %v8675_v54, %v7617_v18  ;;  %v7208_v10 = vor.u32 %v8574_v60, %v7207_v0  ;;  %v7640_v38 = vor.u32 %v8682_v13, %v7639_v27  ;;  %v7416_v54 = vor.u32 %v8626_v40, %v7415_v15  ;;  %v7607_v60 = vld [vmem:[%s13275_s6 + $0x588] sm:$0xf]  ;;  %v8666_v40 = vld [vmem:[%s13275_s6 + $0x554] sm:$0xf0] }
 0x1df   :  { %3971 = vmatpush.bf16.msra.mxu2 %v7428_v42  ;;  %v7240_v42 = vor.u32 %v8582_v30, %v7239_v29  ;;  %v8667_v29 = vld [vmem:[%s13275_s6 + $0x564] sm:$0xf]  ;;  %v7585_v30 = vld [vmem:[%s13275_s6 + $0x570] sm:$0xf0]  ;;  %v7399_v13 = vld [vmem:[%s13275_s6 + $0x3e8] sm:$0xf] }
 0x1e0   :  { %4009 = vmatpush.bf16.msrb.mxu1 %v7064_v43  ;;  %v7588_v41 = vor.u32 %v8667_v29, %v7585_v30  ;;  %v7623_v43 = vld [vmem:[%s13275_s6 + $0x5a8] sm:$0xf]  ;;  %v8622_v29 = vld [vmem:[%s13275_s6 + $0x3f4] sm:$0xf0] }
 0x1e1   :  { %4044 = vmatpush.bf16.msra.mxu0 %v7512_v63  ;;  %v7601_v63 = vld [vmem:[%s13275_s6 + $0x590] sm:$0xf0]  ;;  %v7624_v18 = vor.u32 %v8678_v37, %v7623_v43  ;;  %v7575_v15 = vld [vmem:[%s13275_s6 + $0x548] sm:$0xf]  ;;  %v7225_v43 = vld [vmem:[%s13275_s6 + $0x298] sm:$0xf0] }
 0x1e2   :  { %3933 = vmatpush.bf16.msrb.mxu3 %v7028_v34  ;;  %v7383_v37 = vld [vmem:[%s13275_s6 + $0x3c8] sm:$0xf] }
 0x1e3   :  { %3972 = vmatpush.bf16.msra.mxu2 %v7412_v2  ;;  %v2425_v58 = vpop.f32.mrf.mxu2  ;;  %v8530_v2 = vld [vmem:[%s13275_s6 + $0x114] sm:$0xf0] }
 0x1e4   :  { %4010 = vmatpush.bf16.msrb.mxu1 %v7048_v57  ;;  %v7032_v11 = vor.u32 %v8530_v2, %v7031_v62  ;;  %v7017_v57 = vld [vmem:[%s13275_s6 + $0xf8] sm:$0xf0]  ;;  %v7276_v58 = vor.u32 %v8588_v48, %v7273_v49  ;;  %v8584_v62 = vld [vmem:[%s13275_s6 + $0x2cc] sm:$0xf]  ;;  %v8659_v2 = vld [vmem:[%s13275_s6 + $0x524] sm:$0xf]  ;;  %v7576_v48 = vor.u32 %v8666_v40, %v7575_v15 }
 0x1e5   :  { %4045 = vmatpush.bf16.msra.mxu0 %v7496_v31  ;;  %3934 = vmatmul.bf16.vlgmr.msrb.gmra.mxu3 %v11209_v9  ;;  %v7192_v31 = vor.u32 %v8570_v47, %v7191_v44  ;;  %v7591_v47 = vld [vmem:[%s13275_s6 + $0x568] sm:$0xf]  ;;  %v8512_v49 = vld [vmem:[%s13275_s6 + $0x8c] sm:$0xf] }
 0x1e6   :  { %3973 = vmatmul.bf16.vlgmr.msra.gmra.mxu2 %v11317_v6  ;;  %3978 = vmatpush.bf16.msra.mxu3 %v7652_v22  ;;  %v7432_v22 = vor.u32 %v8630_v24, %v7431_v23  ;;  %v8655_v23 = vld [vmem:[%s13275_s6 + $0x504] sm:$0xf]  ;;  %v7537_v24 = vld [vmem:[%s13275_s6 + $0x510] sm:$0xf0]  ;;  %v8560_v40 = vld [vmem:[%s13275_s6 + $0x20c] sm:$0xf] }
 0x1e7   :  { %4017 = vmatpush.bf16.msrb.mxu2 %v7272_v4  ;;  %v7447_v4 = vld [vmem:[%s13275_s6 + $0x448] sm:$0xf] }
 0x1e8   :  { %v7448_v17 = vor.u32 %v8634_v5, %v7447_v4  ;;  %4011 = vmatpush.bf16.msrb.mxu1 %v7032_v11  ;;  %v7160_v4 = vor.u32 %v8562_v52, %v7159_v51  ;;  %v7257_v5 = vld [vmem:[%s13275_s6 + $0x2d8] sm:$0xf0] }
 0x1e9   :  { %4046 = vmatpush.bf16.msra.mxu0 %v7480_v46  ;;  %v7176_v46 = vor.u32 %v8566_v36, %v7175_v35  ;;  %v7001_v11 = vld [vmem:[%s13275_s6 + $0xd8] sm:$0xf0]  ;;  %v7260_v12 = vor.u32 %v8584_v62, %v7257_v5  ;;  %v8516_v35 = vld [vmem:[%s13275_s6 + $0xac] sm:$0xf] }
 0x1ea   :  { %3979 = vmatpush.bf16.msra.mxu3 %v7636_v50  ;;  %v11789_v50 = vpop.f32.mrf.mxu3  ;;  %v6985_v36 = vld [vmem:[%s13275_s6 + $0xb8] sm:$0xf0] }
 0x1eb   :  { %4018 = vmatpush.bf16.msrb.mxu2 %v7256_v25  ;;  %v7604_v25 = vor.u32 %v8671_v8, %v7601_v63  ;;  %v11756_v34 = vpop.f32.mrf.mxu2  ;;  %4012 = vmatmul.bf16.vlgmr.msrb.gmra.mxu1 %v11209_v9  ;;  %v6969_v51 = vld [vmem:[%s13275_s6 + $0x98] sm:$0xf0] }
 0x1ec   :  { %4056 = vmatpush.bf16.msra.mxu1 %v7656_v1  ;;  %v8580_v1 = vld [vmem:[%s13275_s6 + $0x2ac] sm:$0xf]  ;;  %v6972_v62 = vor.u32 %v8512_v49, %v6969_v51  ;;  %v6905_v51 = vld [vmem:[%s13275_s6 + $0x18] sm:$0xf0] }
 0x1ed   :  { %4047 = vmatpush.bf16.msra.mxu0 %v7464_v61  ;;  %v8674_v61 = vld [vmem:[%s13275_s6 + $0x594] sm:$0xf0]  ;;  %v8496_v49 = vld [vmem:[%s13275_s6 + $0xc] sm:$0xf] }
 0x1ee   :  { %3980 = vmatpush.bf16.msra.mxu3 %v7620_v3  ;;  %v7553_v3 = vld [vmem:[%s13275_s6 + $0x530] sm:$0xf0]  ;;  %v7608_v63 = vor.u32 %v8674_v61, %v7607_v60  ;;  %v7367_v60 = vld [vmem:[%s13275_s6 + $0x3a8] sm:$0xf]  ;;  %v8614_v61 = vld [vmem:[%s13275_s6 + $0x3b4] sm:$0xf0] }
 0x1ef   :  { %4019 = vmatpush.bf16.msrb.mxu2 %v7240_v42  ;;  %v8663_v42 = vld [vmem:[%s13275_s6 + $0x544] sm:$0xf]  ;;  %v7556_v44 = vor.u32 %v8659_v2, %v7553_v3  ;;  %v8508_v3 = vld [vmem:[%s13275_s6 + $0x6c] sm:$0xf] }
 0x1f0   :  { %4057 = vmatpush.bf16.msra.mxu1 %v7640_v38  ;;  %v7572_v0 = vor.u32 %v8663_v42, %v7569_v45  ;;  %v7540_v38 = vor.u32 %v8655_v23, %v7537_v24  ;;  %v8576_v42 = vld [vmem:[%s13275_s6 + $0x28c] sm:$0xf]  ;;  %v8618_v45 = vld [vmem:[%s13275_s6 + $0x3d4] sm:$0xf0]  ;;  %v6937_v23 = vld [vmem:[%s13275_s6 + $0x58] sm:$0xf0] }
 0x1f1   :  { %4048 = vmatpush.bf16.msra.mxu0 %v7448_v17  ;;  %v8670_v17 = vld [vmem:[%s13275_s6 + $0x574] sm:$0xf0]  ;;  %v7228_v52 = vor.u32 %v8576_v42, %v7225_v43  ;;  %v7775_v43 = vld [vmem:[%s13276_s7 + $0xe0] sm:$0xf] }
 0x1f2   :  { %3981 = vmatpush.bf16.msra.mxu3 %v7604_v25  ;;  %v7241_v25 = vld [vmem:[%s13275_s6 + $0x2b8] sm:$0xf0]  ;;  %v2386_v27 = vpop.f32.mrf.mxu3 }
 0x1f3   :  { %4020 = vmatpush.bf16.msrb.mxu2 %v7224_v56  ;;  %v8524_v56 = vld [vmem:[%s13275_s6 + $0xec] sm:$0xf]  ;;  %v2477_v7 = vpop.f32.mrf.mxu2  ;;  %v7177_v27 = vld [vmem:[%s13275_s6 + $0x238] sm:$0xf0] }
 0x1f4   :  { %v7020_v8 = vor.u32 %v8524_v56, %v7017_v57  ;;  %4058 = vmatpush.bf16.msra.mxu1 %v7624_v18  ;;  %v8662_v18 = vld [vmem:[%s13275_s6 + $0x534] sm:$0xf0]  ;;  %v7384_v56 = vor.u32 %v8618_v45, %v7383_v37  ;;  %v8572_v57 = vld [vmem:[%s13275_s6 + $0x26c] sm:$0xf]  ;;  %v7543_v7 = vld [vmem:[%s13275_s6 + $0x508] sm:$0xf] }
 0x1f5   :  { %4049 = vmatpush.bf16.msra.mxu0 %v7432_v22  ;;  %v7244_v22 = vor.u32 %v8580_v1, %v7241_v25  ;;  %v8504_v1 = vld [vmem:[%s13275_s6 + $0x4c] sm:$0xf]  ;;  %v8717_v37 = vld [vmem:[%s13276_s7 + $0xec] sm:$0xf0]  ;;  %v7319_v45 = vld [vmem:[%s13275_s6 + $0x348] sm:$0xf] }
 0x1f6   :  { %3982 = vmatpush.bf16.msra.mxu3 %v7588_v41  ;;  %v7400_v41 = vor.u32 %v8622_v29, %v7399_v13  ;;  %v8564_v25 = vld [vmem:[%s13275_s6 + $0x22c] sm:$0xf] }
 0x1f7   :  { %4021 = vmatpush.bf16.msrb.mxu2 %v7208_v10  ;;  %v8520_v10 = vld [vmem:[%s13275_s6 + $0xcc] sm:$0xf]  ;;  %v7180_v15 = vor.u32 %v8564_v25, %v7177_v27  ;;  %v7287_v25 = vld [vmem:[%s13275_s6 + $0x308] sm:$0xf]  ;;  %v8594_v27 = vld [vmem:[%s13275_s6 + $0x314] sm:$0xf0] }
 0x1f8   :  { %v7004_v30 = vor.u32 %v8520_v10, %v7001_v11  ;;  %4059 = vmatpush.bf16.msra.mxu1 %v7608_v63  ;;  %v8568_v63 = vld [vmem:[%s13275_s6 + $0x24c] sm:$0xf]  ;;  %v7368_v10 = vor.u32 %v8614_v61, %v7367_v60  ;;  %v7193_v11 = vld [vmem:[%s13275_s6 + $0x258] sm:$0xf0] }
 0x1f9   :  { %4050 = vmatpush.bf16.msra.mxu0 %v7416_v54  ;;  %v7559_v54 = vld [vmem:[%s13275_s6 + $0x528] sm:$0xf]  ;;  %v7196_v24 = vor.u32 %v8568_v63, %v7193_v11  ;;  %v7513_v11 = vld [vmem:[%s13275_s6 + $0x4d8] sm:$0xf0] }
 0x1fa   :  { %3983 = vmatpush.bf16.msra.mxu3 %v7572_v0  ;;  %v11895_v0 = vpop.f32.mrf.mxu3  ;;  %v7560_v2 = vor.u32 %v8662_v18, %v7559_v54  ;;  %v8652_v54 = vld [vmem:[%s13275_s6 + $0x4ec] sm:$0xf]  ;;  %v7529_v18 = vld [vmem:[%s13275_s6 + $0x4f8] sm:$0xf0] }
 0x1fb   :  { %4022 = vmatpush.bf16.msrb.mxu2 %v7192_v31  ;;  %v7592_v31 = vor.u32 %v8670_v17, %v7591_v47  ;;  %v7532_v63 = vor.u32 %v8652_v54, %v7529_v18  ;;  %v7481_v54 = vld [vmem:[%s13275_s6 + $0x498] sm:$0xf0] }
 0x1fc   :  { %4051 = vmatmul.bf16.vlgmr.msra.gmra.mxu0 %v11317_v6 }
 0x1fd   :  { %4095 = vmatpush.bf16.msrb.mxu0 %v7276_v58  ;;  %4060 = vmatpush.bf16.msra.mxu1 %v7592_v31  ;;  %v7209_v58 = vld [vmem:[%s13275_s6 + $0x278] sm:$0xf0]  ;;  %v8606_v31 = vld [vmem:[%s13275_s6 + $0x374] sm:$0xf0] }
 0x1fe   :  { %3984 = vmatpush.bf16.msra.mxu3 %v7556_v44  ;;  %v7212_v5 = vor.u32 %v8572_v57, %v7209_v58  ;;  %v8610_v44 = vld [vmem:[%s13275_s6 + $0x394] sm:$0xf0]  ;;  %v8620_v57 = vld [vmem:[%s13275_s6 + $0x3ec] sm:$0xf]  ;;  %v7401_v58 = vld [vmem:[%s13275_s6 + $0x3f8] sm:$0xf0] }
 0x1ff   :  { %4023 = vmatpush.bf16.msrb.mxu2 %v7176_v46  ;;  %v6988_v46 = vor.u32 %v8516_v35, %v6985_v36  ;;  %v6940_v35 = vor.u32 %v8504_v1, %v6937_v23  ;;  %v7404_v61 = vor.u32 %v8620_v57, %v7401_v58  ;;  %v7743_v23 = vld [vmem:[%s13276_s7 + $0xa0] sm:$0xf]  ;;  %v8701_v58 = vld [vmem:[%s13276_s7 + $0x6c] sm:$0xf0] }
 0x200   :  { %v7711_v57 = vld [vmem:[%s13276_s7 + $0x60] sm:$0xf] }
 0x201   :  { %4096 = vmatpush.bf16.msrb.mxu0 %v7260_v12  ;;  %4061 = vmatpush.bf16.msra.mxu1 %v7576_v48  ;;  %v7351_v12 = vld [vmem:[%s13275_s6 + $0x388] sm:$0xf] }
 0x202   :  { %3985 = vmatpush.bf16.msra.mxu3 %v7540_v38  ;;  %v7352_v13 = vor.u32 %v8610_v44, %v7351_v12  ;;  %v2438_v29 = vpop.f32.mrf.mxu3  ;;  %v6921_v38 = vld [vmem:[%s13275_s6 + $0x38] sm:$0xf0]  ;;  %v8616_v44 = vld [vmem:[%s13275_s6 + $0x3cc] sm:$0xf] }
 0x203   :  { %4024 = vmatpush.bf16.msrb.mxu2 %v7160_v4  ;;  %v6953_v4 = vld [vmem:[%s13275_s6 + $0x78] sm:$0xf0] }
 0x204   :  { %v6956_v47 = vor.u32 %v8508_v3, %v6953_v4  ;;  %v7303_v4 = vld [vmem:[%s13275_s6 + $0x328] sm:$0xf]  ;;  %v7145_v29 = vld [vmem:[%s13275_s6 + $0x1f8] sm:$0xf0] }
 0x205   :  { %4097 = vmatpush.bf16.msrb.mxu0 %v7244_v22  ;;  %3986 = vmatmul.bf16.vlgmr.msra.gmra.mxu3 %v11331_v33  ;;  %v8500_v22 = vld [vmem:[%s13275_s6 + $0x2c] sm:$0xf] }
 0x206   :  { %4025 = vmatmul.bf16.vlgmr.msrb.gmra.mxu2 %v11244_v19  ;;  %4030 = vmatpush.bf16.msrb.mxu3 %v7400_v41  ;;  %v7161_v41 = vld [vmem:[%s13275_s6 + $0x218] sm:$0xf0]  ;;  %v6924_v48 = vor.u32 %v8500_v22, %v6921_v38  ;;  %v8612_v22 = vld [vmem:[%s13275_s6 + $0x3ac] sm:$0xf] }
 0x207   :  { %4069 = vmatpush.bf16.msra.mxu2 %v7020_v8  ;;  %v8658_v8 = vld [vmem:[%s13275_s6 + $0x514] sm:$0xf0]  ;;  %4062 = vmatpush.bf16.msra.mxu1 %v7560_v2  ;;  %v8713_v2 = vld [vmem:[%s13276_s7 + $0xcc] sm:$0xf0]  ;;  %v7369_v38 = vld [vmem:[%s13275_s6 + $0x3b8] sm:$0xf0] }
 0x208   :  { %v7544_v17 = vor.u32 %v8658_v8, %v7543_v7  ;;  %v6908_v7 = vor.u32 %v8496_v49, %v6905_v51  ;;  %v8608_v49 = vld [vmem:[%s13275_s6 + $0x38c] sm:$0xf]  ;;  %v7353_v51 = vld [vmem:[%s13275_s6 + $0x398] sm:$0xf0] }
 0x209   :  { %4098 = vmatpush.bf16.msrb.mxu0 %v7228_v52  ;;  %v11946_v36 = vpop.f32.mrf.mxu2  ;;  %v7164_v52 = vor.u32 %v8560_v40, %v7161_v41  ;;  %v7372_v40 = vor.u32 %v8612_v22, %v7369_v38  ;;  %v8693_v22 = vld [vmem:[%s13276_s7 + $0x2c] sm:$0xf0] }
 0x20a   :  { %4031 = vmatpush.bf16.msrb.mxu3 %v7384_v56  ;;  %v7776_v56 = vor.u32 %v8717_v37, %v7775_v43  ;;  %v11997_v3 = vpop.f32.mrf.mxu3  ;;  %v8552_v43 = vld [vmem:[%s13275_s6 + $0x1cc] sm:$0xf]  ;;  %v7727_v37 = vld [vmem:[%s13276_s7 + $0x80] sm:$0xf] }
 0x20b   :  { %4070 = vmatpush.bf16.msra.mxu2 %v7004_v30  ;;  %v7335_v30 = vld [vmem:[%s13275_s6 + $0x368] sm:$0xf]  ;;  %4063 = vmatpush.bf16.msra.mxu1 %v7544_v17 }
 0x20c   :  { %v7336_v42 = vor.u32 %v8606_v31, %v7335_v30  ;;  %v8644_v31 = vld [vmem:[%s13275_s6 + $0x4ac] sm:$0xf] }
 0x20d   :  { %4099 = vmatpush.bf16.msrb.mxu0 %v7212_v5  ;;  %v8598_v5 = vld [vmem:[%s13275_s6 + $0x334] sm:$0xf0] }
 0x20e   :  { %4032 = vmatpush.bf16.msrb.mxu3 %v7368_v10  ;;  %4064 = vmatmul.bf16.vlgmr.msra.gmra.mxu1 %v11331_v33  ;;  %v8648_v10 = vld [vmem:[%s13275_s6 + $0x4cc] sm:$0xf]  ;;  %v7304_v17 = vor.u32 %v8598_v5, %v7303_v4  ;;  %v7337_v5 = vld [vmem:[%s13275_s6 + $0x378] sm:$0xf0] }
 0x20f   :  { %4071 = vmatpush.bf16.msra.mxu2 %v6988_v46  ;;  %v8602_v46 = vld [vmem:[%s13275_s6 + $0x354] sm:$0xf0]  ;;  %4108 = vmatpush.bf16.msrb.mxu1 %v7404_v61  ;;  %v7516_v30 = vor.u32 %v8648_v10, %v7513_v11  ;;  %v8548_v61 = vld [vmem:[%s13275_s6 + $0x1ac] sm:$0xf]  ;;  %v12100_v11 = vpop.f32.mrf.mxu1 }
 0x210   :  { %v7320_v60 = vor.u32 %v8602_v46, %v7319_v45  ;;  %v8705_v45 = vld [vmem:[%s13276_s7 + $0x8c] sm:$0xf0]  ;;  %v7129_v46 = vld [vmem:[%s13275_s6 + $0x1d8] sm:$0xf0]  ;;  %v8604_v4 = vld [vmem:[%s13275_s6 + $0x36c] sm:$0xf] }
 0x211   :  { %4100 = vmatpush.bf16.msrb.mxu0 %v7196_v24  ;;  %v2529_v8 = vpop.f32.mrf.mxu2  ;;  %v8709_v24 = vld [vmem:[%s13276_s7 + $0xac] sm:$0xf0]  ;;  %v7728_v18 = vor.u32 %v8705_v45, %v7727_v37  ;;  %v7340_v10 = vor.u32 %v8604_v4, %v7337_v5  ;;  %v7433_v37 = vld [vmem:[%s13275_s6 + $0x438] sm:$0xf0] }
 0x212   :  { %4033 = vmatpush.bf16.msrb.mxu3 %v7352_v13  ;;  %v8556_v13 = vld [vmem:[%s13275_s6 + $0x1ec] sm:$0xf]  ;;  %v2490_v41 = vpop.f32.mrf.mxu3  ;;  %v7465_v8 = vld [vmem:[%s13275_s6 + $0x478] sm:$0xf0] }
 0x213   :  { %4072 = vmatpush.bf16.msra.mxu2 %v6972_v62  ;;  %v7759_v62 = vld [vmem:[%s13276_s7 + $0xc0] sm:$0xf]  ;;  %v7289_v4 = vld [vmem:[%s13275_s6 + $0x318] sm:$0xf0] }
 0x214   :  { %v7760_v12 = vor.u32 %v8713_v2, %v7759_v62  ;;  %v7113_v62 = vld [vmem:[%s13275_s6 + $0x1b8] sm:$0xf0] }
 0x215   :  { %4101 = vmatpush.bf16.msrb.mxu0 %v7180_v15  ;;  %v7288_v15 = vor.u32 %v8594_v27, %v7287_v25  ;;  %v8600_v25 = vld [vmem:[%s13275_s6 + $0x34c] sm:$0xf]  ;;  %v7321_v27 = vld [vmem:[%s13275_s6 + $0x358] sm:$0xf0] }
 0x216   :  { %4034 = vmatpush.bf16.msrb.mxu3 %v7336_v42  ;;  %v7148_v42 = vor.u32 %v8556_v13, %v7145_v29  ;;  %v2463_v13 = vadd.f32 %v11329_v14, %v11238_v21  ;;  %v8632_v29 = vld [vmem:[%s13275_s6 + $0x44c] sm:$0xf]  ;;  %v2437_v14 = vadd.f32 %v11895_v0, %v11656_v32  ;;  %v7305_v32 = vld [vmem:[%s13275_s6 + $0x338] sm:$0xf0]  ;;  %v2385_v0 = vadd.f32 %v11789_v50, %v11540_v20  ;;  %v8689_v20 = vld [vmem:[%s13276_s7 + $0xc] sm:$0xf0] }
 0x217   :  { %4073 = vmatpush.bf16.msra.mxu2 %v6956_v47  ;;  %v7385_v47 = vld [vmem:[%s13275_s6 + $0x3d8] sm:$0xf0] }
 0x218   :  { %v7388_v1 = vor.u32 %v8616_v44, %v7385_v47  ;;  %v8697_v44 = vld [vmem:[%s13276_s7 + $0x4c] sm:$0xf0]  ;;  %v7116_v47 = vor.u32 %v8548_v61, %v7113_v62  ;;  %v2476_v21 = vadd.f32 %v11756_v34, %v2463_v13  ;;  %v8596_v34 = vld [vmem:[%s13275_s6 + $0x32c] sm:$0xf]  ;;  %v12165_v50 = vadd.f32 %v2437_v14, %v10324_v59  ;;  %v7417_v61 = vld [vmem:[%s13275_s6 + $0x418] sm:$0xf0] }
 0x219   :  { %4102 = vmatpush.bf16.msrb.mxu0 %v7164_v52  ;;  %v8640_v52 = vld [vmem:[%s13275_s6 + $0x48c] sm:$0xf]  ;;  %v7657_v14 = vld [vmem:[%s13275_s6 + $0x5f8] sm:$0xf0] }
 0x21a   :  { %4035 = vmatpush.bf16.msrb.mxu3 %v7320_v60  ;;  %4109 = vmatpush.bf16.msrb.mxu1 %v7388_v1  ;;  %v7132_v60 = vor.u32 %v8552_v43, %v7129_v46  ;;  %v7484_v2 = vor.u32 %v8640_v52, %v7481_v54  ;;  %v7097_v1 = vld [vmem:[%s13275_s6 + $0x198] sm:$0xf0]  ;;  %v8628_v43 = vld [vmem:[%s13275_s6 + $0x42c] sm:$0xf]  ;;  %v7308_v46 = vor.u32 %v8596_v34, %v7305_v32  ;;  %v7777_v52 = vld [vmem:[%s13276_s7 + $0xf0] sm:$0xf0] }
 0x21b   :  { %4074 = vmatpush.bf16.msra.mxu2 %v6940_v35  ;;  %v7744_v35 = vor.u32 %v8709_v24, %v7743_v23  ;;  %v8536_v54 = vld [vmem:[%s13275_s6 + $0x14c] sm:$0xf]  ;;  %v7436_v59 = vor.u32 %v8628_v43, %v7433_v37  ;;  %v7729_v34 = vld [vmem:[%s13276_s7 + $0x90] sm:$0xf0] }
 0x21c   :  { %4103 = vmatmul.bf16.vlgmr.msrb.gmra.mxu0 %v11244_v19  ;;  %v7497_v19 = vld [vmem:[%s13275_s6 + $0x4b8] sm:$0xf0]  ;;  %v8680_v43 = vld [vmem:[%s13275_s6 + $0x5cc] sm:$0xf] }
 0x21d   :  { %4955 = vmatpush.bf16.msra.mxu0 %v7776_v56  ;;  %v7356_v56 = vor.u32 %v8608_v49, %v7353_v51  ;;  %v7663_v49 = vld [vmem:[%s13276_s7] sm:$0xf]  ;;  %v8715_v51 = vld [vmem:[%s13276_s7 + $0xe4] sm:$0xf] }
 0x21e   :  { %4036 = vmatpush.bf16.msrb.mxu3 %v7304_v17  ;;  %4110 = vmatpush.bf16.msrb.mxu1 %v7372_v40  ;;  %v8544_v17 = vld [vmem:[%s13275_s6 + $0x18c] sm:$0xf]  ;;  %v7081_v40 = vld [vmem:[%s13275_s6 + $0x178] sm:$0xf0]  ;;  %v7664_v62 = vor.u32 %v8689_v20, %v7663_v49 }
 0x21f   :  { %4075 = vmatpush.bf16.msra.mxu2 %v6924_v48  ;;  %v12061_v48 = vpop.f32.mrf.mxu0  ;;  %v7100_v38 = vor.u32 %v8544_v17, %v7097_v1  ;;  %v8676_v49 = vld [vmem:[%s13275_s6 + $0x5ac] sm:$0xf] }
 0x221   :  { %4956 = vmatpush.bf16.msra.mxu0 %v7760_v12  ;;  %v7695_v12 = vld [vmem:[%s13276_s7 + $0x40] sm:$0xf] }
 0x222   :  { %4037 = vmatpush.bf16.msrb.mxu3 %v7288_v15  ;;  %4111 = vmatpush.bf16.msrb.mxu1 %v7356_v56  ;;  %v8540_v15 = vld [vmem:[%s13275_s6 + $0x16c] sm:$0xf] }
 0x223   :  { %4076 = vmatpush.bf16.msra.mxu2 %v6908_v7  ;;  %v8636_v7 = vld [vmem:[%s13275_s6 + $0x46c] sm:$0xf] }
 0x224   :  { %v7468_v23 = vor.u32 %v8636_v7, %v7465_v8  ;;  %v2528_v7 = vadd.f32 %v11946_v36, %v11549_v26  ;;  %v7049_v26 = vld [vmem:[%s13275_s6 + $0x138] sm:$0xf0] }
 0x225   :  { %4957 = vmatpush.bf16.msra.mxu0 %v7744_v35  ;;  %4038 = vmatmul.bf16.vlgmr.msrb.gmra.mxu3 %v11470_v39  ;;  %v7679_v35 = vld [vmem:[%s13276_s7 + $0x20] sm:$0xf] }
 0x226   :  { %4077 = vmatmul.bf16.vlgmr.msra.gmra.mxu2 %v11155_v55  ;;  %v7500_v55 = vor.u32 %v8644_v31, %v7497_v19  ;;  %4082 = vmatpush.bf16.msra.mxu3 %v7148_v42  ;;  %v7696_v31 = vor.u32 %v8697_v44, %v7695_v12  ;;  %v7324_v19 = vor.u32 %v8600_v25, %v7321_v27  ;;  %v7761_v12 = vld [vmem:[%s13276_s7 + $0xd0] sm:$0xf0] }
 0x227   :  { %4121 = vmatpush.bf16.msrb.mxu2 %v7532_v63  ;;  %v7712_v63 = vor.u32 %v8701_v58, %v7711_v57  ;;  %4112 = vmatpush.bf16.msrb.mxu1 %v7340_v10  ;;  %v3846_v24 = vpop.f32.mrf.mxu0  ;;  %v2489_v42 = vadd.f32 %v11997_v3, %v2476_v21  ;;  %v7680_v45 = vor.u32 %v8693_v22, %v7679_v35  ;;  %v8624_v57 = vld [vmem:[%s13275_s6 + $0x40c] sm:$0xf]  ;;  %v8711_v10 = vld [vmem:[%s13276_s7 + $0xc4] sm:$0xf] }
 0x228   :  { %v7084_v3 = vor.u32 %v8540_v15, %v7081_v40  ;;  %v12185_v58 = vadd.f32 %v2385_v0, %v10176_v28  ;;  %v7780_v28 = vor.u32 %v8715_v51, %v7777_v52  ;;  %v2540_v44 = vpop.f32.mrf.mxu3  ;;  %v7420_v36 = vor.u32 %v8624_v57, %v7417_v61  ;;  %v8684_v21 = vld [vmem:[%s13275_s6 + $0x5ec] sm:$0xf]  ;;  %v7903_v51 = vld [vmem:[%s13276_s7 + $0x1e0] sm:$0xf]  ;;  %v8749_v52 = vld [vmem:[%s13276_s7 + $0x1ec] sm:$0xf0] }
 0x229   :  { %4958 = vmatpush.bf16.msra.mxu0 %v7728_v18  ;;  %v7065_v18 = vld [vmem:[%s13275_s6 + $0x158] sm:$0xf0]  ;;  %v12179_v56 = vpop.f32.mrf.mxu2  ;;  %v2541_v1 = vadd.f32 %v2540_v44, %v2528_v7  ;;  %v7764_v25 = vor.u32 %v8711_v10, %v7761_v12  ;;  %v7697_v57 = vld [vmem:[%s13276_s7 + $0x50] sm:$0xf0]  ;;  %v8687_v12 = vld [vmem:[%s13276_s7 + $0x4] sm:$0xf] }
 0x22a   :  { %4083 = vmatpush.bf16.msra.mxu3 %v7132_v60  ;;  %v12188_v60 = vadd.f32 %v2489_v42, %v10640_v53  ;;  %v2550_v53 = vsel %vm2548_vm0, %v12165_v50, 0.0  ;;  %v7068_v8 = vor.u32 %v8536_v54, %v7065_v18  ;;  %v2549_v17 = vsel %vm2548_vm0, %v12185_v58, 0.0  ;;  %v7593_v7 = vld [vmem:[%s13275_s6 + $0x578] sm:$0xf0]  ;;  %v7665_v44 = vld [vmem:[%s13276_s7 + $0x10] sm:$0xf0] }
 0x22b   :  { %4122 = vmatpush.bf16.msrb.mxu2 %v7516_v30  ;;  %v7449_v30 = vld [vmem:[%s13275_s6 + $0x458] sm:$0xf0]  ;;  %4113 = vmatpush.bf16.msrb.mxu1 %v7324_v19  ;;  %v2551_v24 = vadd.f32 %v2550_v53, %v2549_v17  ;;  %v12222_v27 = vadd.f32 %v2541_v1, %v10785_v16  ;;  %v8528_v19 = vld [vmem:[%s13275_s6 + $0x10c] sm:$0xf]  ;;  %v7660_v42 = vor.u32 %v8684_v21, %v7657_v14  ;;  %v8737_v21 = vld [vmem:[%s13276_s7 + $0x18c] sm:$0xf0] }
 0x22c   :  { %v7452_v41 = vor.u32 %v8632_v29, %v7449_v30  ;;  %v8707_v29 = vld [vmem:[%s13276_s7 + $0xa4] sm:$0xf]  ;;  %v7745_v30 = vld [vmem:[%s13276_s7 + $0xb0] sm:$0xf0]  ;;  %v7033_v16 = vld [vmem:[%s13275_s6 + $0x118] sm:$0xf0]  ;;  %v7904_v18 = vor.u32 %v8749_v52, %v7903_v51 }
 0x22d   :  { %4959 = vmatpush.bf16.msra.mxu0 %v7712_v63  ;;  %v2554_v22 = vsel %vm2548_vm0, %v12222_v27, 0.0  ;;  %v7748_v15 = vor.u32 %v8707_v29, %v7745_v30  ;;  %v7036_v40 = vor.u32 %v8528_v19, %v7033_v16  ;;  %v8668_v53 = vld [vmem:[%s13275_s6 + $0x56c] sm:$0xf]  ;;  %v8725_v51 = vld [vmem:[%s13276_s7 + $0x12c] sm:$0xf0] }
 0x22e   :  { %4084 = vmatpush.bf16.msra.mxu3 %v7116_v47  ;;  %v8532_v47 = vld [vmem:[%s13275_s6 + $0x12c] sm:$0xf] }
 0x22f   :  { %4123 = vmatpush.bf16.msrb.mxu2 %v7500_v55  ;;  %v3859_v55 = vpop.f32.mrf.mxu1  ;;  %4114 = vmatpush.bf16.msrb.mxu1 %v7308_v46  ;;  %v12203_v63 = vpop.f32.mrf.mxu0  ;;  %v7052_v13 = vor.u32 %v8532_v47, %v7049_v26  ;;  %v7713_v46 = vld [vmem:[%s13276_s7 + $0x70] sm:$0xf0]  ;;  %v7596_v47 = vor.u32 %v8668_v53, %v7593_v7  ;;  %v7887_v26 = vld [vmem:[%s13276_s7 + $0x1c0] sm:$0xf]  ;;  %v8660_v30 = vld [vmem:[%s13275_s6 + $0x52c] sm:$0xf] }
 0x230   :  { %v2542_v0 = vpop.f32.mrf.mxu3  ;;  %v8656_v14 = vld [vmem:[%s13275_s6 + $0x50c] sm:$0xf]  ;;  %v7783_v53 = vld [vmem:[%s13276_s7 + $0xe8] sm:$0xf]  ;;  %v8718_v7 = vld [vmem:[%s13276_s7 + $0xf4] sm:$0xf0] }
 0x231   :  { %4960 = vmatpush.bf16.msra.mxu0 %v7696_v31 }
 0x232   :  { %4085 = vmatpush.bf16.msra.mxu3 %v7100_v38 }
 0x233   :  { %4124 = vmatpush.bf16.msrb.mxu2 %v7484_v2  ;;  %v8592_v2 = vld [vmem:[%s13275_s6 + $0x30c] sm:$0xf] }
 0x234   :  { %v7292_v5 = vor.u32 %v8592_v2, %v7289_v4  ;;  %v8691_v4 = vld [vmem:[%s13276_s7 + $0x24] sm:$0xf] }
 0x235   :  { %4961 = vmatpush.bf16.msra.mxu0 %v7680_v45  ;;  %v8699_v45 = vld [vmem:[%s13276_s7 + $0x64] sm:$0xf] }
 0x236   :  { %4086 = vmatpush.bf16.msra.mxu3 %v7084_v3  ;;  %4115 = vmatpush.bf16.msrb.mxu1 %v7292_v5  ;;  %v7625_v3 = vld [vmem:[%s13275_s6 + $0x5b8] sm:$0xf0]  ;;  %v7716_v54 = vor.u32 %v8699_v45, %v7713_v46  ;;  %v8729_v45 = vld [vmem:[%s13276_s7 + $0x14c] sm:$0xf0] }
 0x237   :  { %4125 = vmatpush.bf16.msrb.mxu2 %v7468_v23  ;;  %v2552_v23 = vsel %vm2548_vm0, %v12188_v60, 0.0  ;;  %v12237_v35 = vpop.f32.mrf.mxu1  ;;  %v3898_v32 = vpop.f32.mrf.mxu0  ;;  %v7628_v61 = vor.u32 %v8676_v49, %v7625_v3  ;;  %v7807_v3 = vld [vmem:[%s13276_s7 + $0x120] sm:$0xf] }
 0x238   :  { %v2553_v31 = vadd.f32 %v2552_v23, %v2551_v24  ;;  %v7668_v23 = vor.u32 %v8687_v12, %v7665_v44  ;;  %v7839_v32 = vld [vmem:[%s13276_s7 + $0x160] sm:$0xf]  ;;  %v7808_v52 = vor.u32 %v8725_v51, %v7807_v3  ;;  %v8743_v12 = vld [vmem:[%s13276_s7 + $0x1c4] sm:$0xf]  ;;  %v7719_v3 = vld [vmem:[%s13276_s7 + $0x68] sm:$0xf] }
 0x239   :  { %4962 = vmatpush.bf16.msra.mxu0 %v7664_v62  ;;  %4116 = vmatmul.bf16.vlgmr.msrb.gmra.mxu1 %v11470_v39  ;;  %v3872_v39 = vpop.f32.mrf.mxu2  ;;  %v8672_v62 = vld [vmem:[%s13275_s6 + $0x58c] sm:$0xf]  ;;  %v8702_v51 = vld [vmem:[%s13276_s7 + $0x74] sm:$0xf0] }
 0x23a   :  { %4087 = vmatpush.bf16.msra.mxu3 %v7068_v8  ;;  %v2555_v38 = vadd.f32 %v2554_v22, %v2553_v31  ;;  %4968 = vmatpush.bf16.msra.mxu1 %v7904_v18  ;;  %v3858_v8 = vadd.f32 %v12100_v11, %v12061_v48  ;;  %v8745_v48 = vld [vmem:[%s13276_s7 + $0x1cc] sm:$0xf0]  ;;  %v8664_v11 = vld [vmem:[%s13275_s6 + $0x54c] sm:$0xf]  ;;  %v7855_v22 = vld [vmem:[%s13276_s7 + $0x180] sm:$0xf] }
 0x23b   :  { %4126 = vmatpush.bf16.msrb.mxu2 %v7452_v41  ;;  %v8703_v41 = vld [vmem:[%s13276_s7 + $0x84] sm:$0xf]  ;;  %v7888_v17 = vor.u32 %v8745_v48, %v7887_v26  ;;  %v7889_v26 = vld [vmem:[%s13276_s7 + $0x1d0] sm:$0xf0]  ;;  %v7784_v48 = vor.u32 %v8718_v7, %v7783_v53  ;;  %v7703_v53 = vld [vmem:[%s13276_s7 + $0x48] sm:$0xf] }
 0x23c   :  { %2556 = vadd.xlane.f32.xlu0 %v2555_v38  ;;  %v7732_v37 = vor.u32 %v8703_v41, %v7729_v34  ;;  %v3871_v1 = vadd.f32 %v12179_v56, %v3858_v8  ;;  %v7561_v56 = vld [vmem:[%s13275_s6 + $0x538] sm:$0xf0]  ;;  %v8031_v8 = vld [vmem:[%s13276_s7 + $0x2e0] sm:$0xf]  ;;  %v8698_v7 = vld [vmem:[%s13276_s7 + $0x54] sm:$0xf0] }
 0x23d   :  { %5007 = vmatpush.bf16.msrb.mxu0 %v7780_v28  ;;  %v7681_v28 = vld [vmem:[%s13276_s7 + $0x30] sm:$0xf0]  ;;  %v7564_v39 = vor.u32 %v8660_v30, %v7561_v56  ;;  %v7545_v38 = vld [vmem:[%s13275_s6 + $0x518] sm:$0xf0]  ;;  %v8739_v30 = vld [vmem:[%s13276_s7 + $0x1a4] sm:$0xf] }
 0x23e   :  { %4088 = vmatpush.bf16.msra.mxu3 %v7052_v13  ;;  %v7684_v10 = vor.u32 %v8691_v4, %v7681_v28  ;;  %4969 = vmatpush.bf16.msra.mxu1 %v7888_v17  ;;  %v8741_v13 = vld [vmem:[%s13276_s7 + $0x1ac] sm:$0xf0]  ;;  %v7548_v41 = vor.u32 %v8656_v14, %v7545_v38  ;;  %v7999_v14 = vld [vmem:[%s13276_s7 + $0x2a0] sm:$0xf] }
 0x23f   :  { %4127 = vmatpush.bf16.msrb.mxu2 %v7436_v59  ;;  %v3911_v20 = vpop.f32.mrf.mxu1  ;;  %v8695_v59 = vld [vmem:[%s13276_s7 + $0x44] sm:$0xf]  ;;  %v8773_v38 = vld [vmem:[%s13276_s7 + $0x2ac] sm:$0xf0] }
 0x240   :  { %v7700_v2 = vor.u32 %v8695_v59, %v7697_v57  ;;  %v8721_v59 = vld [vmem:[%s13276_s7 + $0x10c] sm:$0xf0] }
 0x241   :  { %5008 = vmatpush.bf16.msrb.mxu0 %v7764_v25  ;;  %v7871_v25 = vld [vmem:[%s13276_s7 + $0x1a0] sm:$0xf] }
 0x242   :  { %4089 = vmatpush.bf16.msra.mxu3 %v7036_v40  ;;  %v7872_v31 = vor.u32 %v8741_v13, %v7871_v25  ;;  %v8015_v13 = vld [vmem:[%s13276_s7 + $0x2c0] sm:$0xf] }
 0x243   :  { %4128 = vmatpush.bf16.msrb.mxu2 %v7420_v36  ;;  %v7577_v36 = vld [vmem:[%s13275_s6 + $0x558] sm:$0xf0] }
 0x244   :  { %v7580_v24 = vor.u32 %v8664_v11, %v7577_v36  ;;  %4970 = vmatpush.bf16.msra.mxu1 %v7872_v31  ;;  %v7892_v11 = vor.u32 %v8743_v12, %v7889_v26  ;;  %v7873_v31 = vld [vmem:[%s13276_s7 + $0x1b0] sm:$0xf0]  ;;  %v7704_v26 = vor.u32 %v8698_v7, %v7703_v53  ;;  %v8704_v53 = vld [vmem:[%s13276_s7 + $0x8c] sm:$0xf]  ;;  %v7737_v7 = vld [vmem:[%s13276_s7 + $0x98] sm:$0xf0] }
 0x245   :  { %5009 = vmatpush.bf16.msrb.mxu0 %v7748_v15  ;;  %4090 = vmatmul.bf16.vlgmr.msra.gmra.mxu3 %v11209_v9  ;;  %v7609_v9 = vld [vmem:[%s13275_s6 + $0x598] sm:$0xf0]  ;;  %v7856_v15 = vor.u32 %v8737_v21, %v7855_v22  ;;  %v7751_v22 = vld [vmem:[%s13276_s7 + $0xa8] sm:$0xf]  ;;  %v8710_v21 = vld [vmem:[%s13276_s7 + $0xb4] sm:$0xf0] }
 0x246   :  { %4129 = vmatmul.bf16.vlgmr.msrb.gmra.mxu2 %v11317_v6  ;;  %v7641_v6 = vld [vmem:[%s13275_s6 + $0x5d8] sm:$0xf0]  ;;  %4134 = vmatpush.bf16.msrb.mxu3 %v7660_v42  ;;  %v7612_v5 = vor.u32 %v8672_v62, %v7609_v9  ;;  %v8733_v42 = vld [vmem:[%s13276_s7 + $0x16c] sm:$0xf0]  ;;  %v7905_v62 = vld [vmem:[%s13276_s7 + $0x1f0] sm:$0xf0] }
 0x247   :  { %v7644_v55 = vor.u32 %v8680_v43, %v7641_v6 }
 0x248   :  { %v3883_v29 = vpop.f32.mrf.mxu3  ;;  %4971 = vmatpush.bf16.msra.mxu1 %v7856_v15  ;;  %v12379_v18 = vpop.f32.mrf.mxu1  ;;  %v8735_v15 = vld [vmem:[%s13276_s7 + $0x184] sm:$0xf] }
 0x249   :  { %5010 = vmatpush.bf16.msrb.mxu0 %v7732_v37  ;;  %v3884_v19 = vadd.f32 %v3883_v29, %v3871_v1  ;;  %v12353_v34 = vpop.f32.mrf.mxu2  ;;  %v7823_v37 = vld [vmem:[%s13276_s7 + $0x140] sm:$0xf]  ;;  %v8777_v29 = vld [vmem:[%s13276_s7 + $0x2cc] sm:$0xf0] }
 0x24a   :  { %4135 = vmatpush.bf16.msrb.mxu3 %v7644_v55  ;;  %v7824_v46 = vor.u32 %v8729_v45, %v7823_v37  ;;  %v8016_v56 = vor.u32 %v8777_v29, %v8015_v13  ;;  %v8731_v37 = vld [vmem:[%s13276_s7 + $0x164] sm:$0xf]  ;;  %v7793_v29 = vld [vmem:[%s13276_s7 + $0x110] sm:$0xf0] }
 0x24b   :  { %v3897_v16 = vadd.f32 %v12203_v63, %v3884_v19 }
 0x24d   :  { %5011 = vmatpush.bf16.msrb.mxu0 %v7716_v54  ;;  %v12350_v63 = vadd.f32 %v12237_v35, %v3897_v16  ;;  %v7840_v35 = vor.u32 %v8733_v42, %v7839_v32  ;;  %v12377_v54 = vpop.f32.mrf.mxu0  ;;  %v7876_v16 = vor.u32 %v8739_v30, %v7873_v31  ;;  %v7752_v32 = vor.u32 %v8710_v21, %v7751_v22  ;;  %v8706_v42 = vld [vmem:[%s13276_s7 + $0x94] sm:$0xf0]  ;;  %v7785_v22 = vld [vmem:[%s13276_s7 + $0xf8] sm:$0xf0]  ;;  %v7919_v21 = vld [vmem:[%s13276_s7 + $0x200] sm:$0xf] }
 0x24e   :  { %4136 = vmatpush.bf16.msrb.mxu3 %v7628_v61  ;;  %v8747_v61 = vld [vmem:[%s13276_s7 + $0x1e4] sm:$0xf] }
 0x24f   :  { %v4151_v40 = vmul.f32 0.044715, %v12350_v63  ;;  %4972 = vmatpush.bf16.msra.mxu1 %v7840_v35  ;;  %v4147_v9 = vmul.f32 0.5, %v12350_v63  ;;  %v7983_v35 = vld [vmem:[%s13276_s7 + $0x280] sm:$0xf] }
 0x250   :  { %v3885_v0 = vpop.f32.mrf.mxu3  ;;  %v3963_v17 = vpop.f32.mrf.mxu1 }
 0x251   :  { %5012 = vmatpush.bf16.msrb.mxu0 %v7700_v2  ;;  %v4155_v43 = vmul.f32 %v4151_v40, %v12350_v63  ;;  %v3924_v20 = vpop.f32.mrf.mxu2  ;;  %v7908_v2 = vor.u32 %v8747_v61, %v7905_v62  ;;  %v8000_v40 = vor.u32 %v8773_v38, %v7999_v14  ;;  %v7735_v0 = vld [vmem:[%s13276_s7 + $0x88] sm:$0xf]  ;;  %v8727_v61 = vld [vmem:[%s13276_s7 + $0x144] sm:$0xf]  ;;  %v8753_v14 = vld [vmem:[%s13276_s7 + $0x20c] sm:$0xf0] }
 0x252   :  { %4137 = vmatpush.bf16.msrb.mxu3 %v7612_v5  ;;  %v7736_v20 = vor.u32 %v8706_v42, %v7735_v0  ;;  %v7920_v38 = vor.u32 %v8753_v14, %v7919_v21 }
 0x253   :  { %v4159_v6 = vmul.f32 %v4155_v43, %v12350_v63  ;;  %4973 = vmatpush.bf16.msra.mxu1 %v7824_v46 }
 0x255   :  { %5013 = vmatpush.bf16.msrb.mxu0 %v7684_v10  ;;  %v4163_v55 = vadd.f32 %v4159_v6, %v12350_v63  ;;  %v8781_v10 = vld [vmem:[%s13276_s7 + $0x2ec] sm:$0xf0]  ;;  %v3950_v36 = vpop.f32.mrf.mxu0 }
 0x256   :  { %4138 = vmatpush.bf16.msrb.mxu3 %v7596_v47  ;;  %v8032_v47 = vor.u32 %v8781_v10, %v8031_v8  ;;  %v8769_v6 = vld [vmem:[%s13276_s7 + $0x28c] sm:$0xf0]  ;;  %v7951_v8 = vld [vmem:[%s13276_s7 + $0x240] sm:$0xf]  ;;  %v8694_v36 = vld [vmem:[%s13276_s7 + $0x34] sm:$0xf0] }
 0x257   :  { %v4167_v49 = vmul.f32 0.7978846, %v4163_v55  ;;  %4974 = vmatpush.bf16.msra.mxu1 %v7808_v52  ;;  %v7984_v46 = vor.u32 %v8769_v6, %v7983_v35  ;;  %v7841_v55 = vld [vmem:[%s13276_s7 + $0x170] sm:$0xf0]  ;;  %v8761_v10 = vld [vmem:[%s13276_s7 + $0x24c] sm:$0xf0] }
 0x258   :  { %4981 = vmatpush.bf16.msra.mxu2 %v8032_v47  ;;  %v7952_v12 = vor.u32 %v8761_v10, %v7951_v8  ;;  %v7769_v35 = vld [vmem:[%s13276_s7 + $0xd8] sm:$0xf0] }
 0x259   :  { %5014 = vmatpush.bf16.msrb.mxu0 %v7668_v23  ;;  %8826 = vtanh.f32 %v4167_v49  ;;  %v7767_v23 = vld [vmem:[%s13276_s7 + $0xc8] sm:$0xf]  ;;  %v7844_v49 = vor.u32 %v8731_v37, %v7841_v55 }
 0x25a   :  { %4139 = vmatpush.bf16.msrb.mxu3 %v7580_v24  ;;  %v8714_v24 = vld [vmem:[%s13276_s7 + $0xd4] sm:$0xf0] }
 0x25b   :  { %v7768_v19 = vor.u32 %v8714_v24, %v7767_v23  ;;  %v7935_v24 = vld [vmem:[%s13276_s7 + $0x220] sm:$0xf] }
 0x25c   :  { %4982 = vmatpush.bf16.msra.mxu2 %v8016_v56 }
 0x25d   :  { %v12477_v52 = vpop.f32.mrf.mxu0 }
 0x25e   :  { %4140 = vmatpush.bf16.msrb.mxu3 %v7564_v39 }
 0x25f   :  { %v8827_v4 = vpop.eup %8826 }
 0x260   :  { %v4175_v5 = vadd.f32 1.0, %v8827_v4  ;;  %4983 = vmatpush.bf16.msra.mxu2 %v8000_v40  ;;  %v8033_v40 = vld [vmem:[%s13276_s7 + $0x2f0] sm:$0xf0] }
 0x262   :  { %4141 = vmatpush.bf16.msrb.mxu3 %v7548_v41  ;;  %v4179_v44 = vmul.f32 %v4175_v5, %v4147_v9  ;;  %v7857_v41 = vld [vmem:[%s13276_s7 + $0x190] sm:$0xf0]  ;;  %v7720_v5 = vor.u32 %v8702_v51, %v7719_v3  ;;  %v8708_v3 = vld [vmem:[%s13276_s7 + $0xac] sm:$0xf]  ;;  %v7753_v51 = vld [vmem:[%s13276_s7 + $0xb8] sm:$0xf0] }
 0x263   :  { %v7860_v43 = vor.u32 %v8735_v15, %v7857_v41  ;;  %v7825_v9 = vld [vmem:[%s13276_s7 + $0x150] sm:$0xf0]  ;;  %v8779_v15 = vld [vmem:[%s13276_s7 + $0x2e4] sm:$0xf] }
 0x264   :  { %v12414_v1 = vpack.c.bf16 %v4179_v44, %v4179_v44  ;;  %4984 = vmatpush.bf16.msra.mxu2 %v7984_v46  ;;  %v7809_v44 = vld [vmem:[%s13276_s7 + $0x130] sm:$0xf0]  ;;  %v8036_v0 = vor.u32 %v8779_v15, %v8033_v40  ;;  %v8755_v15 = vld [vmem:[%s13276_s7 + $0x224] sm:$0xf] }
 0x265   :  { %4142 = vmatmul.bf16.vlgmr.msrb.gmra.mxu3 %v11331_v33  ;;  %v7791_v33 = vld [vmem:[%s13276_s7 + $0x100] sm:$0xf]  ;;  %v4002_v17 = vpop.f32.mrf.mxu0  ;;  %v7937_v40 = vld [vmem:[%s13276_s7 + $0x230] sm:$0xf0] }
 0x266   :  { %v7792_v57 = vor.u32 %v8721_v59, %v7791_v33  ;;  %4963 = vmatmul.bf16.vlgmr.msra.gmra.mxu0 %v12414_v1  ;;  %v7967_v59 = vld [vmem:[%s13276_s7 + $0x260] sm:$0xf] }
 0x267   :  { %5059 = vmatpush.bf16.msra.mxu0 %v7784_v48 }
 0x268   :  { %4975 = vmatpush.bf16.msra.mxu1 %v7792_v57  ;;  %v3935_v25 = vpop.f32.mrf.mxu3  ;;  %v12479_v33 = vpop.f32.mrf.mxu1  ;;  %v8765_v57 = vld [vmem:[%s13276_s7 + $0x26c] sm:$0xf0] }
 0x269   :  { %v12394_v28 = vpop.f32.mrf.mxu2  ;;  %v7968_v62 = vor.u32 %v8765_v57, %v7967_v59  ;;  %v3936_v4 = vadd.f32 %v3935_v25, %v12353_v34  ;;  %v8723_v34 = vld [vmem:[%s13276_s7 + $0x124] sm:$0xf]  ;;  %v8757_v25 = vld [vmem:[%s13276_s7 + $0x22c] sm:$0xf0] }
 0x26a   :  { %v7812_v47 = vor.u32 %v8723_v34, %v7809_v44  ;;  %v7936_v13 = vor.u32 %v8757_v25, %v7935_v24  ;;  %v8767_v34 = vld [vmem:[%s13276_s7 + $0x284] sm:$0xf]  ;;  %v7969_v24 = vld [vmem:[%s13276_s7 + $0x270] sm:$0xf0] }
 0x26b   :  { %5060 = vmatpush.bf16.msra.mxu0 %v7768_v19  ;;  %4985 = vmatpush.bf16.msra.mxu2 %v7968_v62  ;;  %v3949_v48 = vadd.f32 %v12377_v54, %v3936_v4  ;;  %v8719_v54 = vld [vmem:[%s13276_s7 + $0x104] sm:$0xf]  ;;  %v7671_v19 = vld [vmem:[%s13276_s7 + $0x8] sm:$0xf]  ;;  %v8001_v62 = vld [vmem:[%s13276_s7 + $0x2b0] sm:$0xf0]  ;;  %v7756_v4 = vor.u32 %v8708_v3, %v7753_v51 }
 0x26c   :  { %5020 = vmatpush.bf16.msrb.mxu1 %v7908_v2  ;;  %v7828_v2 = vor.u32 %v8727_v61, %v7825_v9  ;;  %v7796_v30 = vor.u32 %v8719_v54, %v7793_v29  ;;  %v8771_v61 = vld [vmem:[%s13276_s7 + $0x2a4] sm:$0xf]  ;;  %v8696_v29 = vld [vmem:[%s13276_s7 + $0x4c] sm:$0xf] }
 0x26d   :  { %v3962_v56 = vadd.f32 %v12379_v18, %v3949_v48  ;;  %v7740_v48 = vor.u32 %v8704_v53, %v7737_v7  ;;  %v8688_v51 = vld [vmem:[%s13276_s7 + $0xc] sm:$0xf]  ;;  %v8809_v53 = vld [vmem:[%s13276_s7 + $0x3cc] sm:$0xf0] }
 0x26f   :  { %5061 = vmatpush.bf16.msra.mxu0 %v7752_v32  ;;  %4986 = vmatpush.bf16.msra.mxu2 %v7952_v12  ;;  %v3975_v41 = vadd.f32 %v12394_v28, %v3962_v56  ;;  %v8775_v28 = vld [vmem:[%s13276_s7 + $0x2c4] sm:$0xf]  ;;  %v7985_v12 = vld [vmem:[%s13276_s7 + $0x290] sm:$0xf0]  ;;  %v7705_v56 = vld [vmem:[%s13276_s7 + $0x58] sm:$0xf0] }
 0x270   :  { %5021 = vmatpush.bf16.msrb.mxu1 %v7892_v11  ;;  %v3937_v45 = vpop.f32.mrf.mxu3  ;;  %v7687_v11 = vld [vmem:[%s13276_s7 + $0x28] sm:$0xf]  ;;  %v4015_v23 = vpop.f32.mrf.mxu1 }
 0x271   :  { %v3976_v39 = vpop.f32.mrf.mxu2  ;;  %v7688_v31 = vor.u32 %v8694_v36, %v7687_v11  ;;  %v8017_v45 = vld [vmem:[%s13276_s7 + $0x2d0] sm:$0xf0]  ;;  %v8700_v11 = vld [vmem:[%s13276_s7 + $0x6c] sm:$0xf]  ;;  %v7721_v36 = vld [vmem:[%s13276_s7 + $0x78] sm:$0xf0] }
 0x272   :  { %v8716_v39 = vld [vmem:[%s13276_s7 + $0xec] sm:$0xf]  ;;  %v8020_v55 = vor.u32 %v8775_v28, %v8017_v45  ;;  %v8763_v23 = vld [vmem:[%s13276_s7 + $0x264] sm:$0xf]  ;;  %v8813_v28 = vld [vmem:[%s13276_s7 + $0x3ec] sm:$0xf0] }
 0x273   :  { %5062 = vmatpush.bf16.msra.mxu0 %v7736_v20  ;;  %4987 = vmatpush.bf16.msra.mxu2 %v7936_v13  ;;  %v7788_v42 = vor.u32 %v8716_v39, %v7785_v22  ;;  %v7972_v25 = vor.u32 %v8763_v23, %v7969_v24  ;;  %v7724_v13 = vor.u32 %v8700_v11, %v7721_v36  ;;  %v8692_v22 = vld [vmem:[%s13276_s7 + $0x2c] sm:$0xf]  ;;  %v7863_v24 = vld [vmem:[%s13276_s7 + $0x188] sm:$0xf] }
 0x274   :  { %5022 = vmatpush.bf16.msrb.mxu1 %v7876_v16  ;;  %v8690_v16 = vld [vmem:[%s13276_s7 + $0x14] sm:$0xf0]  ;;  %v7708_v39 = vor.u32 %v8696_v29, %v7705_v56  ;;  %v8801_v29 = vld [vmem:[%s13276_s7 + $0x38c] sm:$0xf0] }
 0x275   :  { %v7672_v32 = vor.u32 %v8690_v16, %v7671_v19  ;;  %v7953_v19 = vld [vmem:[%s13276_s7 + $0x250] sm:$0xf0] }
 0x276   :  { %5015 = vmatmul.bf16.vlgmr.msrb.gmra.mxu0 %v12414_v1 }
 0x277   :  { %5063 = vmatpush.bf16.msra.mxu0 %v7720_v5  ;;  %4988 = vmatpush.bf16.msra.mxu2 %v7920_v38  ;;  %v7689_v38 = vld [vmem:[%s13276_s7 + $0x38] sm:$0xf0] }
 0x278   :  { %5023 = vmatpush.bf16.msrb.mxu1 %v7860_v43  ;;  %v8712_v43 = vld [vmem:[%s13276_s7 + $0xcc] sm:$0xf]  ;;  %v7692_v45 = vor.u32 %v8692_v22, %v7689_v38  ;;  %v8734_v22 = vld [vmem:[%s13276_s7 + $0x174] sm:$0xf0] }
 0x279   :  { %v12566_v6 = vpop.f32.mrf.mxu0 }
 0x27b   :  { %5064 = vmatpush.bf16.msra.mxu0 %v7704_v26  ;;  %5033 = vmatpush.bf16.msrb.mxu2 %v8036_v0  ;;  %v7988_v26 = vor.u32 %v8767_v34, %v7985_v12  ;;  %v7911_v0 = vld [vmem:[%s13276_s7 + $0x1e8] sm:$0xf] }
 0x27c   :  { %5024 = vmatpush.bf16.msrb.mxu1 %v7844_v49  ;;  %v7772_v49 = vor.u32 %v8712_v43, %v7769_v35  ;;  %v7940_v43 = vor.u32 %v8755_v15, %v7937_v40  ;;  %v4014_v35 = vadd.f32 %v12479_v33, %v12477_v52  ;;  %v7673_v52 = vld [vmem:[%s13276_s7 + $0x18] sm:$0xf0]  ;;  %v7895_v33 = vld [vmem:[%s13276_s7 + $0x1c8] sm:$0xf]  ;;  %v8797_v15 = vld [vmem:[%s13276_s7 + $0x36c] sm:$0xf0] }
 0x27d   :  { %v7676_v7 = vor.u32 %v8688_v51, %v7673_v52  ;;  %v7879_v12 = vld [vmem:[%s13276_s7 + $0x1a8] sm:$0xf] }
 0x27f   :  { %5065 = vmatpush.bf16.msra.mxu0 %v7688_v31  ;;  %5034 = vmatpush.bf16.msrb.mxu2 %v8020_v55  ;;  %v8759_v31 = vld [vmem:[%s13276_s7 + $0x244] sm:$0xf] }
 0x280   :  { %5025 = vmatpush.bf16.msrb.mxu1 %v7828_v2  ;;  %v8004_v2 = vor.u32 %v8771_v61, %v8001_v62  ;;  %v7956_v16 = vor.u32 %v8759_v31, %v7953_v19  ;;  %v8746_v61 = vld [vmem:[%s13276_s7 + $0x1d4] sm:$0xf0]  ;;  %v8751_v62 = vld [vmem:[%s13276_s7 + $0x204] sm:$0xf] }
 0x281   :  { %v4054_v8 = vpop.f32.mrf.mxu0 }
 0x283   :  { %5066 = vmatpush.bf16.msra.mxu0 %v7672_v32  ;;  %5035 = vmatpush.bf16.msrb.mxu2 %v8004_v2 }
 0x284   :  { %5026 = vmatpush.bf16.msrb.mxu1 %v7812_v47  ;;  %v8858_v47 = vmov 512.0  }
 0x285   :  { %8828 = vrcp.f32 %v8858_v47  ;;  %v8127_v47 = vld [vmem:[%s13276_s7 + $0x3a0] sm:$0xf] }
 0x286   :  { %5067 = vmatmul.bf16.vlgmr.msra.gmra.mxu0 %v12414_v1 }
 0x287   :  { %5111 = vmatpush.bf16.msrb.mxu0 %v7788_v42  ;;  %5036 = vmatpush.bf16.msrb.mxu2 %v7988_v26  ;;  %v8750_v42 = vld [vmem:[%s13276_s7 + $0x1f4] sm:$0xf0]  ;;  %v8805_v26 = vld [vmem:[%s13276_s7 + $0x3ac] sm:$0xf0] }
 0x288   :  { %5027 = vmatpush.bf16.msrb.mxu1 %v7796_v30  ;;  %v3987_v37 = vpop.f32.mrf.mxu3  ;;  %v7912_v3 = vor.u32 %v8750_v42, %v7911_v0  ;;  %v8128_v11 = vor.u32 %v8805_v26, %v8127_v47  ;;  %v7799_v47 = vld [vmem:[%s13276_s7 + $0x108] sm:$0xf] }
 0x289   :  { %v12545_v18 = vpop.f32.mrf.mxu2  ;;  %v12574_v46 = vadd.f32 %v3987_v37, %v3975_v41  ;;  %v8159_v37 = vld [vmem:[%s13276_s7 + $0x3e0] sm:$0xf] }
 0x28a   :  { %v4027_v2 = vadd.f32 %v12545_v18, %v4014_v35  ;;  %v7896_v18 = vor.u32 %v8746_v61, %v7895_v33 }
 0x28b   :  { %v4152_v20 = vmul.f32 0.044715, %v12574_v46  ;;  %v12584_v57 = vpop.f32.mrf.mxu1  ;;  %5112 = vmatpush.bf16.msrb.mxu0 %v7772_v49  ;;  %v12622_v30 = vpop.eup %8828  ;;  %5037 = vmatpush.bf16.msrb.mxu2 %v7972_v25  ;;  %v4148_v41 = vmul.f32 0.5, %v12574_v46 }
 0x28c   :  { %v2559_v21 = vmul.f32 512.0, %v12622_v30  ;;  %vm2563_vm1 = vweird.f32 %v12622_v30 }
 0x28d   :  { %v4156_v9 = vmul.f32 %v4152_v20, %v12574_v46  ;;  %v8160_v20 = vor.u32 %v8813_v28, %v8159_v37 }
 0x28e   :  { %v2560_v49 = vsub.f32 1.0, %v2559_v21 }
 0x28f   :  { %v4160_v5 = vmul.f32 %v4156_v9, %v12574_v46  ;;  %5113 = vmatpush.bf16.msrb.mxu0 %v7756_v4  ;;  %5038 = vmatpush.bf16.msrb.mxu2 %v7956_v16  ;;  %v7921_v9 = vld [vmem:[%s13276_s7 + $0x210] sm:$0xf0] }
 0x290   :  { %v3989_v10 = vpop.f32.mrf.mxu3  ;;  %4994 = vmatpush.bf16.msra.mxu3 %v8160_v20  ;;  %v7924_v4 = vor.u32 %v8751_v62, %v7921_v9  ;;  %v2561_v8 = vmul.f32 %v12622_v30, %v2560_v49  ;;  %v7815_v62 = vld [vmem:[%s13276_s7 + $0x128] sm:$0xf]  ;;  %v8726_v9 = vld [vmem:[%s13276_s7 + $0x134] sm:$0xf0] }
 0x291   :  { %v4028_v59 = vpop.f32.mrf.mxu2  ;;  %v4164_v44 = vadd.f32 %v4160_v5, %v12574_v46  ;;  %v8143_v5 = vld [vmem:[%s13276_s7 + $0x3c0] sm:$0xf] }
 0x292   :  { %v8144_v34 = vor.u32 %v8809_v53, %v8143_v5  ;;  %v8063_v5 = vld [vmem:[%s13276_s7 + $0x320] sm:$0xf]  ;;  %v8789_v53 = vld [vmem:[%s13276_s7 + $0x32c] sm:$0xf0] }
 0x293   :  { %v4168_v17 = vmul.f32 0.7978846, %v4164_v44  ;;  %v4067_v54 = vpop.f32.mrf.mxu1  ;;  %5114 = vmatpush.bf16.msrb.mxu0 %v7740_v48  ;;  %5039 = vmatpush.bf16.msrb.mxu2 %v7940_v43  ;;  %v8742_v44 = vld [vmem:[%s13276_s7 + $0x1b4] sm:$0xf0]  ;;  %v7831_v43 = vld [vmem:[%s13276_s7 + $0x148] sm:$0xf] }
 0x294   :  { %4995 = vmatpush.bf16.msra.mxu3 %v8144_v34  ;;  %v7880_v23 = vor.u32 %v8742_v44, %v7879_v12  ;;  %v8738_v54 = vld [vmem:[%s13276_s7 + $0x194] sm:$0xf0]  ;;  %v8064_v34 = vor.u32 %v8789_v53, %v8063_v5  ;;  %v7816_v44 = vor.u32 %v8726_v9, %v7815_v62  ;;  %v8007_v62 = vld [vmem:[%s13276_s7 + $0x2a8] sm:$0xf]  ;;  %v8799_v5 = vld [vmem:[%s13276_s7 + $0x384] sm:$0xf] }
 0x295   :  { %8830 = vtanh.f32 %v4168_v17  ;;  %v2562_v17 = vadd.f32 %v12622_v30, %v2561_v8  ;;  %v7864_v16 = vor.u32 %v8738_v54, %v7863_v24  ;;  %v8811_v54 = vld [vmem:[%s13276_s7 + $0x3e4] sm:$0xf]  ;;  %v8774_v9 = vld [vmem:[%s13276_s7 + $0x2b4] sm:$0xf0]  ;;  %v8113_v53 = vld [vmem:[%s13276_s7 + $0x390] sm:$0xf0] }
 0x297   :  { %5115 = vmatpush.bf16.msrb.mxu0 %v7724_v13  ;;  %5040 = vmatpush.bf16.msrb.mxu2 %v7924_v4  ;;  %v8111_v13 = vld [vmem:[%s13276_s7 + $0x380] sm:$0xf] }
 0x298   :  { %4996 = vmatpush.bf16.msra.mxu3 %v8128_v11  ;;  %v8112_v56 = vor.u32 %v8801_v29, %v8111_v13  ;;  %v8047_v11 = vld [vmem:[%s13276_s7 + $0x300] sm:$0xf]  ;;  %v8161_v13 = vld [vmem:[%s13276_s7 + $0x3f0] sm:$0xf0] }
 0x29b   :  { %v8831_v14 = vpop.eup %8830  ;;  %5116 = vmatpush.bf16.msrb.mxu0 %v7708_v39  ;;  %v7847_v39 = vld [vmem:[%s13276_s7 + $0x168] sm:$0xf] }
 0x29c   :  { %v4176_v32 = vadd.f32 1.0, %v8831_v14  ;;  %4997 = vmatpush.bf16.msra.mxu3 %v8112_v56 }
 0x29e   :  { %v4180_v55 = vmul.f32 %v4176_v32, %v4148_v41  ;;  %v7848_v41 = vor.u32 %v8734_v22, %v7847_v39 }
 0x29f   :  { %5117 = vmatpush.bf16.msrb.mxu0 %v7692_v45  ;;  %v8793_v45 = vld [vmem:[%s13276_s7 + $0x34c] sm:$0xf0] }
 0x2a0   :  { %v12670_v59 = vpack.c.bf16 %v4180_v55, %v4180_v55 }
 0x2a2   :  { %4976 = vmatmul.bf16.vlgmr.msra.gmra.mxu1 %v12670_v59 }
 0x2a3   :  { %5072 = vmatpush.bf16.msra.mxu1 %v7912_v3  ;;  %5118 = vmatpush.bf16.msrb.mxu0 %v7676_v7 }
 0x2a6   :  { %5119 = vmatmul.bf16.vlgmr.msrb.gmra.mxu0 %v12414_v1 }
 0x2a7   :  { %5073 = vmatpush.bf16.msra.mxu1 %v7896_v18 }
 0x2a8   :  { %v4039_v48 = vpop.f32.mrf.mxu3 }
 0x2a9   :  { %v12690_v10 = vpop.f32.mrf.mxu2  ;;  %v4040_v36 = vadd.f32 %v4039_v48, %v4027_v2  ;;  %v8722_v48 = vld [vmem:[%s13276_s7 + $0x114] sm:$0xf0] }
 0x2aa   :  { %v7800_v29 = vor.u32 %v8722_v48, %v7799_v47  ;;  %v7849_v47 = vld [vmem:[%s13276_s7 + $0x178] sm:$0xf0]  ;;  %v8097_v48 = vld [vmem:[%s13276_s7 + $0x370] sm:$0xf0] }
 0x2ab   :  { %v4053_v25 = vadd.f32 %v12566_v6, %v4040_v36  ;;  %v12724_v6 = vsel %vm2563_vm1, %v12622_v30, %v2562_v17  ;;  %5074 = vmatpush.bf16.msra.mxu1 %v7880_v23  ;;  %v8095_v30 = vld [vmem:[%s13276_s7 + $0x360] sm:$0xf]  ;;  %v8785_v36 = vld [vmem:[%s13276_s7 + $0x30c] sm:$0xf0]  ;;  %v8748_v17 = vld [vmem:[%s13276_s7 + $0x1ec] sm:$0xf] }
 0x2ac   :  { %v8096_v32 = vor.u32 %v8797_v15, %v8095_v30  ;;  %v7913_v23 = vld [vmem:[%s13276_s7 + $0x1f8] sm:$0xf0]  ;;  %v8807_v15 = vld [vmem:[%s13276_s7 + $0x3c4] sm:$0xf] }
 0x2ad   :  { %v12721_v31 = vadd.f32 %v12584_v57, %v4053_v25  ;;  %v12733_v57 = vpop.f32.mrf.mxu0  ;;  %v8048_v25 = vor.u32 %v8785_v36, %v8047_v11  ;;  %v7916_v22 = vor.u32 %v8748_v17, %v7913_v23 }
 0x2ae   :  { %4998 = vmatpush.bf16.msra.mxu3 %v8096_v32 }
 0x2af   :  { %v4153_v1 = vmul.f32 0.044715, %v12721_v31  ;;  %v2557_v21 = vpop.xlane.xlu0 %2556  ;;  %5075 = vmatpush.bf16.msra.mxu1 %v7864_v16  ;;  %v4149_v56 = vmul.f32 0.5, %v12721_v31  ;;  %v8164_v16 = vor.u32 %v8811_v54, %v8161_v13  ;;  %v8728_v54 = vld [vmem:[%s13276_s7 + $0x14c] sm:$0xf] }
 0x2b0   :  { %v2565_v14 = vmul.f32 %v12724_v6, %v2557_v21  ;;  %v4041_v38 = vpop.f32.mrf.mxu3  ;;  %v8782_v21 = vld [vmem:[%s13276_s7 + $0x2f4] sm:$0xf0]  ;;  %v7833_v13 = vld [vmem:[%s13276_s7 + $0x158] sm:$0xf0] }
 0x2b1   :  { %v4080_v19 = vpop.f32.mrf.mxu2  ;;  %v4157_v40 = vmul.f32 %v4153_v1, %v12721_v31  ;;  %v8039_v1 = vld [vmem:[%s13276_s7 + $0x2e8] sm:$0xf]  ;;  %v7897_v38 = vld [vmem:[%s13276_s7 + $0x1d8] sm:$0xf0] }
 0x2b2   :  { %v12744_v0 = vsub.f32 %v12185_v58, %v2565_v14  ;;  %v12747_v42 = vsub.f32 %v12165_v50, %v2565_v14  ;;  %v12753_v35 = vsub.f32 %v12188_v60, %v2565_v14  ;;  %v12756_v37 = vsub.f32 %v12222_v27, %v2565_v14  ;;  %v8730_v58 = vld [vmem:[%s13276_s7 + $0x154] sm:$0xf0]  ;;  %v8079_v50 = vld [vmem:[%s13276_s7 + $0x340] sm:$0xf]  ;;  %5028 = vmatmul.bf16.vlgmr.msrb.gmra.mxu1 %v12670_v59  ;;  %v8744_v14 = vld [vmem:[%s13276_s7 + $0x1cc] sm:$0xf] }
 0x2b3   :  { %v4161_v28 = vmul.f32 %v4157_v40, %v12721_v31  ;;  %v8080_v3 = vor.u32 %v8793_v45, %v8079_v50  ;;  %5076 = vmatpush.bf16.msra.mxu1 %v7848_v41  ;;  %v7832_v51 = vor.u32 %v8730_v58, %v7831_v43  ;;  %v8145_v40 = vld [vmem:[%s13276_s7 + $0x3d0] sm:$0xf0]  ;;  %v8040_v43 = vor.u32 %v8782_v21, %v8039_v1  ;;  %v8023_v58 = vld [vmem:[%s13276_s7 + $0x2c8] sm:$0xf]  ;;  %v8778_v45 = vld [vmem:[%s13276_s7 + $0x2d4] sm:$0xf0] }
 0x2b4   :  { %v2570_v60 = vmul.f32 %v12744_v0, %v12744_v0  ;;  %v2571_v27 = vmul.f32 %v12747_v42, %v12747_v42  ;;  %v2572_v55 = vmul.f32 %v12753_v35, %v12753_v35  ;;  %v2573_v52 = vmul.f32 %v12756_v37, %v12756_v37  ;;  %v7959_v1 = vld [vmem:[%s13276_s7 + $0x248] sm:$0xf]  ;;  %v8762_v21 = vld [vmem:[%s13276_s7 + $0x254] sm:$0xf0] }
 0x2b5   :  { %v4165_v20 = vadd.f32 %v4161_v28, %v12721_v31  ;;  %4999 = vmatpush.bf16.msra.mxu3 %v8080_v3  ;;  %v4106_v7 = vpop.f32.mrf.mxu0  ;;  %v8148_v32 = vor.u32 %v8807_v15, %v8145_v40  ;;  %v7900_v28 = vor.u32 %v8744_v14, %v7897_v38  ;;  %v8129_v3 = vld [vmem:[%s13276_s7 + $0x3b0] sm:$0xf0]  ;;  %v7817_v14 = vld [vmem:[%s13276_s7 + $0x138] sm:$0xf0]  ;;  %v8787_v38 = vld [vmem:[%s13276_s7 + $0x324] sm:$0xf] }
 0x2b6   :  { %v12774_v49 = vpop.f32.mrf.mxu1  ;;  %v2574_v33 = vsel %vm2548_vm0, %v2570_v60, 0.0  ;;  %v2575_v61 = vsel %vm2548_vm0, %v2571_v27, 0.0  ;;  %v2577_v8 = vsel %vm2548_vm0, %v2572_v55, 0.0  ;;  %v2579_v12 = vsel %vm2548_vm0, %v2573_v52, 0.0  ;;  %v8740_v60 = vld [vmem:[%s13276_s7 + $0x1ac] sm:$0xf] }
 0x2b7   :  { %v2576_v2 = vadd.f32 %v2575_v61, %v2574_v33  ;;  %v4169_v4 = vmul.f32 0.7978846, %v4165_v20  ;;  %5077 = vmatpush.bf16.msra.mxu1 %v7832_v51  ;;  %v7881_v27 = vld [vmem:[%s13276_s7 + $0x1b8] sm:$0xf0]  ;;  %v8803_v20 = vld [vmem:[%s13276_s7 + $0x3a4] sm:$0xf]  ;;  %v8024_v33 = vor.u32 %v8778_v45, %v8023_v58  ;;  %v8116_v7 = vor.u32 %v8799_v5, %v8113_v53 }
 0x2b8   :  { %v8132_v52 = vor.u32 %v8803_v20, %v8129_v3  ;;  %v7884_v61 = vor.u32 %v8740_v60, %v7881_v27  ;;  %v8065_v15 = vld [vmem:[%s13276_s7 + $0x330] sm:$0xf0]  ;;  %v8758_v58 = vld [vmem:[%s13276_s7 + $0x234] sm:$0xf0]  ;;  %v8720_v45 = vld [vmem:[%s13276_s7 + $0x10c] sm:$0xf] }
 0x2b9   :  { %v2578_v18 = vadd.f32 %v2577_v8, %v2576_v2  ;;  %8832 = vtanh.f32 %v4169_v4  ;;  %5000 = vmatpush.bf16.msra.mxu3 %v8064_v34  ;;  %v8736_v2 = vld [vmem:[%s13276_s7 + $0x18c] sm:$0xf]  ;;  %v7865_v4 = vld [vmem:[%s13276_s7 + $0x198] sm:$0xf0]  ;;  %v8008_v8 = vor.u32 %v8774_v9, %v8007_v62  ;;  %v8783_v60 = vld [vmem:[%s13276_s7 + $0x304] sm:$0xf] }
 0x2ba   :  { %v7868_v34 = vor.u32 %v8736_v2, %v7865_v4  ;;  %v8049_v27 = vld [vmem:[%s13276_s7 + $0x310] sm:$0xf0]  ;;  %v8041_v62 = vld [vmem:[%s13276_s7 + $0x2f8] sm:$0xf0]  ;;  %v8776_v5 = vld [vmem:[%s13276_s7 + $0x2cc] sm:$0xf] }
 0x2bb   :  { %v2580_v26 = vadd.f32 %v2579_v12, %v2578_v18  ;;  %5078 = vmatpush.bf16.msra.mxu1 %v7816_v44  ;;  %v7991_v18 = vld [vmem:[%s13276_s7 + $0x288] sm:$0xf]  ;;  %v8770_v12 = vld [vmem:[%s13276_s7 + $0x294] sm:$0xf0]  ;;  %v8732_v44 = vld [vmem:[%s13276_s7 + $0x16c] sm:$0xf]  ;;  %v8052_v20 = vor.u32 %v8783_v60, %v8049_v27 }
 0x2bc   :  { %v7992_v17 = vor.u32 %v8770_v12, %v7991_v18  ;;  %v7852_v23 = vor.u32 %v8732_v44, %v7849_v47  ;;  %v8009_v18 = vld [vmem:[%s13276_s7 + $0x2b8] sm:$0xf0]  ;;  %v8768_v47 = vld [vmem:[%s13276_s7 + $0x28c] sm:$0xf] }
 0x2bd   :  { %2581 = vadd.xlane.f32.xlu1 %v2580_v26  ;;  %5001 = vmatpush.bf16.msra.mxu3 %v8048_v25  ;;  %v8795_v26 = vld [vmem:[%s13276_s7 + $0x364] sm:$0xf]  ;;  %v8766_v25 = vld [vmem:[%s13276_s7 + $0x274] sm:$0xf0] }
 0x2be   :  { %v4119_v24 = vpop.f32.mrf.mxu1  ;;  %v8100_v36 = vor.u32 %v8795_v26, %v8097_v48  ;;  %v7993_v26 = vld [vmem:[%s13276_s7 + $0x298] sm:$0xf0] }
 0x2bf   :  { %v8833_v39 = vpop.eup %8832  ;;  %5079 = vmatpush.bf16.msra.mxu1 %v7800_v29  ;;  %v7975_v24 = vld [vmem:[%s13276_s7 + $0x268] sm:$0xf]  ;;  %v8791_v29 = vld [vmem:[%s13276_s7 + $0x344] sm:$0xf] }
 0x2c0   :  { %v4177_v30 = vadd.f32 1.0, %v8833_v39  ;;  %v7976_v39 = vor.u32 %v8766_v25, %v7975_v24  ;;  %v7977_v24 = vld [vmem:[%s13276_s7 + $0x278] sm:$0xf0] }
 0x2c1   :  { %5046 = vmatpush.bf16.msrb.mxu3 %v8164_v16 }
 0x2c2   :  { %v4181_v41 = vmul.f32 %v4177_v30, %v4149_v56  ;;  %5080 = vmatmul.bf16.vlgmr.msra.gmra.mxu1 %v12670_v59  ;;  %v8081_v56 = vld [vmem:[%s13276_s7 + $0x350] sm:$0xf0]  ;;  %v8724_v30 = vld [vmem:[%s13276_s7 + $0x12c] sm:$0xf] }
 0x2c3   :  { %5124 = vmatpush.bf16.msrb.mxu1 %v7916_v22  ;;  %v8084_v16 = vor.u32 %v8791_v29, %v8081_v56  ;;  %v7836_v22 = vor.u32 %v8728_v54, %v7833_v13  ;;  %v8760_v13 = vld [vmem:[%s13276_s7 + $0x24c] sm:$0xf]  ;;  %v7961_v29 = vld [vmem:[%s13276_s7 + $0x258] sm:$0xf0] }
 0x2c4   :  { %v12844_v50 = vpack.c.bf16 %v4181_v41, %v4181_v41  ;;  %v8068_v41 = vor.u32 %v8787_v38, %v8065_v15  ;;  %v8814_v38 = vld [vmem:[%s13276_s7 + $0x3f4] sm:$0xf0] }
 0x2c5   :  { %5047 = vmatpush.bf16.msrb.mxu3 %v8148_v32  ;;  %v7960_v32 = vor.u32 %v8762_v21, %v7959_v1  ;;  %v7945_v1 = vld [vmem:[%s13276_s7 + $0x238] sm:$0xf0] }
 0x2c6   :  { %4989 = vmatmul.bf16.vlgmr.msra.gmra.mxu2 %v12844_v50 }
 0x2c7   :  { %5085 = vmatpush.bf16.msra.mxu2 %v8040_v43  ;;  %5125 = vmatpush.bf16.msrb.mxu1 %v7900_v28  ;;  %v7820_v43 = vor.u32 %v8724_v30, %v7817_v14  ;;  %v7943_v28 = vld [vmem:[%s13276_s7 + $0x228] sm:$0xf] }
 0x2c8   :  { %v4091_v55 = vpop.f32.mrf.mxu3  ;;  %v7944_v3 = vor.u32 %v8758_v58, %v7943_v28  ;;  %v8167_v14 = vld [vmem:[%s13276_s7 + $0x3e8] sm:$0xf] }
 0x2c9   :  { %v12821_v19 = vpop.f32.mrf.mxu2  ;;  %5048 = vmatpush.bf16.msrb.mxu3 %v8132_v52  ;;  %v4092_v40 = vadd.f32 %v4091_v55, %v12690_v10  ;;  %v7801_v10 = vld [vmem:[%s13276_s7 + $0x118] sm:$0xf0]  ;;  %v7927_v52 = vld [vmem:[%s13276_s7 + $0x208] sm:$0xf] }
 0x2ca   :  { %v8151_v58 = vld [vmem:[%s13276_s7 + $0x3c8] sm:$0xf] }
 0x2cb   :  { %5086 = vmatpush.bf16.msra.mxu2 %v8024_v33  ;;  %5126 = vmatpush.bf16.msrb.mxu1 %v7884_v61  ;;  %v4105_v55 = vadd.f32 %v12733_v57, %v4092_v40  ;;  %v8754_v33 = vld [vmem:[%s13276_s7 + $0x214] sm:$0xf0]  ;;  %v8780_v57 = vld [vmem:[%s13276_s7 + $0x2ec] sm:$0xf] }
 0x2cc   :  { %v7928_v9 = vor.u32 %v8754_v33, %v7927_v52  ;;  %v8044_v2 = vor.u32 %v8780_v57, %v8041_v62  ;;  %v8802_v52 = vld [vmem:[%s13276_s7 + $0x394] sm:$0xf0]  ;;  %v8103_v57 = vld [vmem:[%s13276_s7 + $0x368] sm:$0xf] }
 0x2cd   :  { %5049 = vmatpush.bf16.msrb.mxu3 %v8116_v7  ;;  %v4118_v61 = vadd.f32 %v12774_v49, %v4105_v55  ;;  %v8025_v49 = vld [vmem:[%s13276_s7 + $0x2d8] sm:$0xf0]  ;;  %v8135_v55 = vld [vmem:[%s13276_s7 + $0x3a8] sm:$0xf]  ;;  %v8798_v62 = vld [vmem:[%s13276_s7 + $0x374] sm:$0xf0] }
 0x2cf   :  { %5087 = vmatpush.bf16.msra.mxu2 %v8008_v8  ;;  %5127 = vmatpush.bf16.msrb.mxu1 %v7868_v34  ;;  %v4131_v4 = vadd.f32 %v12821_v19, %v4118_v61  ;;  %v8028_v8 = vor.u32 %v8776_v5, %v8025_v49  ;;  %v8772_v19 = vld [vmem:[%s13276_s7 + $0x2ac] sm:$0xf]  ;;  %v8071_v49 = vld [vmem:[%s13276_s7 + $0x328] sm:$0xf] }
 0x2d0   :  { %v4093_v11 = vpop.f32.mrf.mxu3  ;;  %v8012_v12 = vor.u32 %v8772_v19, %v8009_v18  ;;  %v8786_v19 = vld [vmem:[%s13276_s7 + $0x314] sm:$0xf0]  ;;  %v8812_v18 = vld [vmem:[%s13276_s7 + $0x3ec] sm:$0xf] }
 0x2d1   :  { %v4132_v51 = vpop.f32.mrf.mxu2  ;;  %5050 = vmatpush.bf16.msrb.mxu3 %v8100_v36 }
 0x2d2   :  { %v7804_v51 = vor.u32 %v8720_v45, %v7801_v10  ;;  %v8810_v45 = vld [vmem:[%s13276_s7 + $0x3d4] sm:$0xf0] }
 0x2d3   :  { %5088 = vmatpush.bf16.msra.mxu2 %v7992_v17  ;;  %5128 = vmatpush.bf16.msrb.mxu1 %v7852_v23  ;;  %v7996_v17 = vor.u32 %v8768_v47, %v7993_v26  ;;  %v8764_v23 = vld [vmem:[%s13276_s7 + $0x26c] sm:$0xf]  ;;  %v8152_v27 = vor.u32 %v8810_v45, %v8151_v58 }
 0x2d4   :  { %v7980_v54 = vor.u32 %v8764_v23, %v7977_v24  ;;  %v8808_v26 = vld [vmem:[%s13276_s7 + $0x3cc] sm:$0xf]  ;;  %v8137_v23 = vld [vmem:[%s13276_s7 + $0x3b8] sm:$0xf0] }
 0x2d5   :  { %5051 = vmatpush.bf16.msrb.mxu3 %v8084_v16  ;;  %v7964_v16 = vor.u32 %v8760_v13, %v7961_v29 }
 0x2d6   :  { %5041 = vmatmul.bf16.vlgmr.msrb.gmra.mxu2 %v12844_v50 }
 0x2d7   :  { %5089 = vmatpush.bf16.msra.mxu2 %v7976_v39  ;;  %5129 = vmatpush.bf16.msrb.mxu1 %v7836_v22  ;;  %v8756_v22 = vld [vmem:[%s13276_s7 + $0x22c] sm:$0xf] }
 0x2d8   :  { %v7948_v15 = vor.u32 %v8756_v22, %v7945_v1  ;;  %v8792_v1 = vld [vmem:[%s13276_s7 + $0x34c] sm:$0xf] }
 0x2d9   :  { %5052 = vmatpush.bf16.msrb.mxu3 %v8068_v41  ;;  %v8168_v41 = vor.u32 %v8814_v38, %v8167_v14  ;;  %v8788_v38 = vld [vmem:[%s13276_s7 + $0x32c] sm:$0xf] }
 0x2db   :  { %5090 = vmatpush.bf16.msra.mxu2 %v7960_v32  ;;  %5130 = vmatpush.bf16.msrb.mxu1 %v7820_v43  ;;  %v8752_v32 = vld [vmem:[%s13276_s7 + $0x20c] sm:$0xf]  ;;  %v7929_v43 = vld [vmem:[%s13276_s7 + $0x218] sm:$0xf0] }
 0x2dc   :  { %v7932_v60 = vor.u32 %v8752_v32, %v7929_v43  ;;  %v8057_v32 = vld [vmem:[%s13276_s7 + $0x318] sm:$0xf0] }
 0x2dd   :  { %5053 = vmatpush.bf16.msrb.mxu3 %v8052_v20  ;;  %v8806_v20 = vld [vmem:[%s13276_s7 + $0x3b4] sm:$0xf0] }
 0x2df   :  { %5091 = vmatpush.bf16.msra.mxu2 %v7944_v3  ;;  %5131 = vmatpush.bf16.msrb.mxu1 %v7804_v51  ;;  %v8136_v3 = vor.u32 %v8806_v20, %v8135_v55  ;;  %v8119_v51 = vld [vmem:[%s13276_s7 + $0x388] sm:$0xf] }
 0x2e0   :  { %v8120_v61 = vor.u32 %v8802_v52, %v8119_v51 }
 0x2e2   :  { %5132 = vmatmul.bf16.vlgmr.msrb.gmra.mxu1 %v12670_v59 }
 0x2e3   :  { %5092 = vmatpush.bf16.msra.mxu2 %v7928_v9  ;;  %v12996_v36 = vpop.f32.mrf.mxu0  ;;  %v8104_v9 = vor.u32 %v8798_v62, %v8103_v57  ;;  %v2599_v57 = vld [vmem:[%s13277_s4] sm:$0xf] }
 0x2e6   :  { %5093 = vmatmul.bf16.vlgmr.msra.gmra.mxu2 %v12844_v50 }
 0x2e7   :  { %5137 = vmatpush.bf16.msrb.mxu2 %v8044_v2  ;;  %v8087_v2 = vld [vmem:[%s13276_s7 + $0x348] sm:$0xf] }
 0x2e8   :  { %v4143_v53 = vpop.f32.mrf.mxu3 }
 0x2e9   :  { %v12977_v7 = vadd.f32 %v4143_v53, %v4131_v4  ;;  %v8790_v53 = vld [vmem:[%s13276_s7 + $0x334] sm:$0xf0] }
 0x2eb   :  { %v4154_v34 = vmul.f32 0.044715, %v12977_v7  ;;  %5138 = vmatpush.bf16.msrb.mxu2 %v8028_v8  ;;  %v4966_v56 = vpop.f32.mrf.mxu0  ;;  %v4150_v21 = vmul.f32 0.5, %v12977_v7  ;;  %v8072_v8 = vor.u32 %v8790_v53, %v8071_v49  ;;  %v2603_v49 = vperm.slane %v2599_v57, 2 }
 0x2ec   :  { %v2604_v53 = vperm.slane %v2599_v57, 3 }
 0x2ed   :  { %v4158_v59 = vmul.f32 %v4154_v34, %v12977_v7  ;;  %v8055_v34 = vld [vmem:[%s13276_s7 + $0x308] sm:$0xf] }
 0x2ef   :  { %v4162_v44 = vmul.f32 %v4158_v59, %v12977_v7  ;;  %5139 = vmatpush.bf16.msrb.mxu2 %v8012_v12  ;;  %v8169_v59 = vld [vmem:[%s13276_s7 + $0x3f8] sm:$0xf0] }
 0x2f0   :  { %v4145_v48 = vpop.f32.mrf.mxu3  ;;  %v8172_v47 = vor.u32 %v8812_v18, %v8169_v59 }
 0x2f1   :  { %v4166_v11 = vadd.f32 %v4162_v44, %v12977_v7  ;;  %v8056_v44 = vor.u32 %v8786_v19, %v8055_v34  ;;  %v8153_v48 = vld [vmem:[%s13276_s7 + $0x3d8] sm:$0xf0] }
 0x2f3   :  { %v4170_v25 = vmul.f32 0.7978846, %v4166_v11  ;;  %5140 = vmatpush.bf16.msrb.mxu2 %v7996_v17  ;;  %v13038_v10 = vpop.f32.mrf.mxu0  ;;  %v8156_v11 = vor.u32 %v8808_v26, %v8153_v48  ;;  %v8804_v17 = vld [vmem:[%s13276_s7 + $0x3ac] sm:$0xf] }
 0x2f4   :  { %v8140_v24 = vor.u32 %v8804_v17, %v8137_v23 }
 0x2f5   :  { %8834 = vtanh.f32 %v4170_v25  ;;  %v8800_v25 = vld [vmem:[%s13276_s7 + $0x38c] sm:$0xf] }
 0x2f7   :  { %5141 = vmatpush.bf16.msrb.mxu2 %v7980_v54  ;;  %v8121_v54 = vld [vmem:[%s13276_s7 + $0x398] sm:$0xf0] }
 0x2f8   :  { %v8124_v29 = vor.u32 %v8800_v25, %v8121_v54 }
 0x2fb   :  { %v8835_v39 = vpop.eup %8834  ;;  %5142 = vmatpush.bf16.msrb.mxu2 %v7964_v16  ;;  %v5018_v33 = vpop.f32.mrf.mxu0  ;;  %v8796_v16 = vld [vmem:[%s13276_s7 + $0x36c] sm:$0xf] }
 0x2fc   :  { %v4178_v30 = vadd.f32 1.0, %v8835_v39  ;;  %v8105_v39 = vld [vmem:[%s13276_s7 + $0x378] sm:$0xf0] }
 0x2fd   :  { %v8108_v22 = vor.u32 %v8796_v16, %v8105_v39 }
 0x2fe   :  { %v4182_v40 = vmul.f32 %v4178_v30, %v4150_v21  ;;  %v8089_v21 = vld [vmem:[%s13276_s7 + $0x358] sm:$0xf0] }
 0x2ff   :  { %5143 = vmatpush.bf16.msrb.mxu2 %v7948_v15  ;;  %v8092_v14 = vor.u32 %v8792_v1, %v8089_v21  ;;  %v8073_v15 = vld [vmem:[%s13276_s7 + $0x338] sm:$0xf0] }
 0x300   :  { %v13029_v28 = vpack.c.bf16 %v4182_v40, %v4182_v40  ;;  %v8076_v40 = vor.u32 %v8788_v38, %v8073_v15 }
 0x302   :  { %5002 = vmatmul.bf16.vlgmr.msra.gmra.mxu3 %v13029_v28 }
 0x303   :  { %5098 = vmatpush.bf16.msra.mxu3 %v8168_v41  ;;  %5144 = vmatpush.bf16.msrb.mxu2 %v7932_v60  ;;  %v13066_v4 = vpop.f32.mrf.mxu0  ;;  %v8784_v41 = vld [vmem:[%s13276_s7 + $0x30c] sm:$0xf] }
 0x306   :  { %5145 = vmatmul.bf16.vlgmr.msrb.gmra.mxu2 %v12844_v50  ;;  %v8794_v50 = vld [vmem:[%s13276_s7 + $0x354] sm:$0xf0] }
 0x307   :  { %5099 = vmatpush.bf16.msra.mxu3 %v8152_v27  ;;  %v8088_v5 = vor.u32 %v8794_v50, %v8087_v2  ;;  %v8060_v27 = vor.u32 %v8784_v41, %v8057_v32 }
 0x30b   :  { %5100 = vmatpush.bf16.msra.mxu3 %v8136_v3  ;;  %v5070_v12 = vpop.f32.mrf.mxu0 }
 0x30f   :  { %5101 = vmatpush.bf16.msra.mxu3 %v8120_v61 }
 0x312   :  { %5054 = vmatmul.bf16.vlgmr.msrb.gmra.mxu3 %v13029_v28 }
 0x313   :  { %5102 = vmatpush.bf16.msra.mxu3 %v8104_v9 }
 0x317   :  { %5103 = vmatpush.bf16.msra.mxu3 %v8088_v5  ;;  %v2602_v5 = vperm.slane %v2599_v57, 1 }
 0x31b   :  { %5104 = vmatpush.bf16.msra.mxu3 %v8072_v8 }
 0x31f   :  { %5105 = vmatpush.bf16.msra.mxu3 %v8056_v44  ;;  %v4977_v13 = vpop.f32.mrf.mxu1 }
 0x320   :  { %v4978_v56 = vadd.f32 %v4977_v13, %v12996_v36 }
 0x322   :  { %5106 = vmatmul.bf16.vlgmr.msra.gmra.mxu3 %v13029_v28 }
 0x323   :  { %5150 = vmatpush.bf16.msrb.mxu3 %v8172_v47  ;;  %v13118_v30 = vpop.f32.mrf.mxu0 }
 0x327   :  { %5151 = vmatpush.bf16.msrb.mxu3 %v8156_v11  ;;  %v4979_v36 = vpop.f32.mrf.mxu1 }
 0x32b   :  { %5152 = vmatpush.bf16.msrb.mxu3 %v8140_v24  ;;  %v5122_v45 = vpop.f32.mrf.mxu0 }
 0x32f   :  { %5153 = vmatpush.bf16.msrb.mxu3 %v8124_v29  ;;  %v5029_v60 = vpop.f32.mrf.mxu1 }
 0x330   :  { %v2582_v43 = vpop.xlane.xlu1 %2581  ;;  %v5030_v20 = vadd.f32 %v5029_v60, %v13038_v10  ;;  %v2613_v10 = vld [vmem:[%s13278_s5] sm:$0xf] }
 0x331   :  { %v2583_v58 = vmul.f32 %v2582_v43, %v12724_v6  ;;  %v2615_v8 = vperm.slane %v2613_v10, 0  ;;  %v2616_v19 = vperm.slane %v2613_v10, 1  ;;  %v2617_v18 = vperm.slane %v2613_v10, 2 }
 0x332   :  { %v2618_v59 = vperm.slane %v2613_v10, 3 }
 0x333   :  { %5154 = vmatpush.bf16.msrb.mxu3 %v8108_v22  ;;  %v2584_v55 = vadd.f32 1e-05, %v2583_v58 }
 0x335   :  { %8836 = vrsqrt.f32 %v2584_v55  ;;  %vm2591_vm3 = vweird.f32 %v2584_v55 }
 0x337   :  { %5155 = vmatpush.bf16.msrb.mxu3 %v8092_v14  ;;  %v5031_v3 = vpop.f32.mrf.mxu1 }
 0x33b   :  { %5156 = vmatpush.bf16.msrb.mxu3 %v8076_v40  ;;  %v8837_v51 = vpop.eup %8836 }
 0x33c   :  { %v2586_v52 = vmul.f32 %v8837_v51, %v2584_v55  ;;  %vm2592_vm2 = vweird.f32 %v8837_v51 }
 0x33d   :  { %vm2593_vm4 = vmor %vm2591_vm3, %vm2592_vm2 }
 0x33e   :  { %v2587_v33 = vmul.f32 %v8837_v51, %v2586_v52 }
 0x33f   :  { %5157 = vmatpush.bf16.msrb.mxu3 %v8060_v27  ;;  %v5081_v9 = vpop.f32.mrf.mxu1 }
 0x340   :  { %v2588_v61 = vmul.f32 0.5, %v2587_v33  ;;  %v5082_v2 = vadd.f32 %v5081_v9, %v13066_v4 }
 0x342   :  { %5158 = vmatmul.bf16.vlgmr.msrb.gmra.mxu3 %v13029_v28  ;;  %v2589_v62 = vsub.f32 1.5, %v2588_v61  ;;  %v2601_v28 = vperm.slane %v2599_v57, 0 }
 0x344   :  { %v2590_v50 = vmul.f32 %v8837_v51, %v2589_v62 }
 0x346   :  { %v2594_v34 = vsel %vm2593_vm4, %v8837_v51, %v2590_v50 }
 0x347   :  { %v2595_v12 = vmul.f32 %v2594_v34, %v12744_v0  ;;  %v2596_v44 = vmul.f32 %v2594_v34, %v12747_v42  ;;  %v2597_v47 = vmul.f32 %v2594_v34, %v12753_v35  ;;  %v2598_v4 = vmul.f32 %v2594_v34, %v12756_v37  ;;  %v5083_v25 = vpop.f32.mrf.mxu1 }
 0x349   :  { %v4990_v26 = vpop.f32.mrf.mxu2  ;;  %v2609_v48 = vmul.f32 %v2601_v28, %v2595_v12  ;;  %v2610_v11 = vmul.f32 %v2602_v5, %v2596_v44  ;;  %v2611_v17 = vmul.f32 %v2603_v49, %v2597_v47  ;;  %v2612_v23 = vmul.f32 %v2604_v53, %v2598_v4 }
 0x34a   :  { %v4991_v24 = vadd.f32 %v4990_v26, %v4978_v56 }
 0x34b   :  { %v13146_v54 = vadd.f32 %v2615_v8, %v2609_v48  ;;  %v13148_v13 = vadd.f32 %v2616_v19, %v2610_v11  ;;  %v13150_v29 = vadd.f32 %v2617_v18, %v2611_v17  ;;  %v13152_v0 = vadd.f32 %v2618_v59, %v2612_v23 }
 0x34d   :  { %v2627_v42 = vmul.f32 %v13146_v54, %v13146_v54  ;;  %v2628_v35 = vmul.f32 %v13148_v13, %v13148_v13  ;;  %v2629_v37 = vmul.f32 %v13150_v29, %v13150_v29  ;;  %v2630_v56 = vmul.f32 %v13152_v0, %v13152_v0 }
 0x34f   :  { %v2631_v16 = vsel %vm2548_vm0, %v2627_v42, 0.0  ;;  %v2632_v39 = vsel %vm2548_vm0, %v2628_v35, 0.0  ;;  %v2634_v21 = vsel %vm2548_vm0, %v2629_v37, 0.0  ;;  %v2636_v14 = vsel %vm2548_vm0, %v2630_v56, 0.0 }
 0x350   :  { %v2633_v22 = vadd.f32 %v2632_v39, %v2631_v16 }
 0x351   :  { %v4992_v1 = vpop.f32.mrf.mxu2 }
 0x352   :  { %v2635_v36 = vadd.f32 %v2634_v21, %v2633_v22 }
 0x354   :  { %v2637_v38 = vadd.f32 %v2636_v14, %v2635_v36 }
 0x356   :  { %2638 = vadd.xlane.f32.xlu2 %v2637_v38 }
 0x359   :  { %v5042_v15 = vpop.f32.mrf.mxu2 }
 0x35a   :  { %v5043_v40 = vadd.f32 %v5042_v15, %v5030_v20 }
 0x35f   :  { %v5133_v41 = vpop.f32.mrf.mxu1 }
 0x360   :  { %v5134_v32 = vadd.f32 %v5133_v41, %v13118_v30 }
 0x361   :  { %v5044_v43 = vpop.f32.mrf.mxu2 }
 0x367   :  { %v5135_v58 = vpop.f32.mrf.mxu1 }
 0x369   :  { %v5094_v45 = vpop.f32.mrf.mxu2 }
 0x36a   :  { %v5095_v60 = vadd.f32 %v5094_v45, %v5082_v2 }
 0x371   :  { %v5096_v27 = vpop.f32.mrf.mxu2 }
 0x385   :  { %v5003_v55 = vpop.f32.mrf.mxu3 }
 0x386   :  { %v5004_v10 = vadd.f32 %v5003_v55, %v4991_v24 }
 0x388   :  { %v5163_v30 = vadd.f32 %v5004_v10, %v12350_v63 }
 0x389   :  { %v5146_v3 = vpop.f32.mrf.mxu2 }
 0x38a   :  { %v5147_v5 = vadd.f32 %v5146_v3, %v5134_v32  ;;  %v5167_v53 = vsel %vm2548_vm0, %v5163_v30, 0.0 }
 0x38d   :  { %v5005_v51 = vpop.f32.mrf.mxu3 }
 0x391   :  { %v5148_v52 = vpop.f32.mrf.mxu2 }
 0x395   :  { %v5055_v33 = vpop.f32.mrf.mxu3 }
 0x396   :  { %v5056_v9 = vadd.f32 %v5055_v33, %v5043_v40 }
 0x398   :  { %v5164_v20 = vadd.f32 %v5056_v9, %v12574_v46 }
 0x39a   :  { %v5168_v2 = vsel %vm2548_vm0, %v5164_v20, 0.0 }
 0x39b   :  { %v5169_v19 = vadd.f32 %v5168_v2, %v5167_v53 }
 0x39d   :  { %v5057_v61 = vpop.f32.mrf.mxu3 }
 0x3a5   :  { %v5107_v57 = vpop.f32.mrf.mxu3 }
 0x3a6   :  { %v5108_v50 = vadd.f32 %v5107_v57, %v5095_v60 }
 0x3a8   :  { %v5165_v28 = vadd.f32 %v5108_v50, %v12721_v31 }
 0x3aa   :  { %v5170_v34 = vsel %vm2548_vm0, %v5165_v28, 0.0 }
 0x3ab   :  { %v5171_v59 = vadd.f32 %v5170_v34, %v5169_v19 }
 0x3ad   :  { %v5109_v62 = vpop.f32.mrf.mxu3 }
 0x3c5   :  { %v5159_v49 = vpop.f32.mrf.mxu3 }
 0x3c6   :  { %v5160_v8 = vadd.f32 %v5159_v49, %v5147_v5 }
 0x3c8   :  { %v5166_v18 = vadd.f32 %v5160_v8, %v12977_v7 }
 0x3c9   :  { %v2639_v63 = vpop.xlane.xlu2 %2638 }
 0x3ca   :  { %v5172_v12 = vsel %vm2548_vm0, %v5166_v18, 0.0  ;;  %8838 = vrsqrt.f32 %v2639_v63  ;;  %vm2646_vm6 = vweird.f32 %v2639_v63 }
 0x3cb   :  { %v5173_v46 = vadd.f32 %v5172_v12, %v5171_v59  ;;  %v5210_v12 = vld [vmem:[%s13279_s8] sm:$0xf] }
 0x3cd   :  { %v5161_v44 = vpop.f32.mrf.mxu3  ;;  %5174 = vadd.xlane.f32.xlu0 %v5173_v46 }
 0x3ce   :  { %v5224_v44 = vld [vmem:[%s13280_s9] sm:$0xf] }
 0x3d0   :  { %v8839_v31 = vpop.eup %8838 }
 0x3d1   :  { %v2641_v47 = vmul.f32 %v8839_v31, %v2639_v63  ;;  %vm2647_vm5 = vweird.f32 %v8839_v31 }
 0x3d2   :  { %vm2648_vm7 = vmor %vm2646_vm6, %vm2647_vm5  ;;  %vm5486_vm5 = vcmask 27648  }
 0x3d3   :  { %v2642_v4 = vmul.f32 %v8839_v31, %v2641_v47  ;;  %v5214_v47 = vperm.slane %v5210_v12, 2 }
 0x3d5   :  { %v2643_v26 = vmul.f32 0.5, %v2642_v4  ;;  %v5215_v4 = vperm.slane %v5210_v12, 3 }
 0x3d7   :  { %v2644_v48 = vsub.f32 1.5, %v2643_v26  ;;  %v5226_v26 = vperm.slane %v5224_v44, 0 }
 0x3d9   :  { %v2645_v11 = vmul.f32 %v8839_v31, %v2644_v48 }
 0x3db   :  { %v2649_v17 = vsel %vm2648_vm7, %v8839_v31, %v2645_v11  ;;  %v5212_v31 = vperm.slane %v5210_v12, 0  ;;  %v5227_v11 = vperm.slane %v5224_v44, 1 }
 0x3dc   :  { %v2650_v7 = vmul.f32 %v2649_v17, %v13146_v54  ;;  %v2651_v23 = vmul.f32 %v2649_v17, %v13148_v13  ;;  %v2652_v24 = vmul.f32 %v2649_v17, %v13150_v29  ;;  %v2653_v25 = vmul.f32 %v2649_v17, %v13152_v0 }
 0x3dd   :  { %v5228_v17 = vperm.slane %v5224_v44, 2 }
 0x3de   :  { %v5265_v42 = vmul.f32 %v2650_v7, %v2650_v7  ;;  %v5266_v35 = vmul.f32 %v2651_v23, %v2651_v23  ;;  %v5267_v37 = vmul.f32 %v2652_v24, %v2652_v24  ;;  %v5268_v56 = vmul.f32 %v2653_v25, %v2653_v25 }
 0x3e0   :  { %v5269_v16 = vsel %vm2548_vm0, %v5265_v42, 0.0  ;;  %v5270_v39 = vsel %vm2548_vm0, %v5266_v35, 0.0  ;;  %v5272_v1 = vsel %vm2548_vm0, %v5267_v37, 0.0  ;;  %v5274_v54 = vsel %vm2548_vm0, %v5268_v56, 0.0 }
 0x3e1   :  { %v5271_v22 = vadd.f32 %v5270_v39, %v5269_v16 }
 0x3e3   :  { %v5273_v21 = vadd.f32 %v5272_v1, %v5271_v22 }
 0x3e5   :  { %v5275_v36 = vadd.f32 %v5274_v54, %v5273_v21 }
 0x3e7   :  { %5276 = vadd.xlane.f32.xlu0 %v5275_v36 }
 0x440   :  { %v5175_v13 = vpop.xlane.xlu0 %5174 }
 0x441   :  { %v5176_v29 = vmul.f32 %v5175_v13, %v12724_v6 }
 0x443   :  { %v13184_v0 = vsub.f32 %v5163_v30, %v5176_v29  ;;  %v13186_v14 = vsub.f32 %v5164_v20, %v5176_v29  ;;  %v13188_v38 = vsub.f32 %v5165_v28, %v5176_v29  ;;  %v13190_v15 = vsub.f32 %v5166_v18, %v5176_v29 }
 0x445   :  { %v5181_v40 = vmul.f32 %v13184_v0, %v13184_v0  ;;  %v5182_v41 = vmul.f32 %v13186_v14, %v13186_v14  ;;  %v5183_v32 = vmul.f32 %v13188_v38, %v13188_v38  ;;  %v5184_v43 = vmul.f32 %v13190_v15, %v13190_v15 }
 0x447   :  { %v5185_v58 = vsel %vm2548_vm0, %v5181_v40, 0.0  ;;  %v5186_v45 = vsel %vm2548_vm0, %v5182_v41, 0.0  ;;  %v5188_v27 = vsel %vm2548_vm0, %v5183_v32, 0.0  ;;  %v5190_v3 = vsel %vm2548_vm0, %v5184_v43, 0.0 }
 0x448   :  { %v5187_v60 = vadd.f32 %v5186_v45, %v5185_v58 }
 0x44a   :  { %v5189_v55 = vadd.f32 %v5188_v27, %v5187_v60 }
 0x44c   :  { %v5191_v51 = vadd.f32 %v5190_v3, %v5189_v55 }
 0x44e   :  { %5192 = vadd.xlane.f32.xlu1 %v5191_v51 }
 0x45a   :  { %v5277_v52 = vpop.xlane.xlu0 %5276 }
 0x45b   :  { %v5278_v33 = vmax.f32 %v5277_v52, 1e-24 }
 0x45d   :  { %8840 = vrsqrt.f32 %v5278_v33  ;;  %vm5285_vm9 = vweird.f32 %v5278_v33 }
 0x463   :  { %v8841_v61 = vpop.eup %8840 }
 0x464   :  { %v5280_v57 = vmul.f32 %v8841_v61, %v5278_v33  ;;  %vm5286_vm8 = vweird.f32 %v8841_v61 }
 0x465   :  { %vm5287_vm10 = vmor %vm5285_vm9, %vm5286_vm8 }
 0x466   :  { %v5281_v62 = vmul.f32 %v8841_v61, %v5280_v57 }
 0x468   :  { %v5282_v9 = vmul.f32 0.5, %v5281_v62 }
 0x46a   :  { %v5283_v10 = vsub.f32 1.5, %v5282_v9 }
 0x46c   :  { %v5284_v50 = vmul.f32 %v8841_v61, %v5283_v10 }
 0x46e   :  { %v5288_v20 = vsel %vm5287_vm10, %v8841_v61, %v5284_v50 }
 0x46f   :  { %v13204_v30 = vmul.f32 %v5288_v20, %v2650_v7  ;;  %v13206_v28 = vmul.f32 %v5288_v20, %v2651_v23  ;;  %v13208_v5 = vmul.f32 %v5288_v20, %v2652_v24  ;;  %v13210_v2 = vmul.f32 %v5288_v20, %v2653_v25 }
 0x470   :  { %v5229_v7 = vperm.slane %v5224_v44, 3 }
 0x471   :  { %5336 = vmatpush.xpose.msra.mxu0 %v13204_v30  ;;  %5356 = vmatpush.xpose.msra.mxu1 %v13206_v28 }
 0x472   :  { %5376 = vmatpush.xpose.msra.mxu2 %v13208_v5  ;;  %5396 = vmatpush.xpose.msra.mxu3 %v13210_v2 }
 0x4c1   :  { %v5193_v49 = vpop.xlane.xlu1 %5192 }
 0x4c2   :  { %v5194_v53 = vmul.f32 %v5193_v49, %v12724_v6  ;;  %v5213_v6 = vperm.slane %v5210_v12, 1 }
 0x4c4   :  { %v5195_v8 = vadd.f32 1e-05, %v5194_v53 }
 0x4c6   :  { %8842 = vrsqrt.f32 %v5195_v8  ;;  %vm5202_vm12 = vweird.f32 %v5195_v8 }
 0x4cc   :  { %v8843_v34 = vpop.eup %8842 }
 0x4cd   :  { %v5197_v19 = vmul.f32 %v8843_v34, %v5195_v8  ;;  %vm5203_vm11 = vweird.f32 %v8843_v34 }
 0x4ce   :  { %vm5204_vm13 = vmor %vm5202_vm12, %vm5203_vm11 }
 0x4cf   :  { %v5198_v18 = vmul.f32 %v8843_v34, %v5197_v19 }
 0x4d1   :  { %v5199_v59 = vmul.f32 0.5, %v5198_v18 }
 0x4d3   :  { %v5200_v46 = vsub.f32 1.5, %v5199_v59 }
 0x4d5   :  { %v5201_v63 = vmul.f32 %v8843_v34, %v5200_v46 }
 0x4d7   :  { %v5205_v48 = vsel %vm5204_vm13, %v8843_v34, %v5201_v63 }
 0x4d8   :  { %v5206_v23 = vmul.f32 %v5205_v48, %v13184_v0  ;;  %v5207_v24 = vmul.f32 %v5205_v48, %v13186_v14  ;;  %v5208_v25 = vmul.f32 %v5205_v48, %v13188_v38  ;;  %v5209_v42 = vmul.f32 %v5205_v48, %v13190_v15 }
 0x4da   :  { %v5220_v35 = vmul.f32 %v5212_v31, %v5206_v23  ;;  %v5221_v37 = vmul.f32 %v5213_v6, %v5207_v24  ;;  %v5222_v56 = vmul.f32 %v5214_v47, %v5208_v25  ;;  %v5223_v16 = vmul.f32 %v5215_v4, %v5209_v42 }
 0x4dc   :  { %v5234_v39 = vadd.f32 %v5226_v26, %v5220_v35  ;;  %v5235_v22 = vadd.f32 %v5227_v11, %v5221_v37  ;;  %v5236_v1 = vadd.f32 %v5228_v17, %v5222_v56  ;;  %v5237_v21 = vadd.f32 %v5229_v7, %v5223_v16 }
 0x4de   :  { %v5238_v54 = vmul.f32 %v5234_v39, %v5234_v39  ;;  %v5239_v36 = vmul.f32 %v5235_v22, %v5235_v22  ;;  %v5240_v13 = vmul.f32 %v5236_v1, %v5236_v1  ;;  %v5241_v29 = vmul.f32 %v5237_v21, %v5237_v21 }
 0x4e0   :  { %v5242_v0 = vsel %vm2548_vm0, %v5238_v54, 0.0  ;;  %v5243_v14 = vsel %vm2548_vm0, %v5239_v36, 0.0  ;;  %v5245_v38 = vsel %vm2548_vm0, %v5240_v13, 0.0  ;;  %v5247_v41 = vsel %vm2548_vm0, %v5241_v29, 0.0 }
 0x4e1   :  { %v5244_v40 = vadd.f32 %v5243_v14, %v5242_v0 }
 0x4e3   :  { %v5246_v15 = vadd.f32 %v5245_v38, %v5244_v40 }
 0x4e5   :  { %v5248_v32 = vadd.f32 %v5247_v41, %v5246_v15 }
 0x4e7   :  { %5249 = vadd.xlane.f32.xlu2 %v5248_v32 }
 0x55a   :  { %v5250_v43 = vpop.xlane.xlu2 %5249 }
 0x55b   :  { %8844 = vrsqrt.f32 %v5250_v43  ;;  %vm5257_vm15 = vweird.f32 %v5250_v43 }
 0x561   :  { %v8845_v58 = vpop.eup %8844 }
 0x562   :  { %v5252_v45 = vmul.f32 %v8845_v58, %v5250_v43  ;;  %vm5258_vm14 = vweird.f32 %v8845_v58 }
 0x563   :  { %vm5259_vm1 = vmor %vm5257_vm15, %vm5258_vm14 }
 0x564   :  { %v5253_v60 = vmul.f32 %v8845_v58, %v5252_v45 }
 0x566   :  { %v5254_v27 = vmul.f32 0.5, %v5253_v60 }
 0x568   :  { %v5255_v55 = vsub.f32 1.5, %v5254_v27 }
 0x56a   :  { %v5256_v3 = vmul.f32 %v8845_v58, %v5255_v55 }
 0x56c   :  { %v5260_v51 = vsel %vm5259_vm1, %v8845_v58, %v5256_v3 }
 0x56d   :  { %v5261_v52 = vmul.f32 %v5260_v51, %v5234_v39  ;;  %v5262_v33 = vmul.f32 %v5260_v51, %v5235_v22  ;;  %v5263_v61 = vmul.f32 %v5260_v51, %v5236_v1  ;;  %v5264_v57 = vmul.f32 %v5260_v51, %v5237_v21 }
 0x56e   :  { %v5481_v21 = vlaneseq }
 0x56f   :  { %v5293_v62 = vmul.f32 %v5261_v52, %v5261_v52  ;;  %v5294_v9 = vmul.f32 %v5262_v33, %v5262_v33  ;;  %v5295_v10 = vmul.f32 %v5263_v61, %v5263_v61  ;;  %v5296_v50 = vmul.f32 %v5264_v57, %v5264_v57 }
 0x570   :  { %v13241_v36 = vand.u32 127, %v5481_v21  ;;  %v5484_v51 = vshrl.u32 %v5481_v21, 7 }
 0x571   :  { %v5297_v20 = vsel %vm2548_vm0, %v5293_v62, 0.0  ;;  %v5298_v49 = vsel %vm2548_vm0, %v5294_v9, 0.0  ;;  %v5300_v8 = vsel %vm2548_vm0, %v5295_v10, 0.0  ;;  %v5302_v19 = vsel %vm2548_vm0, %v5296_v50, 0.0 }
 0x572   :  { %v5299_v53 = vadd.f32 %v5298_v49, %v5297_v20  ;;  %vm5485_vm8 = vcmp.eq.s32.totalorder %v13241_v36, %v5484_v51  ;;  %vm5603_vm14 = vcmp.eq.s32.totalorder %v13241_v36, 1  ;;  %vm5602_vm15 = vcmp.eq.s32.totalorder %v13241_v36, 0 }
 0x574   :  { %v5301_v34 = vadd.f32 %v5300_v8, %v5299_v53 }
 0x576   :  { %v5303_v18 = vadd.f32 %v5302_v19, %v5301_v34 }
 0x578   :  { %5304 = vadd.xlane.f32.xlu1 %v5303_v18 }
 0x5eb   :  { %v5305_v59 = vpop.xlane.xlu1 %5304 }
 0x5ec   :  { %v5306_v12 = vmax.f32 %v5305_v59, 1e-24 }
 0x5ee   :  { %8846 = vrsqrt.f32 %v5306_v12  ;;  %vm5313_vm3 = vweird.f32 %v5306_v12 }
 0x5f4   :  { %v8847_v46 = vpop.eup %8846 }
 0x5f5   :  { %v5308_v44 = vmul.f32 %v8847_v46, %v5306_v12  ;;  %vm5314_vm2 = vweird.f32 %v8847_v46 }
 0x5f6   :  { %vm5315_vm4 = vmor %vm5313_vm3, %vm5314_vm2 }
 0x5f7   :  { %v5309_v63 = vmul.f32 %v8847_v46, %v5308_v44 }
 0x5f9   :  { %v5310_v31 = vmul.f32 0.5, %v5309_v63 }
 0x5fb   :  { %v5311_v6 = vsub.f32 1.5, %v5310_v31 }
 0x5fd   :  { %v5312_v47 = vmul.f32 %v8847_v46, %v5311_v6 }
 0x5ff   :  { %v5316_v4 = vsel %vm5315_vm4, %v8847_v46, %v5312_v47 }
 0x600   :  { %v5317_v26 = vmul.f32 %v5316_v4, %v5261_v52  ;;  %v5318_v48 = vmul.f32 %v5316_v4, %v5262_v33  ;;  %v5319_v11 = vmul.f32 %v5316_v4, %v5263_v61  ;;  %v5320_v17 = vmul.f32 %v5316_v4, %v5264_v57 }
 0x602   :  { %5337 = vmatmul.f32.vlgmr.msra.gmra.mxu0 %v5317_v26  ;;  %5357 = vmatmul.f32.vlgmr.msra.gmra.mxu1 %v5318_v48 }
 0x603   :  { %5377 = vmatmul.f32.vlgmr.msra.gmra.mxu2 %v5319_v11  ;;  %5397 = vmatmul.f32.vlgmr.msra.gmra.mxu3 %v5320_v17 }
 0x604   :  { %5416 = vmatpush.xpose.msrb.mxu0 %v5317_v26  ;;  %5436 = vmatpush.xpose.msrb.mxu1 %v5318_v48  ;;  %v8859_v48 = vmov 4.0  }
 0x605   :  { %5456 = vmatpush.xpose.msrb.mxu2 %v5319_v11  ;;  %5476 = vmatpush.xpose.msrb.mxu3 %v5320_v17 }
 0x60a   :  { %5417 = vmatmul.f32.vlgmr.msrb.gmra.mxu0 %v13204_v30  ;;  %5437 = vmatmul.f32.vlgmr.msrb.gmra.mxu1 %v13206_v28 }
 0x60b   :  { %5457 = vmatmul.f32.vlgmr.msrb.gmra.mxu2 %v13208_v5  ;;  %5477 = vmatmul.f32.vlgmr.msrb.gmra.mxu3 %v13210_v2 }
 0x67f   :  { %v5338_v7 = vpop.f32.mrf.mxu0  ;;  %v5358_v23 = vpop.f32.mrf.mxu1 }
 0x680   :  { %v5359_v24 = vadd.f32 %v5358_v23, %v5338_v7  ;;  %v8860_v7 = vmov 0.0  }
 0x686   :  { %v5378_v25 = vpop.f32.mrf.mxu2  ;;  %v5398_v42 = vpop.f32.mrf.mxu3 }
 0x687   :  { %v5379_v35 = vadd.f32 %v5378_v25, %v5359_v24  ;;  %v5418_v56 = vpop.f32.mrf.mxu0  ;;  %v5438_v16 = vpop.f32.mrf.mxu1 }
 0x688   :  { %v5439_v30 = vadd.f32 %v5438_v16, %v5418_v56 }
 0x689   :  { %v5399_v37 = vadd.f32 %v5398_v42, %v5379_v35 }
 0x68b   :  { %v5487_v39 = vsel %vm5486_vm5, %v5399_v37, -inf  ;;  %v5499_v33 = vsel %vm5485_vm8, %v5399_v37, 0.0 }
 0x68c   :  { %5488 = vmax.xlane.f32.xlu0 %v5487_v39  ;;  %v5500_v61 = vsel %vm5486_vm5, %v5499_v33, 0.0 }
 0x68e   :  { %v5458_v22 = vpop.f32.mrf.mxu2  ;;  %v5478_v1 = vpop.f32.mrf.mxu3 }
 0x68f   :  { %v5459_v28 = vadd.f32 %v5458_v22, %v5439_v30 }
 0x691   :  { %v5479_v5 = vadd.f32 %v5478_v1, %v5459_v28 }
 0x693   :  { %v5519_v2 = vsel %vm5486_vm5, %v5479_v5, -inf  ;;  %v5531_v8 = vsel %vm5485_vm8, %v5479_v5, 0.0 }
 0x694   :  { %5520 = vmax.xlane.f32.xlu2 %v5519_v2  ;;  %v5532_v34 = vsel %vm5486_vm5, %v5531_v8, 0.0 }
 0x6ff   :  { %v5489_v54 = vpop.xlane.xlu0 %5488 }
 0x700   :  { %v5490_v13 = vsub.f32 %v5399_v37, %v5489_v54  ;;  %vm5546_vm6 = vcmp.eq.f32.partialorder %v5399_v37, %v5489_v54 }
 0x701   :  { %v5547_v29 = vsel %vm5546_vm6, %v13241_v36, 4 }
 0x702   :  { %v5491_v0 = vmul.f32 1.442695, %v5490_v13  ;;  %v5548_v14 = vsel %vm5486_vm5, %v5547_v29, 2147483647 }
 0x703   :  { %v5550_v40 = vshra.s32 %v5548_v14, 16  ;;  %v5549_v57 = vand.u32 65535, %v5548_v14 }
 0x704   :  { %8848 = vpow2.f32 %v5491_v0 }
 0x705   :  { %v5552_v38 = vcvt.s32.f32 %v5550_v40  ;;  %v5551_v9 = vcvt.s32.f32 %v5549_v57 }
 0x707   :  { %v13245_v15 = vpop.xlane.xlu2 %5520  ;;  %5553 = vmin.xlane.f32.xlu2 %v5552_v38 }
 0x708   :  { %v5522_v41 = vsub.f32 %v5479_v5, %v13245_v15  ;;  %vm5574_vm7 = vcmp.eq.f32.partialorder %v5479_v5, %v13245_v15 }
 0x709   :  { %v5575_v32 = vsel %vm5574_vm7, %v13241_v36, 4 }
 0x70a   :  { %v8849_v43 = vpop.eup %8848  ;;  %v5523_v58 = vmul.f32 1.442695, %v5522_v41  ;;  %v5576_v45 = vsel %vm5486_vm5, %v5575_v32, 2147483647 }
 0x70b   :  { %v5493_v60 = vsel %vm5486_vm5, %v8849_v43, 0.0  ;;  %v5578_v27 = vshra.s32 %v5576_v45, 16  ;;  %v5577_v50 = vand.u32 65535, %v5576_v45 }
 0x70c   :  { %5494 = vadd.xlane.f32.xlu0 %v5493_v60  ;;  %8850 = vpow2.f32 %v5523_v58 }
 0x70d   :  { %v5580_v55 = vcvt.s32.f32 %v5578_v27  ;;  %v5579_v49 = vcvt.s32.f32 %v5577_v50 }
 0x70f   :  { %5581 = vmin.xlane.f32.xlu1 %v5580_v55 }
 0x712   :  { %v8851_v3 = vpop.eup %8850 }
 0x713   :  { %v5525_v52 = vsel %vm5486_vm5, %v8851_v3, 0.0 }
 0x717   :  { %5526 = vadd.xlane.f32.xlu1 %v5525_v52 }
 0x71f   :  { %5501 = vadd.xlane.f32.xlu1 %v5500_v61 }
 0x77a   :  { %v5554_v62 = vpop.xlane.xlu2 %5553 }
 0x77b   :  { %vm5555_vm9 = vcmp.eq.f32.partialorder %v5552_v38, %v5554_v62  ;;  %v5560_v46 = vcvt.f32.s32 %v5554_v62 }
 0x77c   :  { %v5556_v10 = vsel %vm5555_vm9, %v5551_v9, inf }
 0x77d   :  { %5557 = vmin.xlane.f32.xlu0 %v5556_v10  ;;  %v5561_v6 = vshll.u32 %v5560_v46, 16 }
 0x77f   :  { %v5495_v19 = vpop.xlane.xlu0 %5494 }
 0x780   :  { %8852 = vlog2.f32 %v5495_v19 }
 0x782   :  { %v5582_v20 = vpop.xlane.xlu1 %5581 }
 0x783   :  { %vm5583_vm10 = vcmp.eq.f32.partialorder %v5580_v55, %v5582_v20  ;;  %v5588_v11 = vcvt.f32.s32 %v5582_v20 }
 0x784   :  { %v5584_v53 = vsel %vm5583_vm10, %v5579_v49, inf }
 0x785   :  { %5585 = vmin.xlane.f32.xlu2 %v5584_v53  ;;  %v5589_v37 = vshll.u32 %v5588_v11, 16 }
 0x786   :  { %v8853_v59 = vpop.eup %8852 }
 0x787   :  { %v5497_v12 = vmul.f32 0.6931472, %v8853_v59 }
 0x789   :  { %v5498_v63 = vadd.f32 %v5497_v12, %v5489_v54 }
 0x78a   :  { %v5527_v18 = vpop.xlane.xlu1 %5526 }
 0x78b   :  { %8854 = vlog2.f32 %v5527_v18 }
 0x78c   :  { %8856 = vrcp.f32 %v8859_v48 }
 0x78d   :  { %5533 = vadd.xlane.f32.xlu2 %v5532_v34 }
 0x791   :  { %v8855_v24 = vpop.eup %8854 }
 0x792   :  { %v5502_v44 = vpop.xlane.xlu1 %5501  ;;  %v8857_v16 = vpop.eup %8856  ;;  %v5529_v39 = vmul.f32 0.6931472, %v8855_v24 }
 0x793   :  { %v5503_v47 = vsub.f32 %v5498_v63, %v5502_v44  ;;  %v5512_v1 = vmul.f32 4.0, %v8857_v16  ;;  %vm5516_vm13 = vweird.f32 %v8857_v16 }
 0x794   :  { %v5530_v54 = vadd.f32 %v5529_v39, %v13245_v15 }
 0x795   :  { %v5504_v17 = vsel %vm2548_vm0, %v5503_v47, 0.0  ;;  %v5513_v14 = vsub.f32 1.0, %v5512_v1 }
 0x796   :  { %v5505_v25 = vrot.slane %v5504_v17, 4 }
 0x797   :  { %v5514_v60 = vmul.f32 %v8857_v16, %v5513_v14 }
 0x798   :  { %v5506_v28 = vadd.f32 %v5505_v25, %v5504_v17 }
 0x799   :  { %v5515_v15 = vadd.f32 %v8857_v16, %v5514_v60 }
 0x79a   :  { %v5507_v13 = vrot.slane %v5506_v28, 2 }
 0x79b   :  { %v5517_v50 = vsel %vm5516_vm13, %v8857_v16, %v5515_v15 }
 0x79c   :  { %v5508_v43 = vadd.f32 %v5507_v13, %v5506_v28 }
 0x7f0   :  { %v5558_v31 = vpop.xlane.xlu0 %5557 }
 0x7f1   :  { %v5559_v4 = vcvt.f32.s32 %v5558_v31 }
 0x7f3   :  { %v5562_v26 = vadd.s32 %v5561_v6, %v5559_v4 }
 0x7f5   :  { %vm5563_vm11 = vcmp.eq.s32.totalorder %v5562_v26, %v5484_v51 }
 0x7f6   :  { %v8173_v23 = vsel %vm5563_vm11, 1.0, %v8860_v7 }
 0x7f7   :  { %v5566_v42 = vsel %vm2548_vm0, %v8173_v23, 0.0 }
 0x7f8   :  { %v5586_v35 = vpop.xlane.xlu2 %5585  ;;  %v5567_v30 = vrot.slane %v5566_v42, 4 }
 0x7f9   :  { %v5587_v56 = vcvt.f32.s32 %v5586_v35 }
 0x7fa   :  { %v5568_v2 = vadd.f32 %v5567_v30, %v5566_v42 }
 0x7fb   :  { %v5590_v22 = vadd.s32 %v5589_v37, %v5587_v56 }
 0x7fc   :  { %v5569_v41 = vrot.slane %v5568_v2, 2 }
 0x7fd   :  { %vm5591_vm12 = vcmp.eq.s32.totalorder %v5590_v22, %v5484_v51  ;;  %v5509_v51 = vrot.slane %v5508_v43, 1 }
 0x7fe   :  { %v8174_v5 = vsel %vm5591_vm12, 1.0, %v8860_v7  ;;  %v5570_v3 = vadd.f32 %v5569_v41, %v5568_v2 }
 0x7ff   :  { %v5594_v21 = vsel %vm2548_vm0, %v8174_v5, 0.0  ;;  %v5510_v9 = vadd.f32 %v5509_v51, %v5508_v43 }
 0x800   :  { %v5595_v29 = vrot.slane %v5594_v21, 4  ;;  %v5534_v0 = vpop.xlane.xlu2 %5533  ;;  %v5571_v62 = vrot.slane %v5570_v3, 1 }
 0x801   :  { %v5535_v40 = vsub.f32 %v5530_v54, %v5534_v0  ;;  %v5518_v8 = vmul.f32 %v5517_v50, %v5510_v9 }
 0x802   :  { %v5596_v38 = vadd.f32 %v5595_v29, %v5594_v21  ;;  %v5572_v53 = vadd.f32 %v5571_v62, %v5570_v3 }
 0x803   :  { %v5536_v32 = vsel %vm2548_vm0, %v5535_v40, 0.0  ;;  %vm5604_vm0 = vcmp.eq.s32.totalorder %v13241_v36, 2 }
 0x804   :  { %v5597_v58 = vrot.slane %v5596_v38, 2  ;;  %v5537_v45 = vrot.slane %v5536_v32, 4  ;;  %v5573_v59 = vmul.f32 %v5572_v53, %v5517_v50 }
 0x806   :  { %v5598_v27 = vadd.f32 %v5597_v58, %v5596_v38  ;;  %v5538_v55 = vadd.f32 %v5537_v45, %v5536_v32 }
 0x808   :  { %v5599_v52 = vrot.slane %v5598_v27, 1  ;;  %v5539_v33 = vrot.slane %v5538_v55, 2 }
 0x80a   :  { %v5600_v61 = vadd.f32 %v5599_v52, %v5598_v27  ;;  %v5540_v57 = vadd.f32 %v5539_v33, %v5538_v55 }
 0x80c   :  { %v5541_v10 = vrot.slane %v5540_v57, 1  ;;  %v5601_v20 = vmul.f32 %v5600_v61, %v5517_v50 }
 0x80e   :  { %v5542_v49 = vadd.f32 %v5541_v10, %v5540_v57  ;;  %v5605_v19 = vsel %vm5604_vm0, %v5601_v20, 0.0 }
 0x80f   :  { %v5606_v46 = vsel %vm5603_vm14, %v5573_v59, %v5605_v19 }
 0x810   :  { %v5543_v34 = vmul.f32 %v5542_v49, %v5517_v50 }
 0x812   :  { %v5544_v18 = vadd.f32 %v5543_v34, %v5518_v8 }
 0x814   :  { %v5545_v12 = vmul.f32 0.5, %v5544_v18 }
 0x816   :  { %v5607_v44 = vsel %vm5602_vm15, %v5545_v12, %v5606_v46 }
 0x817   :  { %5608 = vst [vmem:[%s13281_s10] sm:$0x1] %v5607_v44 }

</bundles_post_ra>
